<compile_context>
chip_gen: v7x
topology: tpu7x:2x2x1
jax: 0.10.0
libtpu: 0.0.40
codegen_flags: <defaults>
</compile_context>

<pallas_src>
import functools

import jax
import jax.numpy as jnp
from jax import lax
from jax.experimental import pallas as pl
from jax.experimental.pallas import tpu as pltpu

N_ACTIONS = 36
LANES = 128                    # channel padding (TPU lane width)
GRID_HW = 8                    # input spatial size fixed at 8x8 by fc3 in-features (256 = 64*2*2)
ROWS_PER_IMG = GRID_HW * GRID_HW   # 64 rows per image (r = h*8 + w)
SHIFT_PAD = 32                 # >= max row shift (2*8 + 2 = 18); keeps shifted reads in-bounds


# ----------------------------------------------------------------------------
# Fused kernel: conv1+relu, conv2+relu, conv3+relu, fc3+relu, fc4
# ----------------------------------------------------------------------------
def _convdqn_kernel(x_ref, w1, b1, w2, b2, w3, b3, wf3, bf3, wf4, bf4,
                    o_ref, act0, act1, xfc, *, batch):
    M = batch * ROWS_PER_IMG          # rows actually computed per layer
    R = M + SHIFT_PAD                 # rows held in activation buffers

    def conv_relu(src, w_ref, b_ref, dst, zero_tail):
        # 3x3 VALID conv on the fixed 8x8 grid as 9 shifted accumulating matmuls.
        acc = jnp.zeros((M, LANES), jnp.float32)
        for k in range(9):
            di, dj = divmod(k, 3)
            s = di * GRID_HW + dj
            acc += jnp.dot(src[s:s + M, :], w_ref[k],
                           preferred_element_type=jnp.float32)
        y = jnp.maximum(acc + b_ref[...], 0.0)   # padded lanes stay exactly 0
        dst[0:M, :] = y
        if zero_tail:                             # next layer reads up to row M+17
            dst[M:R, :] = jnp.zeros((R - M, LANES), jnp.float32)

    conv_relu(x_ref, w1, b1, act0, True)    # (B,3,8,8)  -> valid 6x6, 16 ch
    conv_relu(act0, w2, b2, act1, True)     #            -> valid 4x4, 32 ch
    conv_relu(act1, w3, b3, act0, False)    #            -> valid 2x2, 64 ch

    # Gather the 2x2 valid conv3 outputs into (B, 4*128); block k = h*2 + w
    # matches the pre-permuted fc3 weight (torch .view flatten order c*4+h*2+w).
    for b in range(batch):
        for k, (h, w) in enumerate(((0, 0), (0, 1), (1, 0), (1, 1))):
            r = b * ROWS_PER_IMG + h * GRID_HW + w
            xfc[b:b + 1, k * LANES:(k + 1) * LANES] = act0[r:r + 1, :]

    h3 = jnp.dot(xfc[...], wf3[...], preferred_element_type=jnp.float32) + bf3[...]
    h3 = jnp.maximum(h3, 0.0)
    out = jnp.dot(h3, wf4[...], preferred_element_type=jnp.float32) + bf4[...]
    o_ref[...] = out.astype(o_ref.dtype)


def _full_spec(shape):
    if len(shape) == 2:
        return pl.BlockSpec(shape, lambda: (0, 0))
    assert len(shape) == 3
    return pl.BlockSpec(shape, lambda: (0, 0, 0))


# ----------------------------------------------------------------------------
# One-time weight re-layout / padding (done at init, NOT inside the jitted fwd)
# ----------------------------------------------------------------------------
def prepare_params(params):
    def conv_pack(w, b):
        cout, cin, kh, kw = w.shape
        wk = jnp.transpose(w, (2, 3, 1, 0)).reshape(kh * kw, cin, cout)
        wk = jnp.zeros((kh * kw, LANES, LANES), jnp.float32).at[:, :cin, :cout].set(wk)
        bp = jnp.zeros((1, LANES), jnp.float32).at[0, :cout].set(b)
        return wk, bp

    w1, b1 = conv_pack(params["conv1_w"], params["conv1_b"])
    w2, b2 = conv_pack(params["conv2_w"], params["conv2_b"])
    w3, b3 = conv_pack(params["conv3_w"], params["conv3_b"])

    # fc3: torch x.view(B,-1) flatten order is f = c*4 + h*2 + w  (c<64, h,w<2).
    f3 = params["fc3_w"].reshape(124, 64, 2, 2)            # (o, c, h, w)
    f3 = jnp.transpose(f3, (2, 3, 1, 0)).reshape(4, 64, 124)  # (k=h*2+w, c, o)
    wf3 = jnp.zeros((4, LANES, LANES), jnp.float32).at[:, :64, :124].set(f3)
    wf3 = wf3.reshape(4 * LANES, LANES)
    bf3 = jnp.zeros((1, LANES), jnp.float32).at[0, :124].set(params["fc3_b"])

    wf4 = jnp.zeros((LANES, LANES), jnp.float32).at[:124, :N_ACTIONS].set(params["fc4_w"].T)
    bf4 = jnp.zeros((1, LANES), jnp.float32).at[0, :N_ACTIONS].set(params["fc4_b"])

    return {"w1": w1, "b1": b1, "w2": w2, "b2": b2, "w3": w3, "b3": b3,
            "wf3": wf3, "bf3": bf3, "wf4": wf4, "bf4": bf4}


# ----------------------------------------------------------------------------
# Forward pass (single pallas_call)
# ----------------------------------------------------------------------------
def convdqn_forward(prepped, x):
    B = x.shape[0]
    M = B * ROWS_PER_IMG
    R = M + SHIFT_PAD

    # Input prep (tiny, one-time per call): NCHW -> channel-last rows, pad to 128 lanes.
    x_rows = jnp.transpose(x, (0, 2, 3, 1)).reshape(M, 3)
    x_pad = jnp.zeros((R, LANES), jnp.float32).at[:M, :3].set(x_rows)

    p = prepped
    out = pl.pallas_call(
        functools.partial(_convdqn_kernel, batch=B),
        out_shape=jax.ShapeDtypeStruct((B, LANES), jnp.float32),
        in_specs=[
            _full_spec((R, LANES)),              # x
            _full_spec((9, LANES, LANES)),       # w1
            _full_spec((1, LANES)),              # b1
            _full_spec((9, LANES, LANES)),       # w2
            _full_spec((1, LANES)),              # b2
            _full_spec((9, LANES, LANES)),       # w3
            _full_spec((1, LANES)),              # b3
            _full_spec((4 * LANES, LANES)),      # wf3
            _full_spec((1, LANES)),              # bf3
            _full_spec((LANES, LANES)),          # wf4
            _full_spec((1, LANES)),              # bf4
        ],
        out_specs=pl.BlockSpec((B, LANES), lambda: (0, 0)),
        scratch_shapes=[
            pltpu.VMEM((R, LANES), jnp.float32),       # act0
            pltpu.VMEM((R, LANES), jnp.float32),       # act1
            pltpu.VMEM((B, 4 * LANES), jnp.float32),   # xfc (flattened features)
        ],
    )(x_pad, p["w1"], p["b1"], p["w2"], p["b2"], p["w3"], p["b3"],
      p["wf3"], p["bf3"], p["wf4"], p["bf4"])

    return out[:, :N_ACTIONS]


# ----------------------------------------------------------------------------
# Parameters (deterministic init, PyTorch-style shapes)
# ----------------------------------------------------------------------------
def init_params(key):
    ks = jax.random.split(key, 10)

    def uniform(k, shape, fan_in):
        bound = 1.0 / jnp.sqrt(jnp.float32(fan_in))
        return jax.random.uniform(k, shape, jnp.float32, -bound, bound)

    return {
        "conv1_w": uniform(ks[0], (16, 3, 3, 3), 3 * 9),
        "conv1_b": uniform(ks[1], (16,), 3 * 9),
        "conv2_w": uniform(ks[2], (32, 16, 3, 3), 16 * 9),
        "conv2_b": uniform(ks[3], (32,), 16 * 9),
        "conv3_w": uniform(ks[4], (64, 32, 3, 3), 32 * 9),
        "conv3_b": uniform(ks[5], (64,), 32 * 9),
        "fc3_w": uniform(ks[6], (124, 256), 256),
        "fc3_b": uniform(ks[7], (124,), 256),
        "fc4_w": uniform(ks[8], (N_ACTIONS, 124), 124),
        "fc4_b": uniform(ks[9], (N_ACTIONS,), 124),
    }


# ----------------------------------------------------------------------------
# Pure-JAX reference (mirrors the PyTorch forward exactly) for verification
# ----------------------------------------------------------------------------
def convdqn_reference(params, x):
    def conv_relu(x, w, b):
        y = lax.conv_general_dilated(
            x, w, window_strides=(1, 1), padding="VALID",
            dimension_numbers=("NCHW", "OIHW", "NCHW"))
        return jnp.maximum(y + b[None, :, None, None], 0.0)

    x = conv_relu(x, params["conv1_w"], params["conv1_b"])
    x = conv_relu(x, params["conv2_w"], params["conv2_b"])
    x = conv_relu(x, params["conv3_w"], params["conv3_b"])
    x = x.reshape(x.shape[0], -1)
    x = jnp.maximum(x @ params["fc3_w"].T + params["fc3_b"], 0.0)
    x = x @ params["fc4_w"].T + params["fc4_b"]
    return x


if __name__ == "__main__":
    key = jax.random.PRNGKey(0)
    pkey, xkey = jax.random.split(key)

    params = init_params(pkey)
    prepped = prepare_params(params)           # one-time weight re-layout/padding

    # Input spatial size fixed at 8x8 by fc3 in-features (256 = 64*2*2).
    x = jax.random.normal(xkey, (2, 3, 8, 8), dtype=jnp.float32)

    fwd = jax.jit(convdqn_forward)
    out = jax.block_until_ready(fwd(prepped, x))
    assert out.shape == (2, N_ACTIONS), out.shape

    ref = jax.block_until_ready(convdqn_reference(params, x))
    max_err = float(jnp.max(jnp.abs(out - ref)))
    assert max_err < 1e-3, f"mismatch vs reference: {max_err}"

    print("KERNEL_OK")
</pallas_src>

<mosaic_0001>
module attributes {stable_mosaic.version = 11 : i64} {
  func.func @_convdqn_kernel(%arg0: memref<160x128xf32, #tpu.memory_space<vmem>>, %arg1: memref<9x128x128xf32, #tpu.memory_space<vmem>>, %arg2: memref<1x128xf32, #tpu.memory_space<vmem>>, %arg3: memref<9x128x128xf32, #tpu.memory_space<vmem>>, %arg4: memref<1x128xf32, #tpu.memory_space<vmem>>, %arg5: memref<9x128x128xf32, #tpu.memory_space<vmem>>, %arg6: memref<1x128xf32, #tpu.memory_space<vmem>>, %arg7: memref<512x128xf32, #tpu.memory_space<vmem>>, %arg8: memref<1x128xf32, #tpu.memory_space<vmem>>, %arg9: memref<128x128xf32, #tpu.memory_space<vmem>>, %arg10: memref<1x128xf32, #tpu.memory_space<vmem>>, %arg11: memref<2x128xf32, #tpu.memory_space<vmem>>, %arg12: memref<160x128xf32, #tpu.memory_space<vmem>>, %arg13: memref<160x128xf32, #tpu.memory_space<vmem>>, %arg14: memref<2x512xf32, #tpu.memory_space<vmem>>) attributes {dimension_semantics = [], scalar_prefetch = 0 : i64, scratch_operands = 3 : i64, tpu.core_type = #tpu.core_type<tc>} {
    %cst = arith.constant 0.000000e+00 : f32
    %0 = vector.broadcast %cst : f32 to vector<128x128xf32>
    %c0 = arith.constant 0 : index
    %c0_0 = arith.constant 0 : index
    %1 = vector.load %arg0[%c0, %c0_0] : memref<160x128xf32, #tpu.memory_space<vmem>>, vector<128x128xf32>
    %c0_1 = arith.constant 0 : index
    %c0_2 = arith.constant 0 : index
    %c0_3 = arith.constant 0 : index
    %2 = vector.load %arg1[%c0_1, %c0_2, %c0_3] : memref<9x128x128xf32, #tpu.memory_space<vmem>>, vector<1x128x128xf32>
    %3 = vector.shape_cast %2 : vector<1x128x128xf32> to vector<128x128xf32>
    %cst_4 = arith.constant dense<0.000000e+00> : vector<128x128xf32>
    %4 = tpu.matmul %1, %3, %cst_4 {dimension_numbers = #tpu.dot_dimension_numbers<[1], [0], [0], [1], [0, 0, 1, 1], [], []>} : vector<128x128xf32>, vector<128x128xf32>, vector<128x128xf32> -> vector<128x128xf32>
    %5 = arith.addf %0, %4 : vector<128x128xf32>
    %c1 = arith.constant 1 : index
    %c0_5 = arith.constant 0 : index
    %6 = vector.load %arg0[%c1, %c0_5] : memref<160x128xf32, #tpu.memory_space<vmem>>, vector<128x128xf32>
    %c1_6 = arith.constant 1 : index
    %c0_7 = arith.constant 0 : index
    %c0_8 = arith.constant 0 : index
    %7 = vector.load %arg1[%c1_6, %c0_7, %c0_8] : memref<9x128x128xf32, #tpu.memory_space<vmem>>, vector<1x128x128xf32>
    %8 = vector.shape_cast %7 : vector<1x128x128xf32> to vector<128x128xf32>
    %cst_9 = arith.constant dense<0.000000e+00> : vector<128x128xf32>
    %9 = tpu.matmul %6, %8, %cst_9 {dimension_numbers = #tpu.dot_dimension_numbers<[1], [0], [0], [1], [0, 0, 1, 1], [], []>} : vector<128x128xf32>, vector<128x128xf32>, vector<128x128xf32> -> vector<128x128xf32>
    %10 = arith.addf %5, %9 : vector<128x128xf32>
    %c2 = arith.constant 2 : index
    %c0_10 = arith.constant 0 : index
    %11 = vector.load %arg0[%c2, %c0_10] : memref<160x128xf32, #tpu.memory_space<vmem>>, vector<128x128xf32>
    %c2_11 = arith.constant 2 : index
    %c0_12 = arith.constant 0 : index
    %c0_13 = arith.constant 0 : index
    %12 = vector.load %arg1[%c2_11, %c0_12, %c0_13] : memref<9x128x128xf32, #tpu.memory_space<vmem>>, vector<1x128x128xf32>
    %13 = vector.shape_cast %12 : vector<1x128x128xf32> to vector<128x128xf32>
    %cst_14 = arith.constant dense<0.000000e+00> : vector<128x128xf32>
    %14 = tpu.matmul %11, %13, %cst_14 {dimension_numbers = #tpu.dot_dimension_numbers<[1], [0], [0], [1], [0, 0, 1, 1], [], []>} : vector<128x128xf32>, vector<128x128xf32>, vector<128x128xf32> -> vector<128x128xf32>
    %15 = arith.addf %10, %14 : vector<128x128xf32>
    %c8 = arith.constant 8 : index
    %c0_15 = arith.constant 0 : index
    %16 = vector.load %arg0[%c8, %c0_15] : memref<160x128xf32, #tpu.memory_space<vmem>>, vector<128x128xf32>
    %c3 = arith.constant 3 : index
    %c0_16 = arith.constant 0 : index
    %c0_17 = arith.constant 0 : index
    %17 = vector.load %arg1[%c3, %c0_16, %c0_17] : memref<9x128x128xf32, #tpu.memory_space<vmem>>, vector<1x128x128xf32>
    %18 = vector.shape_cast %17 : vector<1x128x128xf32> to vector<128x128xf32>
    %cst_18 = arith.constant dense<0.000000e+00> : vector<128x128xf32>
    %19 = tpu.matmul %16, %18, %cst_18 {dimension_numbers = #tpu.dot_dimension_numbers<[1], [0], [0], [1], [0, 0, 1, 1], [], []>} : vector<128x128xf32>, vector<128x128xf32>, vector<128x128xf32> -> vector<128x128xf32>
    %20 = arith.addf %15, %19 : vector<128x128xf32>
    %c9 = arith.constant 9 : index
    %c0_19 = arith.constant 0 : index
    %21 = vector.load %arg0[%c9, %c0_19] : memref<160x128xf32, #tpu.memory_space<vmem>>, vector<128x128xf32>
    %c4 = arith.constant 4 : index
    %c0_20 = arith.constant 0 : index
    %c0_21 = arith.constant 0 : index
    %22 = vector.load %arg1[%c4, %c0_20, %c0_21] : memref<9x128x128xf32, #tpu.memory_space<vmem>>, vector<1x128x128xf32>
    %23 = vector.shape_cast %22 : vector<1x128x128xf32> to vector<128x128xf32>
    %cst_22 = arith.constant dense<0.000000e+00> : vector<128x128xf32>
    %24 = tpu.matmul %21, %23, %cst_22 {dimension_numbers = #tpu.dot_dimension_numbers<[1], [0], [0], [1], [0, 0, 1, 1], [], []>} : vector<128x128xf32>, vector<128x128xf32>, vector<128x128xf32> -> vector<128x128xf32>
    %25 = arith.addf %20, %24 : vector<128x128xf32>
    %c10 = arith.constant 10 : index
    %c0_23 = arith.constant 0 : index
    %26 = vector.load %arg0[%c10, %c0_23] : memref<160x128xf32, #tpu.memory_space<vmem>>, vector<128x128xf32>
    %c5 = arith.constant 5 : index
    %c0_24 = arith.constant 0 : index
    %c0_25 = arith.constant 0 : index
    %27 = vector.load %arg1[%c5, %c0_24, %c0_25] : memref<9x128x128xf32, #tpu.memory_space<vmem>>, vector<1x128x128xf32>
    %28 = vector.shape_cast %27 : vector<1x128x128xf32> to vector<128x128xf32>
    %cst_26 = arith.constant dense<0.000000e+00> : vector<128x128xf32>
    %29 = tpu.matmul %26, %28, %cst_26 {dimension_numbers = #tpu.dot_dimension_numbers<[1], [0], [0], [1], [0, 0, 1, 1], [], []>} : vector<128x128xf32>, vector<128x128xf32>, vector<128x128xf32> -> vector<128x128xf32>
    %30 = arith.addf %25, %29 : vector<128x128xf32>
    %c16 = arith.constant 16 : index
    %c0_27 = arith.constant 0 : index
    %31 = vector.load %arg0[%c16, %c0_27] : memref<160x128xf32, #tpu.memory_space<vmem>>, vector<128x128xf32>
    %c6 = arith.constant 6 : index
    %c0_28 = arith.constant 0 : index
    %c0_29 = arith.constant 0 : index
    %32 = vector.load %arg1[%c6, %c0_28, %c0_29] : memref<9x128x128xf32, #tpu.memory_space<vmem>>, vector<1x128x128xf32>
    %33 = vector.shape_cast %32 : vector<1x128x128xf32> to vector<128x128xf32>
    %cst_30 = arith.constant dense<0.000000e+00> : vector<128x128xf32>
    %34 = tpu.matmul %31, %33, %cst_30 {dimension_numbers = #tpu.dot_dimension_numbers<[1], [0], [0], [1], [0, 0, 1, 1], [], []>} : vector<128x128xf32>, vector<128x128xf32>, vector<128x128xf32> -> vector<128x128xf32>
    %35 = arith.addf %30, %34 : vector<128x128xf32>
    %c17 = arith.constant 17 : index
    %c0_31 = arith.constant 0 : index
    %36 = vector.load %arg0[%c17, %c0_31] : memref<160x128xf32, #tpu.memory_space<vmem>>, vector<128x128xf32>
    %c7 = arith.constant 7 : index
    %c0_32 = arith.constant 0 : index
    %c0_33 = arith.constant 0 : index
    %37 = vector.load %arg1[%c7, %c0_32, %c0_33] : memref<9x128x128xf32, #tpu.memory_space<vmem>>, vector<1x128x128xf32>
    %38 = vector.shape_cast %37 : vector<1x128x128xf32> to vector<128x128xf32>
    %cst_34 = arith.constant dense<0.000000e+00> : vector<128x128xf32>
    %39 = tpu.matmul %36, %38, %cst_34 {dimension_numbers = #tpu.dot_dimension_numbers<[1], [0], [0], [1], [0, 0, 1, 1], [], []>} : vector<128x128xf32>, vector<128x128xf32>, vector<128x128xf32> -> vector<128x128xf32>
    %40 = arith.addf %35, %39 : vector<128x128xf32>
    %c18 = arith.constant 18 : index
    %c0_35 = arith.constant 0 : index
    %41 = vector.load %arg0[%c18, %c0_35] : memref<160x128xf32, #tpu.memory_space<vmem>>, vector<128x128xf32>
    %c8_36 = arith.constant 8 : index
    %c0_37 = arith.constant 0 : index
    %c0_38 = arith.constant 0 : index
    %42 = vector.load %arg1[%c8_36, %c0_37, %c0_38] : memref<9x128x128xf32, #tpu.memory_space<vmem>>, vector<1x128x128xf32>
    %43 = vector.shape_cast %42 : vector<1x128x128xf32> to vector<128x128xf32>
    %cst_39 = arith.constant dense<0.000000e+00> : vector<128x128xf32>
    %44 = tpu.matmul %41, %43, %cst_39 {dimension_numbers = #tpu.dot_dimension_numbers<[1], [0], [0], [1], [0, 0, 1, 1], [], []>} : vector<128x128xf32>, vector<128x128xf32>, vector<128x128xf32> -> vector<128x128xf32>
    %45 = arith.addf %40, %44 : vector<128x128xf32>
    %c0_40 = arith.constant 0 : index
    %c0_41 = arith.constant 0 : index
    %46 = vector.load %arg2[%c0_40, %c0_41] : memref<1x128xf32, #tpu.memory_space<vmem>>, vector<1x128xf32>
    %47 = vector.broadcast %46 : vector<1x128xf32> to vector<128x128xf32>
    %48 = arith.addf %45, %47 : vector<128x128xf32>
    %cst_42 = arith.constant 0.000000e+00 : f32
    %49 = vector.broadcast %cst_42 : f32 to vector<128x128xf32>
    %50 = arith.maximumf %48, %49 : vector<128x128xf32>
    %c0_43 = arith.constant 0 : index
    %c0_44 = arith.constant 0 : index
    %51 = vector.load %arg12[%c0_43, %c0_44] : memref<160x128xf32, #tpu.memory_space<vmem>>, vector<128x128xf32>
    tpu.vector_store %arg12[%c0_43, %c0_44], %50 {strides = array<i32>} : memref<160x128xf32, #tpu.memory_space<vmem>>, vector<128x128xf32>,
    %cst_45 = arith.constant 0.000000e+00 : f32
    %52 = vector.broadcast %cst_45 : f32 to vector<32x128xf32>
    %c128 = arith.constant 128 : index
    %c0_46 = arith.constant 0 : index
    %53 = vector.load %arg12[%c128, %c0_46] : memref<160x128xf32, #tpu.memory_space<vmem>>, vector<32x128xf32>
    tpu.vector_store %arg12[%c128, %c0_46], %52 {strides = array<i32>} : memref<160x128xf32, #tpu.memory_space<vmem>>, vector<32x128xf32>,
    %cst_47 = arith.constant 0.000000e+00 : f32
    %54 = vector.broadcast %cst_47 : f32 to vector<128x128xf32>
    %c0_48 = arith.constant 0 : index
    %c0_49 = arith.constant 0 : index
    %55 = vector.load %arg12[%c0_48, %c0_49] : memref<160x128xf32, #tpu.memory_space<vmem>>, vector<128x128xf32>
    %c0_50 = arith.constant 0 : index
    %c0_51 = arith.constant 0 : index
    %c0_52 = arith.constant 0 : index
    %56 = vector.load %arg3[%c0_50, %c0_51, %c0_52] : memref<9x128x128xf32, #tpu.memory_space<vmem>>, vector<1x128x128xf32>
    %57 = vector.shape_cast %56 : vector<1x128x128xf32> to vector<128x128xf32>
    %cst_53 = arith.constant dense<0.000000e+00> : vector<128x128xf32>
    %58 = tpu.matmul %55, %57, %cst_53 {dimension_numbers = #tpu.dot_dimension_numbers<[1], [0], [0], [1], [0, 0, 1, 1], [], []>} : vector<128x128xf32>, vector<128x128xf32>, vector<128x128xf32> -> vector<128x128xf32>
    %59 = arith.addf %54, %58 : vector<128x128xf32>
    %c1_54 = arith.constant 1 : index
    %c0_55 = arith.constant 0 : index
    %60 = vector.load %arg12[%c1_54, %c0_55] : memref<160x128xf32, #tpu.memory_space<vmem>>, vector<128x128xf32>
    %c1_56 = arith.constant 1 : index
    %c0_57 = arith.constant 0 : index
    %c0_58 = arith.constant 0 : index
    %61 = vector.load %arg3[%c1_56, %c0_57, %c0_58] : memref<9x128x128xf32, #tpu.memory_space<vmem>>, vector<1x128x128xf32>
    %62 = vector.shape_cast %61 : vector<1x128x128xf32> to vector<128x128xf32>
    %cst_59 = arith.constant dense<0.000000e+00> : vector<128x128xf32>
    %63 = tpu.matmul %60, %62, %cst_59 {dimension_numbers = #tpu.dot_dimension_numbers<[1], [0], [0], [1], [0, 0, 1, 1], [], []>} : vector<128x128xf32>, vector<128x128xf32>, vector<128x128xf32> -> vector<128x128xf32>
    %64 = arith.addf %59, %63 : vector<128x128xf32>
    %c2_60 = arith.constant 2 : index
    %c0_61 = arith.constant 0 : index
    %65 = vector.load %arg12[%c2_60, %c0_61] : memref<160x128xf32, #tpu.memory_space<vmem>>, vector<128x128xf32>
    %c2_62 = arith.constant 2 : index
    %c0_63 = arith.constant 0 : index
    %c0_64 = arith.constant 0 : index
    %66 = vector.load %arg3[%c2_62, %c0_63, %c0_64] : memref<9x128x128xf32, #tpu.memory_space<vmem>>, vector<1x128x128xf32>
    %67 = vector.shape_cast %66 : vector<1x128x128xf32> to vector<128x128xf32>
    %cst_65 = arith.constant dense<0.000000e+00> : vector<128x128xf32>
    %68 = tpu.matmul %65, %67, %cst_65 {dimension_numbers = #tpu.dot_dimension_numbers<[1], [0], [0], [1], [0, 0, 1, 1], [], []>} : vector<128x128xf32>, vector<128x128xf32>, vector<128x128xf32> -> vector<128x128xf32>
    %69 = arith.addf %64, %68 : vector<128x128xf32>
    %c8_66 = arith.constant 8 : index
    %c0_67 = arith.constant 0 : index
    %70 = vector.load %arg12[%c8_66, %c0_67] : memref<160x128xf32, #tpu.memory_space<vmem>>, vector<128x128xf32>
    %c3_68 = arith.constant 3 : index
    %c0_69 = arith.constant 0 : index
    %c0_70 = arith.constant 0 : index
    %71 = vector.load %arg3[%c3_68, %c0_69, %c0_70] : memref<9x128x128xf32, #tpu.memory_space<vmem>>, vector<1x128x128xf32>
    %72 = vector.shape_cast %71 : vector<1x128x128xf32> to vector<128x128xf32>
    %cst_71 = arith.constant dense<0.000000e+00> : vector<128x128xf32>
    %73 = tpu.matmul %70, %72, %cst_71 {dimension_numbers = #tpu.dot_dimension_numbers<[1], [0], [0], [1], [0, 0, 1, 1], [], []>} : vector<128x128xf32>, vector<128x128xf32>, vector<128x128xf32> -> vector<128x128xf32>
    %74 = arith.addf %69, %73 : vector<128x128xf32>
    %c9_72 = arith.constant 9 : index
    %c0_73 = arith.constant 0 : index
    %75 = vector.load %arg12[%c9_72, %c0_73] : memref<160x128xf32, #tpu.memory_space<vmem>>, vector<128x128xf32>
    %c4_74 = arith.constant 4 : index
    %c0_75 = arith.constant 0 : index
    %c0_76 = arith.constant 0 : index
    %76 = vector.load %arg3[%c4_74, %c0_75, %c0_76] : memref<9x128x128xf32, #tpu.memory_space<vmem>>, vector<1x128x128xf32>
    %77 = vector.shape_cast %76 : vector<1x128x128xf32> to vector<128x128xf32>
    %cst_77 = arith.constant dense<0.000000e+00> : vector<128x128xf32>
    %78 = tpu.matmul %75, %77, %cst_77 {dimension_numbers = #tpu.dot_dimension_numbers<[1], [0], [0], [1], [0, 0, 1, 1], [], []>} : vector<128x128xf32>, vector<128x128xf32>, vector<128x128xf32> -> vector<128x128xf32>
    %79 = arith.addf %74, %78 : vector<128x128xf32>
    %c10_78 = arith.constant 10 : index
    %c0_79 = arith.constant 0 : index
    %80 = vector.load %arg12[%c10_78, %c0_79] : memref<160x128xf32, #tpu.memory_space<vmem>>, vector<128x128xf32>
    %c5_80 = arith.constant 5 : index
    %c0_81 = arith.constant 0 : index
    %c0_82 = arith.constant 0 : index
    %81 = vector.load %arg3[%c5_80, %c0_81, %c0_82] : memref<9x128x128xf32, #tpu.memory_space<vmem>>, vector<1x128x128xf32>
    %82 = vector.shape_cast %81 : vector<1x128x128xf32> to vector<128x128xf32>
    %cst_83 = arith.constant dense<0.000000e+00> : vector<128x128xf32>
    %83 = tpu.matmul %80, %82, %cst_83 {dimension_numbers = #tpu.dot_dimension_numbers<[1], [0], [0], [1], [0, 0, 1, 1], [], []>} : vector<128x128xf32>, vector<128x128xf32>, vector<128x128xf32> -> vector<128x128xf32>
    %84 = arith.addf %79, %83 : vector<128x128xf32>
    %c16_84 = arith.constant 16 : index
    %c0_85 = arith.constant 0 : index
    %85 = vector.load %arg12[%c16_84, %c0_85] : memref<160x128xf32, #tpu.memory_space<vmem>>, vector<128x128xf32>
    %c6_86 = arith.constant 6 : index
    %c0_87 = arith.constant 0 : index
    %c0_88 = arith.constant 0 : index
    %86 = vector.load %arg3[%c6_86, %c0_87, %c0_88] : memref<9x128x128xf32, #tpu.memory_space<vmem>>, vector<1x128x128xf32>
    %87 = vector.shape_cast %86 : vector<1x128x128xf32> to vector<128x128xf32>
    %cst_89 = arith.constant dense<0.000000e+00> : vector<128x128xf32>
    %88 = tpu.matmul %85, %87, %cst_89 {dimension_numbers = #tpu.dot_dimension_numbers<[1], [0], [0], [1], [0, 0, 1, 1], [], []>} : vector<128x128xf32>, vector<128x128xf32>, vector<128x128xf32> -> vector<128x128xf32>
    %89 = arith.addf %84, %88 : vector<128x128xf32>
    %c17_90 = arith.constant 17 : index
    %c0_91 = arith.constant 0 : index
    %90 = vector.load %arg12[%c17_90, %c0_91] : memref<160x128xf32, #tpu.memory_space<vmem>>, vector<128x128xf32>
    %c7_92 = arith.constant 7 : index
    %c0_93 = arith.constant 0 : index
    %c0_94 = arith.constant 0 : index
    %91 = vector.load %arg3[%c7_92, %c0_93, %c0_94] : memref<9x128x128xf32, #tpu.memory_space<vmem>>, vector<1x128x128xf32>
    %92 = vector.shape_cast %91 : vector<1x128x128xf32> to vector<128x128xf32>
    %cst_95 = arith.constant dense<0.000000e+00> : vector<128x128xf32>
    %93 = tpu.matmul %90, %92, %cst_95 {dimension_numbers = #tpu.dot_dimension_numbers<[1], [0], [0], [1], [0, 0, 1, 1], [], []>} : vector<128x128xf32>, vector<128x128xf32>, vector<128x128xf32> -> vector<128x128xf32>
    %94 = arith.addf %89, %93 : vector<128x128xf32>
    %c18_96 = arith.constant 18 : index
    %c0_97 = arith.constant 0 : index
    %95 = vector.load %arg12[%c18_96, %c0_97] : memref<160x128xf32, #tpu.memory_space<vmem>>, vector<128x128xf32>
    %c8_98 = arith.constant 8 : index
    %c0_99 = arith.constant 0 : index
    %c0_100 = arith.constant 0 : index
    %96 = vector.load %arg3[%c8_98, %c0_99, %c0_100] : memref<9x128x128xf32, #tpu.memory_space<vmem>>, vector<1x128x128xf32>
    %97 = vector.shape_cast %96 : vector<1x128x128xf32> to vector<128x128xf32>
    %cst_101 = arith.constant dense<0.000000e+00> : vector<128x128xf32>
    %98 = tpu.matmul %95, %97, %cst_101 {dimension_numbers = #tpu.dot_dimension_numbers<[1], [0], [0], [1], [0, 0, 1, 1], [], []>} : vector<128x128xf32>, vector<128x128xf32>, vector<128x128xf32> -> vector<128x128xf32>
    %99 = arith.addf %94, %98 : vector<128x128xf32>
    %c0_102 = arith.constant 0 : index
    %c0_103 = arith.constant 0 : index
    %100 = vector.load %arg4[%c0_102, %c0_103] : memref<1x128xf32, #tpu.memory_space<vmem>>, vector<1x128xf32>
    %101 = vector.broadcast %100 : vector<1x128xf32> to vector<128x128xf32>
    %102 = arith.addf %99, %101 : vector<128x128xf32>
    %cst_104 = arith.constant 0.000000e+00 : f32
    %103 = vector.broadcast %cst_104 : f32 to vector<128x128xf32>
    %104 = arith.maximumf %102, %103 : vector<128x128xf32>
    %c0_105 = arith.constant 0 : index
    %c0_106 = arith.constant 0 : index
    %105 = vector.load %arg13[%c0_105, %c0_106] : memref<160x128xf32, #tpu.memory_space<vmem>>, vector<128x128xf32>
    tpu.vector_store %arg13[%c0_105, %c0_106], %104 {strides = array<i32>} : memref<160x128xf32, #tpu.memory_space<vmem>>, vector<128x128xf32>,
    %cst_107 = arith.constant 0.000000e+00 : f32
    %106 = vector.broadcast %cst_107 : f32 to vector<32x128xf32>
    %c128_108 = arith.constant 128 : index
    %c0_109 = arith.constant 0 : index
    %107 = vector.load %arg13[%c128_108, %c0_109] : memref<160x128xf32, #tpu.memory_space<vmem>>, vector<32x128xf32>
    tpu.vector_store %arg13[%c128_108, %c0_109], %106 {strides = array<i32>} : memref<160x128xf32, #tpu.memory_space<vmem>>, vector<32x128xf32>,
    %cst_110 = arith.constant 0.000000e+00 : f32
    %108 = vector.broadcast %cst_110 : f32 to vector<128x128xf32>
    %c0_111 = arith.constant 0 : index
    %c0_112 = arith.constant 0 : index
    %109 = vector.load %arg13[%c0_111, %c0_112] : memref<160x128xf32, #tpu.memory_space<vmem>>, vector<128x128xf32>
    %c0_113 = arith.constant 0 : index
    %c0_114 = arith.constant 0 : index
    %c0_115 = arith.constant 0 : index
    %110 = vector.load %arg5[%c0_113, %c0_114, %c0_115] : memref<9x128x128xf32, #tpu.memory_space<vmem>>, vector<1x128x128xf32>
    %111 = vector.shape_cast %110 : vector<1x128x128xf32> to vector<128x128xf32>
    %cst_116 = arith.constant dense<0.000000e+00> : vector<128x128xf32>
    %112 = tpu.matmul %109, %111, %cst_116 {dimension_numbers = #tpu.dot_dimension_numbers<[1], [0], [0], [1], [0, 0, 1, 1], [], []>} : vector<128x128xf32>, vector<128x128xf32>, vector<128x128xf32> -> vector<128x128xf32>
    %113 = arith.addf %108, %112 : vector<128x128xf32>
    %c1_117 = arith.constant 1 : index
    %c0_118 = arith.constant 0 : index
    %114 = vector.load %arg13[%c1_117, %c0_118] : memref<160x128xf32, #tpu.memory_space<vmem>>, vector<128x128xf32>
    %c1_119 = arith.constant 1 : index
    %c0_120 = arith.constant 0 : index
    %c0_121 = arith.constant 0 : index
    %115 = vector.load %arg5[%c1_119, %c0_120, %c0_121] : memref<9x128x128xf32, #tpu.memory_space<vmem>>, vector<1x128x128xf32>
    %116 = vector.shape_cast %115 : vector<1x128x128xf32> to vector<128x128xf32>
    %cst_122 = arith.constant dense<0.000000e+00> : vector<128x128xf32>
    %117 = tpu.matmul %114, %116, %cst_122 {dimension_numbers = #tpu.dot_dimension_numbers<[1], [0], [0], [1], [0, 0, 1, 1], [], []>} : vector<128x128xf32>, vector<128x128xf32>, vector<128x128xf32> -> vector<128x128xf32>
    %118 = arith.addf %113, %117 : vector<128x128xf32>
    %c2_123 = arith.constant 2 : index
    %c0_124 = arith.constant 0 : index
    %119 = vector.load %arg13[%c2_123, %c0_124] : memref<160x128xf32, #tpu.memory_space<vmem>>, vector<128x128xf32>
    %c2_125 = arith.constant 2 : index
    %c0_126 = arith.constant 0 : index
    %c0_127 = arith.constant 0 : index
    %120 = vector.load %arg5[%c2_125, %c0_126, %c0_127] : memref<9x128x128xf32, #tpu.memory_space<vmem>>, vector<1x128x128xf32>
    %121 = vector.shape_cast %120 : vector<1x128x128xf32> to vector<128x128xf32>
    %cst_128 = arith.constant dense<0.000000e+00> : vector<128x128xf32>
    %122 = tpu.matmul %119, %121, %cst_128 {dimension_numbers = #tpu.dot_dimension_numbers<[1], [0], [0], [1], [0, 0, 1, 1], [], []>} : vector<128x128xf32>, vector<128x128xf32>, vector<128x128xf32> -> vector<128x128xf32>
    %123 = arith.addf %118, %122 : vector<128x128xf32>
    %c8_129 = arith.constant 8 : index
    %c0_130 = arith.constant 0 : index
    %124 = vector.load %arg13[%c8_129, %c0_130] : memref<160x128xf32, #tpu.memory_space<vmem>>, vector<128x128xf32>
    %c3_131 = arith.constant 3 : index
    %c0_132 = arith.constant 0 : index
    %c0_133 = arith.constant 0 : index
    %125 = vector.load %arg5[%c3_131, %c0_132, %c0_133] : memref<9x128x128xf32, #tpu.memory_space<vmem>>, vector<1x128x128xf32>
    %126 = vector.shape_cast %125 : vector<1x128x128xf32> to vector<128x128xf32>
    %cst_134 = arith.constant dense<0.000000e+00> : vector<128x128xf32>
    %127 = tpu.matmul %124, %126, %cst_134 {dimension_numbers = #tpu.dot_dimension_numbers<[1], [0], [0], [1], [0, 0, 1, 1], [], []>} : vector<128x128xf32>, vector<128x128xf32>, vector<128x128xf32> -> vector<128x128xf32>
    %128 = arith.addf %123, %127 : vector<128x128xf32>
    %c9_135 = arith.constant 9 : index
    %c0_136 = arith.constant 0 : index
    %129 = vector.load %arg13[%c9_135, %c0_136] : memref<160x128xf32, #tpu.memory_space<vmem>>, vector<128x128xf32>
    %c4_137 = arith.constant 4 : index
    %c0_138 = arith.constant 0 : index
    %c0_139 = arith.constant 0 : index
    %130 = vector.load %arg5[%c4_137, %c0_138, %c0_139] : memref<9x128x128xf32, #tpu.memory_space<vmem>>, vector<1x128x128xf32>
    %131 = vector.shape_cast %130 : vector<1x128x128xf32> to vector<128x128xf32>
    %cst_140 = arith.constant dense<0.000000e+00> : vector<128x128xf32>
    %132 = tpu.matmul %129, %131, %cst_140 {dimension_numbers = #tpu.dot_dimension_numbers<[1], [0], [0], [1], [0, 0, 1, 1], [], []>} : vector<128x128xf32>, vector<128x128xf32>, vector<128x128xf32> -> vector<128x128xf32>
    %133 = arith.addf %128, %132 : vector<128x128xf32>
    %c10_141 = arith.constant 10 : index
    %c0_142 = arith.constant 0 : index
    %134 = vector.load %arg13[%c10_141, %c0_142] : memref<160x128xf32, #tpu.memory_space<vmem>>, vector<128x128xf32>
    %c5_143 = arith.constant 5 : index
    %c0_144 = arith.constant 0 : index
    %c0_145 = arith.constant 0 : index
    %135 = vector.load %arg5[%c5_143, %c0_144, %c0_145] : memref<9x128x128xf32, #tpu.memory_space<vmem>>, vector<1x128x128xf32>
    %136 = vector.shape_cast %135 : vector<1x128x128xf32> to vector<128x128xf32>
    %cst_146 = arith.constant dense<0.000000e+00> : vector<128x128xf32>
    %137 = tpu.matmul %134, %136, %cst_146 {dimension_numbers = #tpu.dot_dimension_numbers<[1], [0], [0], [1], [0, 0, 1, 1], [], []>} : vector<128x128xf32>, vector<128x128xf32>, vector<128x128xf32> -> vector<128x128xf32>
    %138 = arith.addf %133, %137 : vector<128x128xf32>
    %c16_147 = arith.constant 16 : index
    %c0_148 = arith.constant 0 : index
    %139 = vector.load %arg13[%c16_147, %c0_148] : memref<160x128xf32, #tpu.memory_space<vmem>>, vector<128x128xf32>
    %c6_149 = arith.constant 6 : index
    %c0_150 = arith.constant 0 : index
    %c0_151 = arith.constant 0 : index
    %140 = vector.load %arg5[%c6_149, %c0_150, %c0_151] : memref<9x128x128xf32, #tpu.memory_space<vmem>>, vector<1x128x128xf32>
    %141 = vector.shape_cast %140 : vector<1x128x128xf32> to vector<128x128xf32>
    %cst_152 = arith.constant dense<0.000000e+00> : vector<128x128xf32>
    %142 = tpu.matmul %139, %141, %cst_152 {dimension_numbers = #tpu.dot_dimension_numbers<[1], [0], [0], [1], [0, 0, 1, 1], [], []>} : vector<128x128xf32>, vector<128x128xf32>, vector<128x128xf32> -> vector<128x128xf32>
    %143 = arith.addf %138, %142 : vector<128x128xf32>
    %c17_153 = arith.constant 17 : index
    %c0_154 = arith.constant 0 : index
    %144 = vector.load %arg13[%c17_153, %c0_154] : memref<160x128xf32, #tpu.memory_space<vmem>>, vector<128x128xf32>
    %c7_155 = arith.constant 7 : index
    %c0_156 = arith.constant 0 : index
    %c0_157 = arith.constant 0 : index
    %145 = vector.load %arg5[%c7_155, %c0_156, %c0_157] : memref<9x128x128xf32, #tpu.memory_space<vmem>>, vector<1x128x128xf32>
    %146 = vector.shape_cast %145 : vector<1x128x128xf32> to vector<128x128xf32>
    %cst_158 = arith.constant dense<0.000000e+00> : vector<128x128xf32>
    %147 = tpu.matmul %144, %146, %cst_158 {dimension_numbers = #tpu.dot_dimension_numbers<[1], [0], [0], [1], [0, 0, 1, 1], [], []>} : vector<128x128xf32>, vector<128x128xf32>, vector<128x128xf32> -> vector<128x128xf32>
    %148 = arith.addf %143, %147 : vector<128x128xf32>
    %c18_159 = arith.constant 18 : index
    %c0_160 = arith.constant 0 : index
    %149 = vector.load %arg13[%c18_159, %c0_160] : memref<160x128xf32, #tpu.memory_space<vmem>>, vector<128x128xf32>
    %c8_161 = arith.constant 8 : index
    %c0_162 = arith.constant 0 : index
    %c0_163 = arith.constant 0 : index
    %150 = vector.load %arg5[%c8_161, %c0_162, %c0_163] : memref<9x128x128xf32, #tpu.memory_space<vmem>>, vector<1x128x128xf32>
    %151 = vector.shape_cast %150 : vector<1x128x128xf32> to vector<128x128xf32>
    %cst_164 = arith.constant dense<0.000000e+00> : vector<128x128xf32>
    %152 = tpu.matmul %149, %151, %cst_164 {dimension_numbers = #tpu.dot_dimension_numbers<[1], [0], [0], [1], [0, 0, 1, 1], [], []>} : vector<128x128xf32>, vector<128x128xf32>, vector<128x128xf32> -> vector<128x128xf32>
    %153 = arith.addf %148, %152 : vector<128x128xf32>
    %c0_165 = arith.constant 0 : index
    %c0_166 = arith.constant 0 : index
    %154 = vector.load %arg6[%c0_165, %c0_166] : memref<1x128xf32, #tpu.memory_space<vmem>>, vector<1x128xf32>
    %155 = vector.broadcast %154 : vector<1x128xf32> to vector<128x128xf32>
    %156 = arith.addf %153, %155 : vector<128x128xf32>
    %cst_167 = arith.constant 0.000000e+00 : f32
    %157 = vector.broadcast %cst_167 : f32 to vector<128x128xf32>
    %158 = arith.maximumf %156, %157 : vector<128x128xf32>
    %c0_168 = arith.constant 0 : index
    %c0_169 = arith.constant 0 : index
    %159 = vector.load %arg12[%c0_168, %c0_169] : memref<160x128xf32, #tpu.memory_space<vmem>>, vector<128x128xf32>
    tpu.vector_store %arg12[%c0_168, %c0_169], %158 {strides = array<i32>} : memref<160x128xf32, #tpu.memory_space<vmem>>, vector<128x128xf32>,
    %c0_170 = arith.constant 0 : index
    %c0_171 = arith.constant 0 : index
    %160 = vector.load %arg12[%c0_170, %c0_171] : memref<160x128xf32, #tpu.memory_space<vmem>>, vector<1x128xf32>
    %c0_172 = arith.constant 0 : index
    %c0_173 = arith.constant 0 : index
    %161 = vector.load %arg14[%c0_172, %c0_173] : memref<2x512xf32, #tpu.memory_space<vmem>>, vector<1x128xf32>
    tpu.vector_store %arg14[%c0_172, %c0_173], %160 {strides = array<i32>} : memref<2x512xf32, #tpu.memory_space<vmem>>, vector<1x128xf32>,
    %c1_174 = arith.constant 1 : index
    %c0_175 = arith.constant 0 : index
    %162 = vector.load %arg12[%c1_174, %c0_175] : memref<160x128xf32, #tpu.memory_space<vmem>>, vector<1x128xf32>
    %c0_176 = arith.constant 0 : index
    %c128_177 = arith.constant 128 : index
    %163 = vector.load %arg14[%c0_176, %c128_177] : memref<2x512xf32, #tpu.memory_space<vmem>>, vector<1x128xf32>
    tpu.vector_store %arg14[%c0_176, %c128_177], %162 {strides = array<i32>} : memref<2x512xf32, #tpu.memory_space<vmem>>, vector<1x128xf32>,
    %c8_178 = arith.constant 8 : index
    %c0_179 = arith.constant 0 : index
    %164 = vector.load %arg12[%c8_178, %c0_179] : memref<160x128xf32, #tpu.memory_space<vmem>>, vector<1x128xf32>
    %c0_180 = arith.constant 0 : index
    %c256 = arith.constant 256 : index
    %165 = vector.load %arg14[%c0_180, %c256] : memref<2x512xf32, #tpu.memory_space<vmem>>, vector<1x128xf32>
    tpu.vector_store %arg14[%c0_180, %c256], %164 {strides = array<i32>} : memref<2x512xf32, #tpu.memory_space<vmem>>, vector<1x128xf32>,
    %c9_181 = arith.constant 9 : index
    %c0_182 = arith.constant 0 : index
    %166 = vector.load %arg12[%c9_181, %c0_182] : memref<160x128xf32, #tpu.memory_space<vmem>>, vector<1x128xf32>
    %c0_183 = arith.constant 0 : index
    %c384 = arith.constant 384 : index
    %167 = vector.load %arg14[%c0_183, %c384] : memref<2x512xf32, #tpu.memory_space<vmem>>, vector<1x128xf32>
    tpu.vector_store %arg14[%c0_183, %c384], %166 {strides = array<i32>} : memref<2x512xf32, #tpu.memory_space<vmem>>, vector<1x128xf32>,
    %c64 = arith.constant 64 : index
    %c0_184 = arith.constant 0 : index
    %168 = vector.load %arg12[%c64, %c0_184] : memref<160x128xf32, #tpu.memory_space<vmem>>, vector<1x128xf32>
    %c1_185 = arith.constant 1 : index
    %c0_186 = arith.constant 0 : index
    %169 = vector.load %arg14[%c1_185, %c0_186] : memref<2x512xf32, #tpu.memory_space<vmem>>, vector<1x128xf32>
    tpu.vector_store %arg14[%c1_185, %c0_186], %168 {strides = array<i32>} : memref<2x512xf32, #tpu.memory_space<vmem>>, vector<1x128xf32>,
    %c65 = arith.constant 65 : index
    %c0_187 = arith.constant 0 : index
    %170 = vector.load %arg12[%c65, %c0_187] : memref<160x128xf32, #tpu.memory_space<vmem>>, vector<1x128xf32>
    %c1_188 = arith.constant 1 : index
    %c128_189 = arith.constant 128 : index
    %171 = vector.load %arg14[%c1_188, %c128_189] : memref<2x512xf32, #tpu.memory_space<vmem>>, vector<1x128xf32>
    tpu.vector_store %arg14[%c1_188, %c128_189], %170 {strides = array<i32>} : memref<2x512xf32, #tpu.memory_space<vmem>>, vector<1x128xf32>,
    %c72 = arith.constant 72 : index
    %c0_190 = arith.constant 0 : index
    %172 = vector.load %arg12[%c72, %c0_190] : memref<160x128xf32, #tpu.memory_space<vmem>>, vector<1x128xf32>
    %c1_191 = arith.constant 1 : index
    %c256_192 = arith.constant 256 : index
    %173 = vector.load %arg14[%c1_191, %c256_192] : memref<2x512xf32, #tpu.memory_space<vmem>>, vector<1x128xf32>
    tpu.vector_store %arg14[%c1_191, %c256_192], %172 {strides = array<i32>} : memref<2x512xf32, #tpu.memory_space<vmem>>, vector<1x128xf32>,
    %c73 = arith.constant 73 : index
    %c0_193 = arith.constant 0 : index
    %174 = vector.load %arg12[%c73, %c0_193] : memref<160x128xf32, #tpu.memory_space<vmem>>, vector<1x128xf32>
    %c1_194 = arith.constant 1 : index
    %c384_195 = arith.constant 384 : index
    %175 = vector.load %arg14[%c1_194, %c384_195] : memref<2x512xf32, #tpu.memory_space<vmem>>, vector<1x128xf32>
    tpu.vector_store %arg14[%c1_194, %c384_195], %174 {strides = array<i32>} : memref<2x512xf32, #tpu.memory_space<vmem>>, vector<1x128xf32>,
    %c0_196 = arith.constant 0 : index
    %c0_197 = arith.constant 0 : index
    %176 = vector.load %arg14[%c0_196, %c0_197] : memref<2x512xf32, #tpu.memory_space<vmem>>, vector<2x512xf32>
    %c0_198 = arith.constant 0 : index
    %c0_199 = arith.constant 0 : index
    %177 = vector.load %arg7[%c0_198, %c0_199] : memref<512x128xf32, #tpu.memory_space<vmem>>, vector<512x128xf32>
    %cst_200 = arith.constant dense<0.000000e+00> : vector<2x128xf32>
    %178 = tpu.matmul %176, %177, %cst_200 {dimension_numbers = #tpu.dot_dimension_numbers<[1], [0], [0], [1], [0, 0, 1, 1], [], []>} : vector<2x512xf32>, vector<512x128xf32>, vector<2x128xf32> -> vector<2x128xf32>
    %c0_201 = arith.constant 0 : index
    %c0_202 = arith.constant 0 : index
    %179 = vector.load %arg8[%c0_201, %c0_202] : memref<1x128xf32, #tpu.memory_space<vmem>>, vector<1x128xf32>
    %180 = vector.broadcast %179 : vector<1x128xf32> to vector<2x128xf32>
    %181 = arith.addf %178, %180 : vector<2x128xf32>
    %cst_203 = arith.constant 0.000000e+00 : f32
    %182 = vector.broadcast %cst_203 : f32 to vector<2x128xf32>
    %183 = arith.maximumf %181, %182 : vector<2x128xf32>
    %c0_204 = arith.constant 0 : index
    %c0_205 = arith.constant 0 : index
    %184 = vector.load %arg9[%c0_204, %c0_205] : memref<128x128xf32, #tpu.memory_space<vmem>>, vector<128x128xf32>
    %cst_206 = arith.constant dense<0.000000e+00> : vector<2x128xf32>
    %185 = tpu.matmul %183, %184, %cst_206 {dimension_numbers = #tpu.dot_dimension_numbers<[1], [0], [0], [1], [0, 0, 1, 1], [], []>} : vector<2x128xf32>, vector<128x128xf32>, vector<2x128xf32> -> vector<2x128xf32>
    %c0_207 = arith.constant 0 : index
    %c0_208 = arith.constant 0 : index
    %186 = vector.load %arg10[%c0_207, %c0_208] : memref<1x128xf32, #tpu.memory_space<vmem>>, vector<1x128xf32>
    %187 = vector.broadcast %186 : vector<1x128xf32> to vector<2x128xf32>
    %188 = arith.addf %185, %187 : vector<2x128xf32>
    %c0_209 = arith.constant 0 : index
    %c0_210 = arith.constant 0 : index
    %189 = vector.load %arg11[%c0_209, %c0_210] : memref<2x128xf32, #tpu.memory_space<vmem>>, vector<2x128xf32>
    tpu.vector_store %arg11[%c0_209, %c0_210], %188 {strides = array<i32>} : memref<2x128xf32, #tpu.memory_space<vmem>>, vector<2x128xf32>,
    return
  }
}

</mosaic_0001>

<bundles_post_ra>
// kernel: convdqn_forward.1
= control target key start
LH: loop header
LB: loop body
LE: loop exit
PB: predicated region body
PF: predicated region fallthrough
CT: control target
= control target key end

     0   :  { %16 = vsyncpa [#allocation6], 0  ;;  %s10940_s0 = inlined_call_operand.vmem [shape: f32[160,128], index: 0, kind: input, shape index: {}]   ;;  %s10941_s1 = inlined_call_operand.hbm [shape: f32[9,128,128], index: 1, kind: input, shape index: {}]   ;;  %s10942_s2 = inlined_call_operand.vmem [shape: f32[1,128], index: 2, kind: input, shape index: {}]   ;;  %s10943_s3 = inlined_call_operand.hbm [shape: f32[9,128,128], index: 3, kind: input, shape index: {}]   ;;  %s10944_s4 = inlined_call_operand.vmem [shape: f32[1,128], index: 4, kind: input, shape index: {}]   ;;  %s10945_s5 = inlined_call_operand.hbm [shape: f32[9,128,128], index: 5, kind: input, shape index: {}]   ;;  %s10946_s6 = inlined_call_operand.vmem [shape: f32[1,128], index: 6, kind: input, shape index: {}]   ;;  %s10947_s7 = inlined_call_operand.hbm [shape: f32[512,128], index: 7, kind: input, shape index: {}]   ;;  %s10948_s8 = inlined_call_operand.vmem [shape: f32[1,128], index: 8, kind: input, shape index: {}]   ;;  %s10949_s9 = inlined_call_operand.vmem [shape: f32[128,128], index: 9, kind: input, shape index: {}]   ;;  %s10950_s10 = inlined_call_operand.vmem [shape: f32[1,128], index: 10, kind: input, shape index: {}]   ;;  %s10951_s11 = inlined_call_operand.hbm [shape: f32[2,128], index: 11, kind: output, shape index: {}]  }
   0x1   :  { %17 = vsyncpa [#allocation9], 0 }
   0x2   :  { %18 = vsyncpa [#allocation12], 0 }
   0x3   :  { %19 = vsyncpa [#allocation7], 0  ;;  %s9739_s17 = smov [#allocation8]   ;;  %s9740_s19 = smov [#allocation5]  }
   0x4   :  { %s41_s18 = sshll.u32 %s9739_s17, 4  ;;  %s27_s20 = sshll.u32 %s9740_s19, 4  ;;  %s42_s18 = int_to_ptr.vmem [resolvable:$true] %s41_s18  ;;  %s9810_s20 = int_to_ptr.vmem [resolvable:$true] %s27_s20 }
   0x5   :  { %s9621_s23 = scalar_lea.hbm %s10943_s3, 18432 }
   0x6   :  { %p9622_p0 = scmp.ne.s32.totalorder %s10943_s3, %s9621_s23  ;;  %p9625_p1 = scmp.lt.u32.totalorder %s9621_s23, %s10943_s3 }
   0x8   :  { %p9627_p2 = pnand %p9625_p1, %p9622_p0 }
   0xa   :  { %9630 = shalt.err (!%p9627_p2)
}
   0xb   :  { %s9631_s28 = scalar_lea.vmem %s42_s18, 18432  ;;  %p9636_p4 = scmp.lt.s32.totalorder %s42_s18, %s42_s18 }
   0xc   :  { %p9632_p3 = scmp.ne.s32.totalorder %s42_s18, %s9631_s28  ;;  %p9637_p5 = scmp.lt.s32.totalorder %s9631_s28, %s9631_s28 }
   0xe   :  { %p9638_p6 = por %p9637_p5, %p9636_p4 }
  0x10   :  { %p9639_p7 = pnand %p9638_p6, %p9632_p3 }
  0x12   :  { %9642 = shalt.err (!%p9639_p7)
}
  0x13   :  { %s9741_s29 = smov 128   ;;  %s9742_s30 = smov 8  }
  0x14   :  { %47 = dma.hbm_to_vmem [thread:$0]  %s10943_s3, 18432, %s42_s18, [#allocation9], %s9741_s29, %s9741_s29, %s9742_s30  }
  0x15   :  { %s9643_s16 = scalar_lea.hbm %s10941_s1, 18432 }
  0x16   :  { %p9644_p8 = scmp.ne.s32.totalorder %s10941_s1, %s9643_s16  ;;  %p9647_p9 = scmp.lt.u32.totalorder %s9643_s16, %s10941_s1 }
  0x18   :  { %p9649_p10 = pnand %p9647_p9, %p9644_p8 }
  0x1a   :  { %9652 = shalt.err (!%p9649_p10)
}
  0x1b   :  { %s9653_s23 = scalar_lea.vmem %s9810_s20, 18432  ;;  %p9658_p12 = scmp.lt.s32.totalorder %s9810_s20, %s9810_s20 }
  0x1c   :  { %p9654_p11 = scmp.ne.s32.totalorder %s9810_s20, %s9653_s23  ;;  %p9659_p13 = scmp.lt.s32.totalorder %s9653_s23, %s9653_s23 }
  0x1e   :  { %p9660_p0 = por %p9659_p13, %p9658_p12 }
  0x20   :  { %p9661_p1 = pnand %p9660_p0, %p9654_p11 }
  0x22   :  { %9664 = shalt.err (!%p9661_p1)
}
  0x23   :  { %33 = dma.hbm_to_vmem [thread:$0]  %s10941_s1, 18432, %s9810_s20, [#allocation6], %s9741_s29, %s9741_s29, %s9742_s30  }
  0x24   :  { %s9743_s24 = smov [#allocation10]   ;;  %s9744_s26 = smov [#allocation11]  }
  0x25   :  { %s55_s25 = sshll.u32 %s9743_s24, 4  ;;  %s69_s27 = sshll.u32 %s9744_s26, 4  ;;  %s56_s25 = int_to_ptr.vmem [resolvable:$true] %s55_s25  ;;  %s9847_s27 = int_to_ptr.vmem [resolvable:$true] %s69_s27 }
  0x26   :  { %s9665_s13 = scalar_lea.hbm %s10945_s5, 18432 }
  0x27   :  { %p9666_p2 = scmp.ne.s32.totalorder %s10945_s5, %s9665_s13  ;;  %p9669_p3 = scmp.lt.u32.totalorder %s9665_s13, %s10945_s5 }
  0x29   :  { %p9671_p4 = pnand %p9669_p3, %p9666_p2 }
  0x2b   :  { %9674 = shalt.err (!%p9671_p4)
}
  0x2c   :  { %s9675_s1 = scalar_lea.vmem %s56_s25, 18432  ;;  %p9680_p6 = scmp.lt.s32.totalorder %s56_s25, %s56_s25 }
  0x2d   :  { %p9676_p5 = scmp.ne.s32.totalorder %s56_s25, %s9675_s1  ;;  %p9681_p7 = scmp.lt.s32.totalorder %s9675_s1, %s9675_s1 }
  0x2f   :  { %p9682_p8 = por %p9681_p7, %p9680_p6 }
  0x31   :  { %p9683_p9 = pnand %p9682_p8, %p9676_p5 }
  0x33   :  { %9686 = shalt.err (!%p9683_p9)
}
  0x34   :  { %61 = dma.hbm_to_vmem [thread:$0]  %s10945_s5, 18432, %s56_s25, [#allocation9], %s9741_s29, %s9741_s29, %s9742_s30  }
  0x35   :  { %s9687_s23 = scalar_lea.hbm %s10947_s7, 8192 }
  0x36   :  { %p9688_p10 = scmp.ne.s32.totalorder %s10947_s7, %s9687_s23  ;;  %p9691_p11 = scmp.lt.u32.totalorder %s9687_s23, %s10947_s7 }
  0x38   :  { %p9693_p12 = pnand %p9691_p11, %p9688_p10 }
  0x3a   :  { %9696 = shalt.err (!%p9693_p12)
}
  0x3b   :  { %s9697_s28 = scalar_lea.vmem %s9847_s27, 8192  ;;  %p9702_p0 = scmp.lt.s32.totalorder %s9847_s27, %s9847_s27 }
  0x3c   :  { %p9698_p13 = scmp.ne.s32.totalorder %s9847_s27, %s9697_s28  ;;  %p9703_p1 = scmp.lt.s32.totalorder %s9697_s28, %s9697_s28 }
  0x3e   :  { %p9704_p2 = por %p9703_p1, %p9702_p0 }
  0x40   :  { %p9705_p3 = pnand %p9704_p2, %p9698_p13 }
  0x42   :  { %9708 = shalt.err (!%p9705_p3)
}
  0x43   :  { %75 = dma.hbm_to_vmem [thread:$0]  %s10947_s7, 8192, %s9847_s27, [#allocation12], %s9741_s29, %s9741_s29, %s9742_s30  }
  0x44   :  { %9731 = dma.done.wait [#allocation6], 18432  }
  0x45   :  { %9732 = vsyncadd [#allocation6], 4294948864 }
  0x46   :  { %9733 = dma.done.wait [#allocation9], 36864  }
  0x47   :  { %9734 = vsyncadd [#allocation9], 4294930432 }
  0x48   :  { %9735 = dma.done.wait [#allocation12], 8192  }
  0x49   :  { %9736 = vsyncadd [#allocation12], 4294959104  ;;  %v660_v0 = vld [vmem:[#allocation5 + $0x180] sm:$0xff]  ;;  %v661_v1 = vld [vmem:[#allocation5 + $0x188] sm:$0xff]  ;;  %vm9748_vm0 = vmmov 0   ;;  %s9749_s30 = smov [#allocation13]  }
  0x4a   :  { %v662_v2 = vld [vmem:[#allocation5 + $0x190] sm:$0xff]  ;;  %v8367_v3 = vpack.c.bf16 %v661_v1, %v660_v0  ;;  %v663_v4 = vld [vmem:[#allocation5 + $0x198] sm:$0xff]  ;;  %v664_v6 = vld [vmem:[#allocation5 + $0x1a0] sm:$0xff]  ;;  %s5757_s27 = sshll.u32 %s9749_s30, 4  ;;  %s5758_s27 = int_to_ptr.vmem [resolvable:$true] %s5757_s27 }
  0x4b   :  { %v8371_v5 = vpack.c.bf16 %v663_v4, %v662_v2  ;;  %v665_v7 = vld [vmem:[#allocation5 + $0x1a8] sm:$0xff]  ;;  %v9887_v9 = vld [vmem:[%s10940_s0 + $0x8] sm:$0xff]  ;;  %v666_v11 = vld [vmem:[#allocation5 + $0x1b0] sm:$0xff]  ;;  %s9709_s13 = scalar_lea.vmem %s5758_s27, 32  ;;  %p9714_p5 = scmp.lt.s32.totalorder %s5758_s27, %s5758_s27 }
  0x4c   :  { %8368 = vmatprep.subr.bf16.mxu0 %v8367_v3  ;;  %v8375_v8 = vpack.c.bf16 %v665_v7, %v664_v6  ;;  %v143_v10 = vld [vmem:[#allocation5 + $0x80] sm:$0xff]  ;;  %v667_v12 = vld [vmem:[#allocation5 + $0x1b8] sm:$0xff]  ;;  %6924 = vmatprep.mubr.f32.mxu0 %v9887_v9  ;;  %v144_v13 = vld [vmem:[#allocation5 + $0x88] sm:$0xff]  ;;  %p9710_p4 = scmp.ne.s32.totalorder %s5758_s27, %s9709_s13  ;;  %p9715_p6 = scmp.lt.s32.totalorder %s9709_s13, %s9709_s13 }
  0x4d   :  { %8370 = vmatpush3.bf16.msra.mxu0 %v8367_v3  ;;  %v8271_v14 = vpack.c.bf16 %v144_v13, %v143_v10  ;;  %v145_v15 = vld [vmem:[#allocation5 + $0x90] sm:$0xff]  ;;  %v146_v16 = vld [vmem:[#allocation5 + $0x98] sm:$0xff]  ;;  %v8379_v17 = vpack.c.bf16 %v667_v12, %v666_v11  ;;  %v147_v19 = vld [vmem:[#allocation5 + $0xa0] sm:$0xff] }
  0x4e   :  { %8372 = vmatprep.subr.bf16.mxu0 %v8371_v5  ;;  %v8275_v18 = vpack.c.bf16 %v146_v16, %v145_v15  ;;  %v668_v20 = vld [vmem:[#allocation5 + $0x1c0] sm:$0xff]  ;;  %v669_v21 = vld [vmem:[#allocation5 + $0x1c8] sm:$0xff]  ;;  %v149_v24 = vld [vmem:[#allocation5 + $0xb0] sm:$0xff]  ;;  %p9716_p7 = por %p9715_p6, %p9714_p5 }
  0x4f   :  { %8272 = vmatprep.subr.bf16.mxu1 %v8271_v14  ;;  %v148_v22 = vld [vmem:[#allocation5 + $0xa8] sm:$0xff]  ;;  %v150_v25 = vld [vmem:[#allocation5 + $0xb8] sm:$0xff]  ;;  %v8383_v26 = vpack.c.bf16 %v669_v21, %v668_v20  ;;  %v670_v27 = vld [vmem:[#allocation5 + $0x1d0] sm:$0xff] }
  0x50   :  { %8274 = vmatpush3.bf16.msra.mxu1 %v8271_v14  ;;  %v8279_v23 = vpack.c.bf16 %v148_v22, %v147_v19  ;;  %v671_v28 = vld [vmem:[#allocation5 + $0x1d8] sm:$0xff]  ;;  %v8283_v29 = vpack.c.bf16 %v150_v25, %v149_v24  ;;  %v151_v30 = vld [vmem:[#allocation5 + $0xc0] sm:$0xff]  ;;  %v152_v31 = vld [vmem:[#allocation5 + $0xc8] sm:$0xff]  ;;  %p9717_p8 = pnand %p9716_p7, %p9710_p4 }
  0x51   :  { %8374 = vmatpush3.bf16.msra.mxu0 %v8371_v5  ;;  %8276 = vmatprep.subr.bf16.mxu1 %v8275_v18  ;;  %v8387_v32 = vpack.c.bf16 %v671_v28, %v670_v27  ;;  %v672_v33 = vld [vmem:[#allocation5 + $0x1e0] sm:$0xff]  ;;  %v673_v34 = vld [vmem:[#allocation5 + $0x1e8] sm:$0xff]  ;;  %v8287_v35 = vpack.c.bf16 %v152_v31, %v151_v30  ;;  %v153_v36 = vld [vmem:[#allocation5 + $0xd0] sm:$0xff] }
  0x52   :  { %8376 = vmatprep.subr.bf16.mxu0 %v8375_v8  ;;  %v154_v37 = vld [vmem:[#allocation5 + $0xd8] sm:$0xff]  ;;  %v8391_v38 = vpack.c.bf16 %v673_v34, %v672_v33  ;;  %v674_v40 = vld [vmem:[#allocation5 + $0x1f0] sm:$0xff]  ;;  %v155_v43 = vld [vmem:[#allocation5 + $0xe0] sm:$0xff] }
  0x53   :  { %v126_v39 = vld [vmem:[%s10940_s0 + $0x1] sm:$0xff]  ;;  %v8291_v42 = vpack.c.bf16 %v154_v37, %v153_v36  ;;  %v156_v44 = vld [vmem:[#allocation5 + $0xe8] sm:$0xff]  ;;  %v157_v49 = vld [vmem:[#allocation5 + $0xf0] sm:$0xff] }
  0x54   :  { %8278 = vmatpush3.bf16.msra.mxu1 %v8275_v18  ;;  %v675_v41 = vld [vmem:[#allocation5 + $0x1f8] sm:$0xff]  ;;  %6756 = vmatprep.mubr.f32.mxu1 %v126_v39  ;;  %v854_v46 = vld [vmem:[#allocation5 + $0x200] sm:$0xff]  ;;  %v855_v47 = vld [vmem:[#allocation5 + $0x208] sm:$0xff]  ;;  %v8295_v48 = vpack.c.bf16 %v156_v44, %v155_v43 }
  0x55   :  { %8378 = vmatpush3.bf16.msra.mxu0 %v8375_v8  ;;  %8280 = vmatprep.subr.bf16.mxu1 %v8279_v23  ;;  %v8395_v45 = vpack.c.bf16 %v675_v41, %v674_v40  ;;  %v158_v50 = vld [vmem:[#allocation5 + $0xf8] sm:$0xff]  ;;  %v8399_v51 = vpack.c.bf16 %v855_v47, %v854_v46  ;;  %v856_v52 = vld [vmem:[#allocation5 + $0x210] sm:$0xff]  ;;  %v9896_v55 = vld [vmem:[%s10940_s0 + $0x10] sm:$0xff] }
  0x56   :  { %8380 = vmatprep.subr.bf16.mxu0 %v8379_v17  ;;  %v857_v53 = vld [vmem:[#allocation5 + $0x218] sm:$0xff]  ;;  %v8299_v54 = vpack.c.bf16 %v158_v50, %v157_v49  ;;  %v110_v56 = vld [vmem:[#allocation5] sm:$0xff]  ;;  %v111_v57 = vld [vmem:[#allocation5 + $0x8] sm:$0xff] }
  0x57   :  { %v9901_v58 = vld [vmem:[%s10940_s0 + $0x18] sm:$0xff]  ;;  %v8403_v59 = vpack.c.bf16 %v857_v53, %v856_v52  ;;  %v858_v60 = vld [vmem:[#allocation5 + $0x220] sm:$0xff]  ;;  %v859_v61 = vld [vmem:[#allocation5 + $0x228] sm:$0xff]  ;;  %v8303_v62 = vpack.c.bf16 %v111_v57, %v110_v56 }
  0x58   :  { %8282 = vmatpush3.bf16.msra.mxu1 %v8279_v23  ;;  %v9908_v63 = vld [vmem:[%s10940_s0 + $0x20] sm:$0xff]  ;;  %v112_v0 = vld [vmem:[#allocation5 + $0x10] sm:$0xff]  ;;  %v9913_v2 = vld [vmem:[%s10940_s0 + $0x28] sm:$0xff]  ;;  %v8407_v3 = vpack.c.bf16 %v859_v61, %v858_v60 }
  0x59   :  { %8382 = vmatpush3.bf16.msra.mxu0 %v8379_v17  ;;  %8284 = vmatprep.subr.bf16.mxu1 %v8283_v29  ;;  %v113_v1 = vld [vmem:[#allocation5 + $0x18] sm:$0xff]  ;;  %v860_v4 = vld [vmem:[#allocation5 + $0x230] sm:$0xff]  ;;  %v9918_v6 = vld [vmem:[%s10940_s0 + $0x9] sm:$0xff] }
  0x5a   :  { %8384 = vmatprep.subr.bf16.mxu0 %v8383_v26  ;;  %v861_v5 = vld [vmem:[#allocation5 + $0x238] sm:$0xff]  ;;  %v8307_v7 = vpack.c.bf16 %v113_v1, %v112_v0  ;;  %v9925_v8 = vld [vmem:[%s10940_s0 + $0x30] sm:$0xff]  ;;  %v114_v10 = vld [vmem:[#allocation5 + $0x20] sm:$0xff] }
  0x5b   :  { %v115_v11 = vld [vmem:[#allocation5 + $0x28] sm:$0xff]  ;;  %v9930_v12 = vld [vmem:[%s10940_s0 + $0x38] sm:$0xff]  ;;  %v8411_v13 = vpack.c.bf16 %v861_v5, %v860_v4  ;;  %v862_v15 = vld [vmem:[#allocation5 + $0x240] sm:$0xff] }
  0x5c   :  { %8286 = vmatpush3.bf16.msra.mxu1 %v8283_v29  ;;  %v9936_v14 = vld [vmem:[%s10940_s0 + $0x11] sm:$0xff]  ;;  %v9942_v17 = vld [vmem:[%s10940_s0 + $0x19] sm:$0xff]  ;;  %v8311_v18 = vpack.c.bf16 %v115_v11, %v114_v10  ;;  %v9954_v22 = vld [vmem:[%s10940_s0 + $0x48] sm:$0xff] }
  0x5d   :  { %8386 = vmatpush3.bf16.msra.mxu0 %v8383_v26  ;;  %8288 = vmatprep.subr.bf16.mxu1 %v8287_v35  ;;  %v863_v16 = vld [vmem:[#allocation5 + $0x248] sm:$0xff]  ;;  %v9949_v19 = vld [vmem:[%s10940_s0 + $0x40] sm:$0xff]  ;;  %v116_v20 = vld [vmem:[#allocation5 + $0x30] sm:$0xff] }
  0x5e   :  { %8388 = vmatprep.subr.bf16.mxu0 %v8387_v32  ;;  %v117_v21 = vld [vmem:[#allocation5 + $0x38] sm:$0xff]  ;;  %v8415_v23 = vpack.c.bf16 %v863_v16, %v862_v15  ;;  %v864_v25 = vld [vmem:[#allocation5 + $0x250] sm:$0xff]  ;;  %v9966_v27 = vld [vmem:[%s10940_s0 + $0x29] sm:$0xff] }
  0x5f   :  { %v9960_v24 = vld [vmem:[%s10940_s0 + $0x21] sm:$0xff]  ;;  %v8315_v28 = vpack.c.bf16 %v117_v21, %v116_v20  ;;  %v9973_v29 = vld [vmem:[%s10940_s0 + $0x50] sm:$0xff]  ;;  %v9990_v37 = vld [vmem:[%s10940_s0 + $0x39] sm:$0xff] }
  0x60   :  { %8290 = vmatpush3.bf16.msra.mxu1 %v8287_v35  ;;  %v865_v26 = vld [vmem:[#allocation5 + $0x258] sm:$0xff]  ;;  %v118_v30 = vld [vmem:[#allocation5 + $0x40] sm:$0xff]  ;;  %v119_v31 = vld [vmem:[#allocation5 + $0x48] sm:$0xff] }
  0x61   :  { %8390 = vmatpush3.bf16.msra.mxu0 %v8387_v32  ;;  %8292 = vmatprep.subr.bf16.mxu1 %v8291_v42  ;;  %v9978_v32 = vld [vmem:[%s10940_s0 + $0x58] sm:$0xff]  ;;  %v8419_v33 = vpack.c.bf16 %v865_v26, %v864_v25  ;;  %v866_v35 = vld [vmem:[#allocation5 + $0x260] sm:$0xff]  ;;  %v867_v36 = vld [vmem:[#allocation5 + $0x268] sm:$0xff] }
  0x62   :  { %8392 = vmatprep.subr.bf16.mxu0 %v8391_v38  ;;  %v9984_v34 = vld [vmem:[%s10940_s0 + $0x31] sm:$0xff]  ;;  %v9997_v39 = vld [vmem:[%s10940_s0 + $0x60] sm:$0xff]  ;;  %v8423_v43 = vpack.c.bf16 %v867_v36, %v866_v35  ;;  %v10014_v47 = vld [vmem:[%s10940_s0 + $0x49] sm:$0xff] }
  0x63   :  { %v120_v40 = vld [vmem:[#allocation5 + $0x50] sm:$0xff]  ;;  %v121_v41 = vld [vmem:[#allocation5 + $0x58] sm:$0xff]  ;;  %v10021_v49 = vld [vmem:[%s10940_s0 + $0x70] sm:$0xff] }
  0x64   :  { %8294 = vmatpush3.bf16.msra.mxu1 %v8291_v42  ;;  %v10002_v42 = vld [vmem:[%s10940_s0 + $0x68] sm:$0xff]  ;;  %v869_v46 = vld [vmem:[#allocation5 + $0x278] sm:$0xff]  ;;  %v10026_v52 = vld [vmem:[%s10940_s0 + $0x78] sm:$0xff] }
  0x65   :  { %8394 = vmatpush3.bf16.msra.mxu0 %v8391_v38  ;;  %8296 = vmatprep.subr.bf16.mxu1 %v8295_v48  ;;  %v8319_v38 = vpack.c.bf16 %v119_v31, %v118_v30  ;;  %v10008_v44 = vld [vmem:[%s10940_s0 + $0x41] sm:$0xff]  ;;  %v1049_v57 = vld [vmem:[#allocation5 + $0x288] sm:$0xff]  ;;  %v1050_v4 = vld [vmem:[#allocation5 + $0x290] sm:$0xff] }
  0x66   :  { %8396 = vmatprep.subr.bf16.mxu0 %v8395_v45  ;;  %v122_v50 = vld [vmem:[#allocation5 + $0x60] sm:$0xff]  ;;  %v10045_v61 = vld [vmem:[%s10940_s0 + $0x80] sm:$0xff]  ;;  %v10065_v16 = vld [vmem:[%s10940_s0 + $0x71] sm:$0xff] }
  0x67   :  { %v1048_v56 = vld [vmem:[#allocation5 + $0x280] sm:$0xff]  ;;  %v125_v0 = vld [vmem:[#allocation5 + $0x78] sm:$0xff]  ;;  %v1053_v20 = vld [vmem:[#allocation5 + $0x2a8] sm:$0xff] }
  0x68   :  { %8298 = vmatpush3.bf16.msra.mxu1 %v8295_v48  ;;  %v8323_v48 = vpack.c.bf16 %v121_v41, %v120_v40  ;;  %v8431_v1 = vpack.c.bf16 %v1049_v57, %v1048_v56  ;;  %v1051_v5 = vld [vmem:[#allocation5 + $0x298] sm:$0xff]  ;;  %v466_v11 = vld [vmem:[#allocation5 + $0x100] sm:$0xff]  ;;  %v468_v25 = vld [vmem:[#allocation5 + $0x110] sm:$0xff] }
  0x69   :  { %8398 = vmatpush3.bf16.msra.mxu0 %v8395_v45  ;;  %8300 = vmatprep.subr.bf16.mxu1 %v8299_v54  ;;  %v868_v45 = vld [vmem:[#allocation5 + $0x270] sm:$0xff]  ;;  %v8435_v15 = vpack.c.bf16 %v1051_v5, %v1050_v4  ;;  %v94_v21 = vld [vmem:[%s10940_s0] sm:$0xff]  ;;  %v470_v35 = vld [vmem:[#allocation5 + $0x120] sm:$0xff] }
  0x6a   :  { %8400 = vmatprep.subr.bf16.mxu0 %v8399_v51  ;;  %v8427_v53 = vpack.c.bf16 %v869_v46, %v868_v45  ;;  %v469_v26 = vld [vmem:[#allocation5 + $0x118] sm:$0xff]  ;;  %v1054_v30 = vld [vmem:[#allocation5 + $0x2b0] sm:$0xff]  ;;  %v471_v36 = vld [vmem:[#allocation5 + $0x128] sm:$0xff] }
  0x6b   :  { %v1055_v31 = vld [vmem:[#allocation5 + $0x2b8] sm:$0xff]  ;;  %v1056_v40 = vld [vmem:[#allocation5 + $0x2c0] sm:$0xff]  ;;  %v1057_v41 = vld [vmem:[#allocation5 + $0x2c8] sm:$0xff] }
  0x6c   :  { %6925 = vmatmul.mubr.f32.vlgmr.msra.gmra.mrb[0].mxu0 %v9896_v55  ;;  %8302 = vmatpush3.bf16.msra.mxu1 %v8299_v54  ;;  %v10032_v54 = vld [vmem:[%s10940_s0 + $0x51] sm:$0xff]  ;;  %v473_v46 = vld [vmem:[#allocation5 + $0x138] sm:$0xff] }
  0x6d   :  { %8402 = vmatpush3.bf16.msra.mxu0 %v8399_v51  ;;  %6927 = vmatprep.mubr.f32.mxu0 %v9901_v58  ;;  %v123_v51 = vld [vmem:[#allocation5 + $0x68] sm:$0xff]  ;;  %v472_v45 = vld [vmem:[#allocation5 + $0x130] sm:$0xff]  ;;  %v477_v4 = vld [vmem:[#allocation5 + $0x158] sm:$0xff] }
  0x6e   :  { %8404 = vmatprep.subr.bf16.mxu0 %v8403_v59  ;;  %8304 = vmatprep.subr.bf16.mxu1 %v8303_v62  ;;  %v8327_v60 = vpack.c.bf16 %v123_v51, %v122_v50  ;;  %v1058_v50 = vld [vmem:[#allocation5 + $0x2d0] sm:$0xff]  ;;  %v8347_v51 = vpack.c.bf16 %v473_v46, %v472_v45  ;;  %v475_v56 = vld [vmem:[#allocation5 + $0x148] sm:$0xff]  ;;  %v1246_v45 = vld [vmem:[#allocation5 + $0x320] sm:$0xff] }
  0x6f   :  { %6757 = vmatmul.mubr.f32.vlgmr.msra.gmra.mrb[0].mxu1 %v9918_v6  ;;  %v1247_v46 = vld [vmem:[#allocation5 + $0x328] sm:$0xff] }
  0x70   :  { %6928 = vmatmul.mubr.f32.gmra.mrb[2].mxu0 %v9908_v63  ;;  %8306 = vmatpush3.bf16.msra.mxu1 %v8303_v62  ;;  %v124_v62 = vld [vmem:[#allocation5 + $0x70] sm:$0xff] }
  0x71   :  { %8406 = vmatpush3.bf16.msra.mxu0 %v8403_v59  ;;  %6930 = vmatprep.mubr.f32.mxu0 %v9913_v2  ;;  %v10038_v59 = vld [vmem:[%s10940_s0 + $0x59] sm:$0xff]  ;;  %v8331_v10 = vpack.c.bf16 %v125_v0, %v124_v62  ;;  %v1061_v62 = vld [vmem:[#allocation5 + $0x2e8] sm:$0xff] }
  0x72   :  { %8408 = vmatprep.subr.bf16.mxu0 %v8407_v3  ;;  %6759 = vmatprep.mubr.f32.mxu1 %v9936_v14 }
  0x73   :  { %8308 = vmatprep.subr.bf16.mxu1 %v8307_v7  ;;  %6760 = vmatmul.mubr.f32.gmra.mrb[2].mxu1 %v9942_v17 }
  0x74   :  { %6931 = vmatmul.mubr.f32.gmra.mrb[4].mxu0 %v9925_v8  ;;  %8310 = vmatpush3.bf16.msra.mxu1 %v8307_v7  ;;  %v10057_v7 = vld [vmem:[%s10940_s0 + $0x69] sm:$0xff] }
  0x75   :  { %8410 = vmatpush3.bf16.msra.mxu0 %v8407_v3  ;;  %6933 = vmatprep.mubr.f32.mxu0 %v9930_v12  ;;  %v10051_v3 = vld [vmem:[%s10940_s0 + $0x61] sm:$0xff] }
  0x76   :  { %8412 = vmatprep.subr.bf16.mxu0 %v8411_v13  ;;  %6762 = vmatprep.mubr.f32.mxu1 %v9960_v24 }
  0x77   :  { %8312 = vmatprep.subr.bf16.mxu1 %v8311_v18  ;;  %6763 = vmatmul.mubr.f32.gmra.mrb[4].mxu1 %v9966_v27 }
  0x78   :  { %6934 = vmatmul.mubr.f32.gmra.mrb[6].mxu0 %v9949_v19  ;;  %8314 = vmatpush3.bf16.msra.mxu1 %v8311_v18  ;;  %v1052_v18 = vld [vmem:[#allocation5 + $0x2a0] sm:$0xff] }
  0x79   :  { %8414 = vmatpush3.bf16.msra.mxu0 %v8411_v13  ;;  %6936 = vmatprep.mubr.f32.mxu0 %v9954_v22  ;;  %v467_v13 = vld [vmem:[#allocation5 + $0x108] sm:$0xff] }
  0x7a   :  { %8416 = vmatprep.subr.bf16.mxu0 %v8415_v23  ;;  %6765 = vmatprep.mubr.f32.mxu1 %v9984_v34 }
  0x7b   :  { %8316 = vmatprep.subr.bf16.mxu1 %v8315_v28  ;;  %6766 = vmatmul.mubr.f32.gmra.mrb[6].mxu1 %v9990_v37 }
  0x7c   :  { %6937 = vmatmul.mubr.f32.gmra.mrb[8].mxu0 %v9973_v29  ;;  %8318 = vmatpush3.bf16.msra.mxu1 %v8315_v28  ;;  %v8439_v28 = vpack.c.bf16 %v1053_v20, %v1052_v18  ;;  %v479_v18 = vld [vmem:[#allocation5 + $0x168] sm:$0xff] }
  0x7d   :  { %8418 = vmatpush3.bf16.msra.mxu0 %v8415_v23  ;;  %6939 = vmatprep.mubr.f32.mxu0 %v9978_v32  ;;  %v8335_v23 = vpack.c.bf16 %v467_v13, %v466_v11  ;;  %v1063_v11 = vld [vmem:[#allocation5 + $0x2f8] sm:$0xff] }
  0x7e   :  { %8420 = vmatprep.subr.bf16.mxu0 %v8419_v33  ;;  %6768 = vmatprep.mubr.f32.mxu1 %v10008_v44 }
  0x7f   :  { %8320 = vmatprep.subr.bf16.mxu1 %v8319_v38  ;;  %6769 = vmatmul.mubr.f32.gmra.mrb[8].mxu1 %v10014_v47 }
  0x80   :  { %6940 = vmatmul.mubr.f32.gmra.mrb[10].mxu0 %v9997_v39  ;;  %8322 = vmatpush3.bf16.msra.mxu1 %v8319_v38  ;;  %v8443_v38 = vpack.c.bf16 %v1055_v31, %v1054_v30  ;;  %v481_v30 = vld [vmem:[#allocation5 + $0x178] sm:$0xff]  ;;  %v1031_v31 = vld [vmem:[%s10940_s0 + $0xa] sm:$0xff] }
  0x81   :  { %8422 = vmatpush3.bf16.msra.mxu0 %v8419_v33  ;;  %6942 = vmatprep.mubr.f32.mxu0 %v10002_v42  ;;  %v8339_v33 = vpack.c.bf16 %v469_v26, %v468_v25  ;;  %v10104_v26 = vld [vmem:[%s10940_s0 + $0x81] sm:$0xff] }
  0x82   :  { %8424 = vmatprep.subr.bf16.mxu0 %v8423_v43  ;;  %6771 = vmatprep.mubr.f32.mxu1 %v10032_v54 }
  0x83   :  { %8324 = vmatprep.subr.bf16.mxu1 %v8323_v48  ;;  %6772 = vmatmul.mubr.f32.gmra.mrb[10].mxu1 %v10038_v59 }
  0x84   :  { %6943 = vmatmul.mubr.f32.gmra.mrb[12].mxu0 %v10021_v49  ;;  %8326 = vmatpush3.bf16.msra.mxu1 %v8323_v48  ;;  %v8447_v48 = vpack.c.bf16 %v1057_v41, %v1056_v40  ;;  %v10115_v40 = vld [vmem:[%s10940_s0 + $0x12] sm:$0xff]  ;;  %v10120_v41 = vld [vmem:[%s10940_s0 + $0x1a] sm:$0xff] }
  0x85   :  { %8426 = vmatpush3.bf16.msra.mxu0 %v8423_v43  ;;  %6945 = vmatprep.mubr.f32.mxu0 %v10026_v52  ;;  %v8343_v43 = vpack.c.bf16 %v471_v36, %v470_v35  ;;  %v1244_v35 = vld [vmem:[#allocation5 + $0x310] sm:$0xff]  ;;  %v1245_v36 = vld [vmem:[#allocation5 + $0x318] sm:$0xff] }
  0x86   :  { %8428 = vmatprep.subr.bf16.mxu0 %v8427_v53  ;;  %6774 = vmatprep.mubr.f32.mxu1 %v10051_v3 }
  0x87   :  { %8328 = vmatprep.subr.bf16.mxu1 %v8327_v60  ;;  %6775 = vmatmul.mubr.f32.gmra.mrb[12].mxu1 %v10057_v7 }
  0x88   :  { %6946 = vmatmul.mubr.f32.gmra.mrb[14].mxu0 %v10045_v61  ;;  %8330 = vmatpush3.bf16.msra.mxu1 %v8327_v60  ;;  %v1060_v60 = vld [vmem:[#allocation5 + $0x2e0] sm:$0xff] }
  0x89   :  { %8430 = vmatpush3.bf16.msra.mxu0 %v8427_v53  ;;  %6980 = vmatprep.mubr.f32.mxu0 %v9918_v6  ;;  %v10071_v6 = vld [vmem:[%s10940_s0 + $0x79] sm:$0xff]  ;;  %v474_v53 = vld [vmem:[#allocation5 + $0x140] sm:$0xff]  ;;  %v8455_v5 = vpack.c.bf16 %v1061_v62, %v1060_v60 }
  0x8a   :  { %8432 = vmatprep.subr.bf16.mxu0 %v8431_v1  ;;  %6777 = vmatprep.mubr.f32.mxu1 %v10065_v16  ;;  %v8351_v0 = vpack.c.bf16 %v475_v56, %v474_v53  ;;  %v1248_v53 = vld [vmem:[#allocation5 + $0x330] sm:$0xff]  ;;  %v1249_v56 = vld [vmem:[#allocation5 + $0x338] sm:$0xff] }
  0x8b   :  { %8332 = vmatprep.subr.bf16.mxu1 %v8331_v10  ;;  %6778 = vmatmul.mubr.f32.gmra.mrb[14].mxu1 %v10071_v6  ;;  %v10150_v60 = vld [vmem:[%s10940_s0 + $0x3a] sm:$0xff]  ;;  %v8475_v62 = vpack.c.bf16 %v1249_v56, %v1248_v53 }
  0x8c   :  { %6981 = vmatmul.mubr.f32.vlgmr.msra.gmra.mrb[0].mxu0 %v9936_v14  ;;  %8334 = vmatpush3.bf16.msra.mxu1 %v8331_v10  ;;  %v1062_v10 = vld [vmem:[#allocation5 + $0x2f0] sm:$0xff]  ;;  %v1439_v53 = vld [vmem:[#allocation5 + $0x398] sm:$0xff] }
  0x8d   :  { %8434 = vmatpush3.bf16.msra.mxu0 %v8431_v1  ;;  %6983 = vmatprep.mubr.f32.mxu0 %v9942_v17  ;;  %v476_v1 = vld [vmem:[#allocation5 + $0x150] sm:$0xff]  ;;  %v8459_v20 = vpack.c.bf16 %v1063_v11, %v1062_v10 }
  0x8e   :  { %8436 = vmatprep.subr.bf16.mxu0 %v8435_v15  ;;  %6812 = vmatprep.mubr.f32.mxu1 %v94_v21  ;;  %v8355_v13 = vpack.c.bf16 %v477_v4, %v476_v1  ;;  %v1242_v21 = vld [vmem:[#allocation5 + $0x300] sm:$0xff]  ;;  %v1251_v1 = vld [vmem:[#allocation5 + $0x348] sm:$0xff]  ;;  %v1252_v11 = vld [vmem:[#allocation5 + $0x350] sm:$0xff] }
  0x8f   :  { %8336 = vmatprep.subr.bf16.mxu1 %v8335_v23  ;;  %6813 = vmatmul.mubr.f32.vlgmr.msra.gmra.mrb[0].mxu1 %v9887_v9  ;;  %v1059_v9 = vld [vmem:[#allocation5 + $0x2d8] sm:$0xff] }
  0x90   :  { %6984 = vmatmul.mubr.f32.gmra.mrb[2].mxu0 %v9960_v24  ;;  %8338 = vmatpush3.bf16.msra.mxu1 %v8335_v23  ;;  %v8451_v57 = vpack.c.bf16 %v1059_v9, %v1058_v50  ;;  %v1243_v23 = vld [vmem:[#allocation5 + $0x308] sm:$0xff]  ;;  %v10132_v50 = vld [vmem:[%s10940_s0 + $0x22] sm:$0xff] }
  0x91   :  { %8438 = vmatpush3.bf16.msra.mxu0 %v8435_v15  ;;  %6986 = vmatprep.mubr.f32.mxu0 %v9966_v27  ;;  %v478_v15 = vld [vmem:[#allocation5 + $0x160] sm:$0xff] }
  0x92   :  { %8440 = vmatprep.subr.bf16.mxu0 %v8439_v28  ;;  %6815 = vmatprep.mubr.f32.mxu1 %v9896_v55  ;;  %v8359_v25 = vpack.c.bf16 %v479_v18, %v478_v15  ;;  %v10137_v9 = vld [vmem:[%s10940_s0 + $0x2a] sm:$0xff]  ;;  %v10158_v4 = vld [vmem:[%s10940_s0 + $0x42] sm:$0xff]  ;;  %v10172_v15 = vld [vmem:[%s10940_s0 + $0x52] sm:$0xff] }
  0x93   :  { %8340 = vmatprep.subr.bf16.mxu1 %v8339_v33  ;;  %6816 = vmatmul.mubr.f32.gmra.mrb[2].mxu1 %v9901_v58  ;;  %v10177_v18 = vld [vmem:[%s10940_s0 + $0x5a] sm:$0xff] }
  0x94   :  { %6987 = vmatmul.mubr.f32.gmra.mrb[4].mxu0 %v9984_v34  ;;  %8342 = vmatpush3.bf16.msra.mxu1 %v8339_v33  ;;  %v8463_v33 = vpack.c.bf16 %v1243_v23, %v1242_v21  ;;  %v1254_v21 = vld [vmem:[#allocation5 + $0x360] sm:$0xff]  ;;  %v1255_v23 = vld [vmem:[#allocation5 + $0x368] sm:$0xff] }
  0x95   :  { %8442 = vmatpush3.bf16.msra.mxu0 %v8439_v28  ;;  %6989 = vmatprep.mubr.f32.mxu0 %v9990_v37  ;;  %v480_v28 = vld [vmem:[#allocation5 + $0x170] sm:$0xff] }
  0x96   :  { %8444 = vmatprep.subr.bf16.mxu0 %v8443_v38  ;;  %6818 = vmatprep.mubr.f32.mxu1 %v9908_v63 }
  0x97   :  { %8344 = vmatprep.subr.bf16.mxu1 %v8343_v43  ;;  %6819 = vmatmul.mubr.f32.gmra.mrb[4].mxu1 %v9913_v2 }
  0x98   :  { %6990 = vmatmul.mubr.f32.gmra.mrb[6].mxu0 %v10008_v44  ;;  %8346 = vmatpush3.bf16.msra.mxu1 %v8343_v43  ;;  %v8467_v43 = vpack.c.bf16 %v1245_v36, %v1244_v35  ;;  %v10200_v35 = vld [vmem:[%s10940_s0 + $0x72] sm:$0xff]  ;;  %v10205_v36 = vld [vmem:[%s10940_s0 + $0x7a] sm:$0xff] }
  0x99   :  { %8446 = vmatpush3.bf16.msra.mxu0 %v8443_v38  ;;  %6992 = vmatprep.mubr.f32.mxu0 %v10014_v47  ;;  %v8363_v38 = vpack.c.bf16 %v481_v30, %v480_v28  ;;  %v10191_v28 = vld [vmem:[%s10940_s0 + $0x6a] sm:$0xff]  ;;  %v8487_v30 = vpack.c.bf16 %v1255_v23, %v1254_v21  ;;  %v1447_v21 = vld [vmem:[#allocation5 + $0x3d8] sm:$0xff] }
  0x9a   :  { %8448 = vmatprep.subr.bf16.mxu0 %v8447_v48  ;;  %6821 = vmatprep.mubr.f32.mxu1 %v9925_v8  ;;  %v1449_v23 = vld [vmem:[#allocation5 + $0x3e8] sm:$0xff] }
  0x9b   :  { %8348 = vmatprep.subr.bf16.mxu1 %v8347_v51  ;;  %6822 = vmatmul.mubr.f32.gmra.mrb[6].mxu1 %v9930_v12 }
  0x9c   :  { %6993 = vmatmul.mubr.f32.gmra.mrb[8].mxu0 %v10032_v54  ;;  %8350 = vmatpush3.bf16.msra.mxu1 %v8347_v51  ;;  %v8471_v51 = vpack.c.bf16 %v1247_v46, %v1246_v45  ;;  %v1437_v45 = vld [vmem:[#allocation5 + $0x388] sm:$0xff]  ;;  %v10214_v46 = vld [vmem:[%s10940_s0 + $0x82] sm:$0xff] }
  0x9d   :  { %8450 = vmatpush3.bf16.msra.mxu0 %v8447_v48  ;;  %6995 = vmatprep.mubr.f32.mxu0 %v10038_v59  ;;  %v449_v48 = vld [vmem:[%s10940_s0 + $0x2] sm:$0xff] }
  0x9e   :  { %8452 = vmatprep.subr.bf16.mxu0 %v8451_v57  ;;  %6824 = vmatprep.mubr.f32.mxu1 %v9949_v19 }
  0x9f   :  { %8352 = vmatprep.subr.bf16.mxu1 %v8351_v0  ;;  %6825 = vmatmul.mubr.f32.gmra.mrb[8].mxu1 %v9954_v22 }
  0xa0   :  { %6996 = vmatmul.mubr.f32.gmra.mrb[10].mxu0 %v10051_v3  ;;  %8354 = vmatpush3.bf16.msra.mxu1 %v8351_v0  ;;  %v1250_v0 = vld [vmem:[#allocation5 + $0x340] sm:$0xff] }
  0xa1   :  { %8454 = vmatpush3.bf16.msra.mxu0 %v8451_v57  ;;  %6998 = vmatprep.mubr.f32.mxu0 %v10057_v7  ;;  %v10145_v57 = vld [vmem:[%s10940_s0 + $0x32] sm:$0xff]  ;;  %v8479_v10 = vpack.c.bf16 %v1251_v1, %v1250_v0 }
  0xa2   :  { %8456 = vmatprep.subr.bf16.mxu0 %v8455_v5  ;;  %6827 = vmatprep.mubr.f32.mxu1 %v9973_v29  ;;  %v1441_v0 = vld [vmem:[#allocation5 + $0x3a8] sm:$0xff] }
  0xa3   :  { %8356 = vmatprep.subr.bf16.mxu1 %v8355_v13  ;;  %6828 = vmatmul.mubr.f32.gmra.mrb[10].mxu1 %v9978_v32 }
  0xa4   :  { %6999 = vmatmul.mubr.f32.gmra.mrb[12].mxu0 %v10065_v16  ;;  %8358 = vmatpush3.bf16.msra.mxu1 %v8355_v13  ;;  %v1253_v13 = vld [vmem:[#allocation5 + $0x358] sm:$0xff] }
  0xa5   :  { %8458 = vmatpush3.bf16.msra.mxu0 %v8455_v5  ;;  %7001 = vmatprep.mubr.f32.mxu0 %v10071_v6  ;;  %v10163_v5 = vld [vmem:[%s10940_s0 + $0x4a] sm:$0xff] }
  0xa6   :  { %8460 = vmatprep.subr.bf16.mxu0 %v8459_v20  ;;  %6830 = vmatprep.mubr.f32.mxu1 %v9997_v39 }
  0xa7   :  { %8360 = vmatprep.subr.bf16.mxu1 %v8359_v25  ;;  %6831 = vmatmul.mubr.f32.gmra.mrb[12].mxu1 %v10002_v42 }
  0xa8   :  { %7002 = vmatmul.mubr.f32.gmra.mrb[14].mxu0 %v10104_v26  ;;  %8362 = vmatpush3.bf16.msra.mxu1 %v8359_v25  ;;  %v10186_v25 = vld [vmem:[%s10940_s0 + $0x62] sm:$0xff] }
  0xa9   :  { %8462 = vmatpush3.bf16.msra.mxu0 %v8459_v20  ;;  %7036 = vmatprep.mubr.f32.mxu0 %v1031_v31  ;;  %v8483_v20 = vpack.c.bf16 %v1253_v13, %v1252_v11  ;;  %v1443_v11 = vld [vmem:[#allocation5 + $0x3b8] sm:$0xff]  ;;  %v1444_v13 = vld [vmem:[#allocation5 + $0x3c0] sm:$0xff] }
  0xaa   :  { %8464 = vmatprep.subr.bf16.mxu0 %v8463_v33  ;;  %6833 = vmatprep.mubr.f32.mxu1 %v10021_v49 }
  0xab   :  { %8364 = vmatprep.subr.bf16.mxu1 %v8363_v38  ;;  %6834 = vmatmul.mubr.f32.gmra.mrb[14].mxu1 %v10026_v52 }
  0xac   :  { %7037 = vmatmul.mubr.f32.vlgmr.msra.gmra.mrb[0].mxu0 %v10115_v40  ;;  %8366 = vmatpush3.bf16.msra.mxu1 %v8363_v38 }
  0xad   :  { %8466 = vmatpush3.bf16.msra.mxu0 %v8463_v33  ;;  %7039 = vmatprep.mubr.f32.mxu0 %v10120_v41  ;;  %v1257_v33 = vld [vmem:[#allocation5 + $0x378] sm:$0xff] }
  0xae   :  { %8468 = vmatprep.subr.bf16.mxu0 %v8467_v43  ;;  %6868 = vmatprep.mubr.f32.mxu1 %v449_v48 }
  0xaf   :  { %6869 = vmatmul.mubr.f32.vlgmr.msra.gmra.mrb[0].mxu1 %v1031_v31  ;;  %v1256_v31 = vld [vmem:[#allocation5 + $0x370] sm:$0xff] }
  0xb0   :  { %7040 = vmatmul.mubr.f32.gmra.mrb[2].mxu0 %v10132_v50  ;;  %6871 = vmatprep.mubr.f32.mxu1 %v10115_v40  ;;  %v8491_v38 = vpack.c.bf16 %v1257_v33, %v1256_v31  ;;  %v1631_v31 = vld [vmem:[#allocation5 + $0x408] sm:$0xff]  ;;  %v1632_v33 = vld [vmem:[#allocation5 + $0x410] sm:$0xff] }
  0xb1   :  { %8470 = vmatpush3.bf16.msra.mxu0 %v8467_v43  ;;  %7042 = vmatprep.mubr.f32.mxu0 %v10137_v9  ;;  %v1436_v43 = vld [vmem:[#allocation5 + $0x380] sm:$0xff] }
  0xb2   :  { %8472 = vmatprep.subr.bf16.mxu0 %v8471_v51  ;;  %v8495_v48 = vpack.c.bf16 %v1437_v45, %v1436_v43  ;;  %v1635_v43 = vld [vmem:[#allocation5 + $0x428] sm:$0xff]  ;;  %v1637_v45 = vld [vmem:[#allocation5 + $0x438] sm:$0xff] }
  0xb3   :  { %6872 = vmatmul.mubr.f32.gmra.mrb[2].mxu1 %v10120_v41 }
  0xb4   :  { %7043 = vmatmul.mubr.f32.gmra.mrb[4].mxu0 %v10145_v57  ;;  %6874 = vmatprep.mubr.f32.mxu1 %v10132_v50 }
  0xb5   :  { %8474 = vmatpush3.bf16.msra.mxu0 %v8471_v51  ;;  %7045 = vmatprep.mubr.f32.mxu0 %v10150_v60  ;;  %v1438_v51 = vld [vmem:[#allocation5 + $0x390] sm:$0xff] }
  0xb6   :  { %8476 = vmatprep.subr.bf16.mxu0 %v8475_v62  ;;  %v8499_v56 = vpack.c.bf16 %v1439_v53, %v1438_v51  ;;  %v1639_v51 = vld [vmem:[#allocation5 + $0x448] sm:$0xff]  ;;  %v1641_v53 = vld [vmem:[#allocation5 + $0x458] sm:$0xff] }
  0xb7   :  { %6875 = vmatmul.mubr.f32.gmra.mrb[4].mxu1 %v10137_v9 }
  0xb8   :  { %7046 = vmatmul.mubr.f32.gmra.mrb[6].mxu0 %v10158_v4  ;;  %6877 = vmatprep.mubr.f32.mxu1 %v10145_v57 }
  0xb9   :  { %8478 = vmatpush3.bf16.msra.mxu0 %v8475_v62  ;;  %7048 = vmatprep.mubr.f32.mxu0 %v10163_v5  ;;  %v1440_v62 = vld [vmem:[#allocation5 + $0x3a0] sm:$0xff] }
  0xba   :  { %8480 = vmatprep.subr.bf16.mxu0 %v8479_v10  ;;  %v8503_v1 = vpack.c.bf16 %v1441_v0, %v1440_v62  ;;  %v1645_v62 = vld [vmem:[#allocation5 + $0x478] sm:$0xff] }
  0xbb   :  { %6878 = vmatmul.mubr.f32.gmra.mrb[6].mxu1 %v10150_v60 }
  0xbc   :  { %7049 = vmatmul.mubr.f32.gmra.mrb[8].mxu0 %v10172_v15  ;;  %6880 = vmatprep.mubr.f32.mxu1 %v10158_v4 }
  0xbd   :  { %8482 = vmatpush3.bf16.msra.mxu0 %v8479_v10  ;;  %7051 = vmatprep.mubr.f32.mxu0 %v10177_v18  ;;  %v1442_v10 = vld [vmem:[#allocation5 + $0x3b0] sm:$0xff] }
  0xbe   :  { %8484 = vmatprep.subr.bf16.mxu0 %v8483_v20 }
  0xbf   :  { %6881 = vmatmul.mubr.f32.gmra.mrb[8].mxu1 %v10163_v5 }
  0xc0   :  { %7052 = vmatmul.mubr.f32.gmra.mrb[10].mxu0 %v10186_v25  ;;  %6883 = vmatprep.mubr.f32.mxu1 %v10172_v15 }
  0xc1   :  { %8486 = vmatpush3.bf16.msra.mxu0 %v8483_v20  ;;  %7054 = vmatprep.mubr.f32.mxu0 %v10191_v28  ;;  %v1445_v20 = vld [vmem:[#allocation5 + $0x3c8] sm:$0xff] }
  0xc2   :  { %8488 = vmatprep.subr.bf16.mxu0 %v8487_v30 }
  0xc3   :  { %6884 = vmatmul.mubr.f32.gmra.mrb[10].mxu1 %v10177_v18 }
  0xc4   :  { %7055 = vmatmul.mubr.f32.gmra.mrb[12].mxu0 %v10200_v35  ;;  %6886 = vmatprep.mubr.f32.mxu1 %v10186_v25 }
  0xc5   :  { %8490 = vmatpush3.bf16.msra.mxu0 %v8487_v30  ;;  %7057 = vmatprep.mubr.f32.mxu0 %v10205_v36  ;;  %v1451_v30 = vld [vmem:[#allocation5 + $0x3f8] sm:$0xff] }
  0xc6   :  { %8492 = vmatprep.subr.bf16.mxu0 %v8491_v38 }
  0xc7   :  { %6887 = vmatmul.mubr.f32.gmra.mrb[12].mxu1 %v10191_v28 }
  0xc8   :  { %7058 = vmatmul.mubr.f32.gmra.mrb[14].mxu0 %v10214_v46  ;;  %6889 = vmatprep.mubr.f32.mxu1 %v10200_v35 }
  0xc9   :  { %8494 = vmatpush3.bf16.msra.mxu0 %v8491_v38  ;;  %7092 = vmatprep.mubr.f32.mxu0 %v9896_v55  ;;  %v8507_v55 = vpack.c.bf16 %v1443_v11, %v1442_v10  ;;  %v1634_v38 = vld [vmem:[#allocation5 + $0x420] sm:$0xff]  ;;  %v1930_v10 = vld [vmem:[#allocation8 + $0xf8] sm:$0xff] }
  0xca   :  { %8496 = vmatprep.subr.bf16.mxu0 %v8495_v48 }
  0xcb   :  { %6890 = vmatmul.mubr.f32.gmra.mrb[14].mxu1 %v10205_v36 }
  0xcc   :  { %7093 = vmatmul.mubr.f32.vlgmr.msra.gmra.mrb[0].mxu0 %v9901_v58  ;;  %v8511_v58 = vpack.c.bf16 %v1445_v20, %v1444_v13  ;;  %v1883_v13 = vld [vmem:[#allocation8 + $0x8] sm:$0xff] }
  0xcd   :  { %8498 = vmatpush3.bf16.msra.mxu0 %v8495_v48  ;;  %7095 = vmatprep.mubr.f32.mxu0 %v9908_v63  ;;  %v1446_v63 = vld [vmem:[#allocation5 + $0x3d0] sm:$0xff]  ;;  %v1638_v48 = vld [vmem:[#allocation5 + $0x440] sm:$0xff] }
  0xce   :  { %8500 = vmatprep.subr.bf16.mxu0 %v8499_v56 }
  0xd0   :  { %7096 = vmatmul.mubr.f32.gmra.mrb[2].mxu0 %v9913_v2  ;;  %v8515_v2 = vpack.c.bf16 %v1447_v21, %v1446_v63 }
  0xd1   :  { %8502 = vmatpush3.bf16.msra.mxu0 %v8499_v56  ;;  %7098 = vmatprep.mubr.f32.mxu0 %v9925_v8  ;;  %v1448_v8 = vld [vmem:[#allocation5 + $0x3e0] sm:$0xff]  ;;  %v1643_v56 = vld [vmem:[#allocation5 + $0x468] sm:$0xff] }
  0xd2   :  { %8504 = vmatprep.subr.bf16.mxu0 %v8503_v1 }
  0xd4   :  { %7099 = vmatmul.mubr.f32.gmra.mrb[4].mxu0 %v9930_v12  ;;  %v8519_v12 = vpack.c.bf16 %v1449_v23, %v1448_v8 }
  0xd5   :  { %8506 = vmatpush3.bf16.msra.mxu0 %v8503_v1  ;;  %7101 = vmatprep.mubr.f32.mxu0 %v9949_v19  ;;  %v1450_v19 = vld [vmem:[#allocation5 + $0x3f0] sm:$0xff] }
  0xd6   :  { %8508 = vmatprep.subr.bf16.mxu0 %v8507_v55  ;;  %v1929_v1 = vld [vmem:[#allocation8 + $0xf0] sm:$0xff] }
  0xd7   :  { %v8587_v11 = vpack.c.bf16 %v1930_v10, %v1929_v1  ;;  %v1886_v1 = vld [vmem:[#allocation8 + $0x20] sm:$0xff] }
  0xd8   :  { %7102 = vmatmul.mubr.f32.gmra.mrb[6].mxu0 %v9954_v22  ;;  %v8523_v22 = vpack.c.bf16 %v1451_v30, %v1450_v19 }
  0xd9   :  { %8510 = vmatpush3.bf16.msra.mxu0 %v8507_v55  ;;  %7104 = vmatprep.mubr.f32.mxu0 %v9973_v29  ;;  %v1630_v29 = vld [vmem:[#allocation5 + $0x400] sm:$0xff] }
  0xda   :  { %8512 = vmatprep.subr.bf16.mxu0 %v8511_v58  ;;  %v1882_v55 = vld [vmem:[#allocation8] sm:$0xff] }
  0xdb   :  { %v10276_v20 = vpack.c.bf16 %v1883_v13, %v1882_v55  ;;  %v1887_v13 = vld [vmem:[#allocation8 + $0x28] sm:$0xff] }
  0xdc   :  { %7105 = vmatmul.mubr.f32.gmra.mrb[8].mxu0 %v9978_v32  ;;  %v1240_v32 = vld [vmem:[%s10940_s0 + $0x88] sm:$0xff] }
  0xdd   :  { %8514 = vmatpush3.bf16.msra.mxu0 %v8511_v58  ;;  %7107 = vmatprep.mubr.f32.mxu0 %v9997_v39  ;;  %v8527_v39 = vpack.c.bf16 %v1631_v31, %v1630_v29  ;;  %v9745_v58 = vmov 0.0  }
  0xde   :  { %8516 = vmatprep.subr.bf16.mxu0 %v8515_v2  ;;  %1862 = vst [vmem:[#allocation2 + $0x80] sm:$0xff] %v9745_v58  ;;  %1863 = vst [vmem:[#allocation2 + $0x88] sm:$0xff] %v9745_v58 }
  0xdf   :  { %1864 = vst [vmem:[#allocation2 + $0x90] sm:$0xff] %v9745_v58  ;;  %3634 = vst [vmem:[#allocation3 + $0x80] sm:$0xff] %v9745_v58 }
  0xe0   :  { %7108 = vmatmul.mubr.f32.gmra.mrb[10].mxu0 %v10002_v42  ;;  %v1633_v42 = vld [vmem:[#allocation5 + $0x418] sm:$0xff]  ;;  %3635 = vst [vmem:[#allocation3 + $0x88] sm:$0xff] %v9745_v58  ;;  %3636 = vst [vmem:[#allocation3 + $0x90] sm:$0xff] %v9745_v58 }
  0xe1   :  { %8518 = vmatpush3.bf16.msra.mxu0 %v8515_v2  ;;  %7110 = vmatprep.mubr.f32.mxu0 %v10021_v49  ;;  %v8531_v49 = vpack.c.bf16 %v1633_v42, %v1632_v33 }
  0xe2   :  { %8520 = vmatprep.subr.bf16.mxu0 %v8519_v12 }
  0xe4   :  { %7111 = vmatmul.mubr.f32.gmra.mrb[12].mxu0 %v10026_v52  ;;  %v8535_v52 = vpack.c.bf16 %v1635_v43, %v1634_v38  ;;  %v10300_v43 = vld [vmem:[%s10942_s2] ss:$0 sm:$0xff] }
  0xe5   :  { %8522 = vmatpush3.bf16.msra.mxu0 %v8519_v12  ;;  %7113 = vmatprep.mubr.f32.mxu0 %v10045_v61  ;;  %v1636_v61 = vld [vmem:[#allocation5 + $0x430] sm:$0xff] }
  0xe6   :  { %8524 = vmatprep.subr.bf16.mxu0 %v8523_v22 }
  0xe8   :  { %7114 = vmatmul.mubr.f32.gmra.mrb[14].mxu0 %v1240_v32 }
  0xe9   :  { %8526 = vmatpush3.bf16.msra.mxu0 %v8523_v22  ;;  %7148 = vmatprep.mubr.f32.mxu0 %v9936_v14  ;;  %v8539_v14 = vpack.c.bf16 %v1637_v45, %v1636_v61 }
  0xea   :  { %8528 = vmatprep.subr.bf16.mxu0 %v8527_v39 }
  0xec   :  { %7149 = vmatmul.mubr.f32.vlgmr.msra.gmra.mrb[0].mxu0 %v9942_v17  ;;  %v8543_v17 = vpack.c.bf16 %v1639_v51, %v1638_v48 }
  0xed   :  { %8530 = vmatpush3.bf16.msra.mxu0 %v8527_v39  ;;  %7151 = vmatprep.mubr.f32.mxu0 %v9960_v24  ;;  %v1640_v24 = vld [vmem:[#allocation5 + $0x450] sm:$0xff] }
  0xee   :  { %8532 = vmatprep.subr.bf16.mxu0 %v8531_v49 }
  0xf0   :  { %7152 = vmatmul.mubr.f32.gmra.mrb[2].mxu0 %v9966_v27  ;;  %v8547_v27 = vpack.c.bf16 %v1641_v53, %v1640_v24 }
  0xf1   :  { %8534 = vmatpush3.bf16.msra.mxu0 %v8531_v49  ;;  %7154 = vmatprep.mubr.f32.mxu0 %v9984_v34  ;;  %v1642_v34 = vld [vmem:[#allocation5 + $0x460] sm:$0xff] }
  0xf2   :  { %8536 = vmatprep.subr.bf16.mxu0 %v8535_v52 }
  0xf4   :  { %7155 = vmatmul.mubr.f32.gmra.mrb[4].mxu0 %v9990_v37  ;;  %v8551_v37 = vpack.c.bf16 %v1643_v56, %v1642_v34 }
  0xf5   :  { %8538 = vmatpush3.bf16.msra.mxu0 %v8535_v52  ;;  %7157 = vmatprep.mubr.f32.mxu0 %v10008_v44  ;;  %v1644_v44 = vld [vmem:[#allocation5 + $0x470] sm:$0xff] }
  0xf6   :  { %8540 = vmatprep.subr.bf16.mxu0 %v8539_v14 }
  0xf8   :  { %7158 = vmatmul.mubr.f32.gmra.mrb[6].mxu0 %v10014_v47  ;;  %v8555_v47 = vpack.c.bf16 %v1645_v62, %v1644_v44 }
  0xf9   :  { %8542 = vmatpush3.bf16.msra.mxu0 %v8539_v14  ;;  %7160 = vmatprep.mubr.f32.mxu0 %v10032_v54  ;;  %v1434_v54 = vld [vmem:[%s10940_s0 + $0x89] sm:$0xff] }
  0xfa   :  { %8544 = vmatprep.subr.bf16.mxu0 %v8543_v17 }
  0xfc   :  { %7161 = vmatmul.mubr.f32.gmra.mrb[8].mxu0 %v10038_v59  ;;  %v1915_v59 = vld [vmem:[#allocation8 + $0x80] sm:$0xff] }
  0xfd   :  { %8546 = vmatpush3.bf16.msra.mxu0 %v8543_v17  ;;  %7163 = vmatprep.mubr.f32.mxu0 %v10051_v3  ;;  %v1916_v3 = vld [vmem:[#allocation8 + $0x88] sm:$0xff] }
  0xfe   :  { %8548 = vmatprep.subr.bf16.mxu0 %v8547_v27 }
 0x100   :  { %7164 = vmatmul.mubr.f32.gmra.mrb[10].mxu0 %v10057_v7  ;;  %v1917_v7 = vld [vmem:[#allocation8 + $0x90] sm:$0xff] }
 0x101   :  { %8550 = vmatpush3.bf16.msra.mxu0 %v8547_v27  ;;  %7166 = vmatprep.mubr.f32.mxu0 %v10065_v16  ;;  %v8559_v16 = vpack.c.bf16 %v1916_v3, %v1915_v59 }
 0x102   :  { %8552 = vmatprep.subr.bf16.mxu0 %v8551_v37 }
 0x103   :  { %8560 = vmatprep.subr.bf16.mxu1 %v8559_v16 }
 0x104   :  { %7167 = vmatmul.mubr.f32.gmra.mrb[12].mxu0 %v10071_v6  ;;  %v1918_v6 = vld [vmem:[#allocation8 + $0x98] sm:$0xff]  ;;  %8562 = vmatpush3.bf16.msra.mxu1 %v8559_v16 }
 0x105   :  { %8554 = vmatpush3.bf16.msra.mxu0 %v8551_v37  ;;  %7169 = vmatprep.mubr.f32.mxu0 %v10104_v26  ;;  %v8563_v26 = vpack.c.bf16 %v1918_v6, %v1917_v7 }
 0x106   :  { %8556 = vmatprep.subr.bf16.mxu0 %v8555_v47 }
 0x107   :  { %8564 = vmatprep.subr.bf16.mxu1 %v8563_v26 }
 0x108   :  { %7170 = vmatmul.mubr.f32.gmra.mrb[14].mxu0 %v1434_v54  ;;  %8566 = vmatpush3.bf16.msra.mxu1 %v8563_v26 }
 0x109   :  { %8558 = vmatpush3.bf16.msra.mxu0 %v8555_v47  ;;  %7204 = vmatprep.mubr.f32.mxu0 %v10115_v40  ;;  %v1919_v40 = vld [vmem:[#allocation8 + $0xa0] sm:$0xff] }
 0x10c   :  { %7205 = vmatmul.mubr.f32.vlgmr.msra.gmra.mrb[0].mxu0 %v10120_v41  ;;  %v1920_v41 = vld [vmem:[#allocation8 + $0xa8] sm:$0xff] }
 0x10d   :  { %7207 = vmatprep.mubr.f32.mxu0 %v10132_v50  ;;  %v1628_v50 = vld [vmem:[%s10940_s0 + $0x8a] sm:$0xff] }
 0x110   :  { %7208 = vmatmul.mubr.f32.gmra.mrb[2].mxu0 %v10137_v9  ;;  %v8567_v9 = vpack.c.bf16 %v1920_v41, %v1919_v40 }
 0x111   :  { %7210 = vmatprep.mubr.f32.mxu0 %v10145_v57  ;;  %v1921_v57 = vld [vmem:[#allocation8 + $0xb0] sm:$0xff] }
 0x112   :  { %8568 = vmatprep.subr.bf16.mxu1 %v8567_v9 }
 0x113   :  { %8570 = vmatpush3.bf16.msra.mxu1 %v8567_v9 }
 0x114   :  { %7211 = vmatmul.mubr.f32.gmra.mrb[4].mxu0 %v10150_v60  ;;  %v1922_v60 = vld [vmem:[#allocation8 + $0xb8] sm:$0xff] }
 0x115   :  { %7213 = vmatprep.mubr.f32.mxu0 %v10158_v4  ;;  %v8571_v4 = vpack.c.bf16 %v1922_v60, %v1921_v57 }
 0x117   :  { %8572 = vmatprep.subr.bf16.mxu1 %v8571_v4 }
 0x118   :  { %7214 = vmatmul.mubr.f32.gmra.mrb[6].mxu0 %v10163_v5  ;;  %8574 = vmatpush3.bf16.msra.mxu1 %v8571_v4  ;;  %v1923_v5 = vld [vmem:[#allocation8 + $0xc0] sm:$0xff]  ;;  %v1884_v4 = vld [vmem:[#allocation8 + $0x10] sm:$0xff] }
 0x119   :  { %7216 = vmatprep.mubr.f32.mxu0 %v10172_v15  ;;  %v1924_v15 = vld [vmem:[#allocation8 + $0xc8] sm:$0xff] }
 0x11c   :  { %7217 = vmatmul.mubr.f32.gmra.mrb[8].mxu0 %v10177_v18  ;;  %v8575_v18 = vpack.c.bf16 %v1924_v15, %v1923_v5  ;;  %v1885_v5 = vld [vmem:[#allocation8 + $0x18] sm:$0xff] }
 0x11d   :  { %7219 = vmatprep.mubr.f32.mxu0 %v10186_v25  ;;  %v1925_v25 = vld [vmem:[#allocation8 + $0xd0] sm:$0xff] }
 0x11e   :  { %8576 = vmatprep.subr.bf16.mxu1 %v8575_v18 }
 0x11f   :  { %8578 = vmatpush3.bf16.msra.mxu1 %v8575_v18 }
 0x120   :  { %7220 = vmatmul.mubr.f32.gmra.mrb[10].mxu0 %v10191_v28  ;;  %v1926_v28 = vld [vmem:[#allocation8 + $0xd8] sm:$0xff] }
 0x121   :  { %7222 = vmatprep.mubr.f32.mxu0 %v10200_v35  ;;  %v8579_v35 = vpack.c.bf16 %v1926_v28, %v1925_v25 }
 0x123   :  { %8580 = vmatprep.subr.bf16.mxu1 %v8579_v35 }
 0x124   :  { %7223 = vmatmul.mubr.f32.gmra.mrb[12].mxu0 %v10205_v36  ;;  %8582 = vmatpush3.bf16.msra.mxu1 %v8579_v35  ;;  %v1927_v36 = vld [vmem:[#allocation8 + $0xe0] sm:$0xff] }
 0x125   :  { %7225 = vmatprep.mubr.f32.mxu0 %v10214_v46  ;;  %v1928_v46 = vld [vmem:[#allocation8 + $0xe8] sm:$0xff] }
 0x126   :  { %v8583_v0 = vpack.c.bf16 %v1928_v46, %v1927_v36 }
 0x128   :  { %7226 = vmatmul.mubr.f32.gmra.mrb[14].mxu0 %v1628_v50  ;;  %8584 = vmatprep.subr.bf16.mxu1 %v8583_v0 }
 0x129   :  { %8586 = vmatpush3.bf16.msra.mxu1 %v8583_v0  ;;  %v8595_v0 = vpack.c.bf16 %v1885_v5, %v1884_v4 }
 0x12a   :  { %8588 = vmatprep.subr.bf16.mxu1 %v8587_v11 }
 0x12d   :  { %8590 = vmatpush3.bf16.msra.mxu1 %v8587_v11 }
 0x12e   :  { %8592 = vmatprep.subr.bf16.mxu1 %v10276_v20 }
 0x182   :  { %v6870_v63 = vpop.f32.mrb[0].mxu1 }
 0x183   :  { %v548_v21 = vpop.f32.mrb[1].mxu1 }
 0x186   :  { %v6873_v2 = vpop.f32.mrb[2].mxu1 }
 0x187   :  { %v558_v8 = vpop.f32.mrb[3].mxu1 }
 0x18a   :  { %v6876_v23 = vpop.f32.mrb[4].mxu1 }
 0x18b   :  { %v568_v12 = vpop.f32.mrb[5].mxu1 }
 0x18e   :  { %v6879_v19 = vpop.f32.mrb[6].mxu1 }
 0x18f   :  { %v578_v30 = vpop.f32.mrb[7].mxu1 }
 0x192   :  { %v6882_v22 = vpop.f32.mrb[8].mxu1 }
 0x193   :  { %v588_v29 = vpop.f32.mrb[9].mxu1 }
 0x196   :  { %v10285_v31 = vpop.f32.mrb[10].mxu1 }
 0x197   :  { %v10287_v32 = vpop.f32.mrb[11].mxu1 }
 0x19a   :  { %v10289_v39 = vpop.f32.mrb[12].mxu1 }
 0x19b   :  { %v10291_v33 = vpop.f32.mrb[13].mxu1 }
 0x19e   :  { %v10293_v42 = vpop.f32.mrb[14].mxu1 }
 0x19f   :  { %v10295_v49 = vpop.f32.mrb[15].mxu1 }
 0x1df   :  { %v7206_v38 = vpop.f32.mrb[0].mxu0 }
 0x1e0   :  { %v9223_v52 = vadd.f32 %v7206_v38, %v6870_v63  ;;  %v1712_v61 = vpop.f32.mrb[1].mxu0 }
 0x1e1   :  { %v9224_v45 = vadd.f32 %v1712_v61, %v548_v21 }
 0x1e2   :  { %v1815_v14 = vadd.f32 %v9223_v52, %v10300_v43 }
 0x1e3   :  { %v10304_v48 = vadd.f32 %v9224_v45, %v10300_v43  ;;  %v7209_v51 = vpop.f32.mrb[2].mxu0 }
 0x1e4   :  { %v10306_v17 = vmax.f32 %v1815_v14, 0.0  ;;  %v9225_v24 = vadd.f32 %v7209_v51, %v6873_v2  ;;  %v1722_v53 = vpop.f32.mrb[3].mxu0 }
 0x1e5   :  { %v1830_v27 = vmax.f32 %v10304_v48, 0.0  ;;  %v9226_v34 = vadd.f32 %v1722_v53, %v558_v8 }
 0x1e6   :  { %1847 = vst [vmem:[#allocation2 + $0x8] sm:$0xff] %v10306_v17  ;;  %v1817_v56 = vadd.f32 %v9225_v24, %v10300_v43 }
 0x1e7   :  { %1846 = vst [vmem:[#allocation2] sm:$0xff] %v1830_v27  ;;  %v1816_v37 = vadd.f32 %v9226_v34, %v10300_v43  ;;  %v7212_v44 = vpop.f32.mrb[4].mxu0  ;;  %v1890_v34 = vld [vmem:[#allocation8 + $0x40] sm:$0xff] }
 0x1e8   :  { %v10314_v62 = vmax.f32 %v1817_v56, 0.0  ;;  %v9227_v47 = vadd.f32 %v7212_v44, %v6876_v23  ;;  %v1732_v54 = vpop.f32.mrb[5].mxu0 }
 0x1e9   :  { %v10316_v59 = vmax.f32 %v1816_v37, 0.0  ;;  %v9228_v3 = vadd.f32 %v1732_v54, %v568_v12 }
 0x1ea   :  { %1849 = vst [vmem:[#allocation2 + $0x18] sm:$0xff] %v10314_v62  ;;  %v1819_v7 = vadd.f32 %v9227_v47, %v10300_v43 }
 0x1eb   :  { %1848 = vst [vmem:[#allocation2 + $0x10] sm:$0xff] %v10316_v59  ;;  %v1818_v16 = vadd.f32 %v9228_v3, %v10300_v43  ;;  %v7215_v6 = vpop.f32.mrb[6].mxu0 }
 0x1ec   :  { %v10322_v26 = vmax.f32 %v1819_v7, 0.0  ;;  %v9229_v40 = vadd.f32 %v7215_v6, %v6879_v19  ;;  %v1742_v41 = vpop.f32.mrb[7].mxu0 }
 0x1ed   :  { %v10324_v50 = vmax.f32 %v1818_v16, 0.0  ;;  %v9230_v9 = vadd.f32 %v1742_v41, %v578_v30  ;;  %v8599_v30 = vpack.c.bf16 %v1887_v13, %v1886_v1  ;;  %v1892_v41 = vld [vmem:[#allocation8 + $0x50] sm:$0xff]  ;;  %v1897_v13 = vld [vmem:[#allocation8 + $0x78] sm:$0xff] }
 0x1ee   :  { %1851 = vst [vmem:[#allocation2 + $0x28] sm:$0xff] %v10322_v26  ;;  %v1821_v57 = vadd.f32 %v9229_v40, %v10300_v43  ;;  %v1898_v60 = vld [vmem:[#allocation2 + $0x1] sm:$0xff] }
 0x1ef   :  { %1850 = vst [vmem:[#allocation2 + $0x20] sm:$0xff] %v10324_v50  ;;  %v1820_v15 = vadd.f32 %v9230_v9, %v10300_v43  ;;  %v7218_v18 = vpop.f32.mrb[8].mxu0  ;;  %7260 = vmatprep.mubr.f32.mxu1 %v1898_v60 }
 0x1f0   :  { %v10330_v25 = vmax.f32 %v1821_v57, 0.0  ;;  %v9231_v28 = vadd.f32 %v7218_v18, %v6882_v22  ;;  %v1752_v35 = vpop.f32.mrb[9].mxu0  ;;  %v1888_v22 = vld [vmem:[#allocation8 + $0x30] sm:$0xff]  ;;  %v1894_v18 = vld [vmem:[#allocation8 + $0x60] sm:$0xff] }
 0x1f1   :  { %v10332_v36 = vmax.f32 %v1820_v15, 0.0  ;;  %v9232_v46 = vadd.f32 %v1752_v35, %v588_v29 }
 0x1f2   :  { %1853 = vst [vmem:[#allocation2 + $0x38] sm:$0xff] %v10330_v25  ;;  %v1823_v10 = vadd.f32 %v9231_v28, %v10300_v43  ;;  %v10336_v11 = vld [vmem:[#allocation2 + $0x9] sm:$0xff]  ;;  %v10338_v55 = vld [vmem:[#allocation2 + $0x11] sm:$0xff] }
 0x1f3   :  { %1852 = vst [vmem:[#allocation2 + $0x30] sm:$0xff] %v10332_v36  ;;  %v1822_v63 = vadd.f32 %v9232_v46, %v10300_v43  ;;  %v7221_v21 = vpop.f32.mrb[10].mxu0  ;;  %7261 = vmatmul.mubr.f32.vlgmr.msra.gmra.mrb[16].mxu1 %v10336_v11  ;;  %v1895_v46 = vld [vmem:[#allocation8 + $0x68] sm:$0xff] }
 0x1f4   :  { %v10343_v2 = vmax.f32 %v1823_v10, 0.0  ;;  %v9233_v8 = vadd.f32 %v7221_v21, %v10285_v31  ;;  %v1762_v23 = vpop.f32.mrb[11].mxu0  ;;  %7263 = vmatprep.mubr.f32.mxu1 %v10338_v55  ;;  %8594 = vmatpush3.bf16.msra.mxu1 %v10276_v20  ;;  %v1889_v31 = vld [vmem:[#allocation8 + $0x38] sm:$0xff]  ;;  %v2238_v21 = vld [vmem:[#allocation8 + $0x100] sm:$0xff] }
 0x1f5   :  { %v10348_v12 = vmax.f32 %v1822_v63, 0.0  ;;  %v9234_v19 = vadd.f32 %v1762_v23, %v10287_v32  ;;  %8596 = vmatprep.subr.bf16.mxu1 %v8595_v0  ;;  %v8603_v53 = vpack.c.bf16 %v1889_v31, %v1888_v22  ;;  %v2241_v31 = vld [vmem:[#allocation8 + $0x118] sm:$0xff] }
 0x1f6   :  { %1855 = vst [vmem:[#allocation2 + $0x48] sm:$0xff] %v10343_v2  ;;  %v1825_v29 = vadd.f32 %v9233_v8, %v10300_v43  ;;  %v10353_v38 = vld [vmem:[#allocation2 + $0x19] sm:$0xff]  ;;  %v10355_v52 = vld [vmem:[#allocation2 + $0x21] sm:$0xff] }
 0x1f7   :  { %1854 = vst [vmem:[#allocation2 + $0x40] sm:$0xff] %v10348_v12  ;;  %v1824_v20 = vadd.f32 %v9234_v19, %v10300_v43  ;;  %v7224_v61 = vpop.f32.mrb[12].mxu0  ;;  %7264 = vmatmul.mubr.f32.gmra.mrb[18].mxu1 %v10353_v38  ;;  %v2239_v19 = vld [vmem:[#allocation8 + $0x108] sm:$0xff] }
 0x1f8   :  { %v10360_v32 = vmax.f32 %v1825_v29, 0.0  ;;  %v9235_v45 = vadd.f32 %v7224_v61, %v10289_v39  ;;  %v1772_v14 = vpop.f32.mrb[13].mxu0  ;;  %7266 = vmatprep.mubr.f32.mxu1 %v10355_v52  ;;  %8598 = vmatpush3.bf16.msra.mxu1 %v8595_v0  ;;  %v1891_v39 = vld [vmem:[#allocation8 + $0x48] sm:$0xff]  ;;  %v1896_v0 = vld [vmem:[#allocation8 + $0x70] sm:$0xff]  ;;  %v2242_v61 = vld [vmem:[#allocation8 + $0x120] sm:$0xff] }
 0x1f9   :  { %v10364_v51 = vmax.f32 %v1824_v20, 0.0  ;;  %v9236_v24 = vadd.f32 %v1772_v14, %v10291_v33  ;;  %8600 = vmatprep.subr.bf16.mxu1 %v8599_v30  ;;  %v8607_v40 = vpack.c.bf16 %v1891_v39, %v1890_v34  ;;  %v8619_v63 = vpack.c.bf16 %v1897_v13, %v1896_v0  ;;  %v2240_v29 = vld [vmem:[#allocation8 + $0x110] sm:$0xff]  ;;  %v2247_v34 = vld [vmem:[#allocation8 + $0x148] sm:$0xff] }
 0x1fa   :  { %1857 = vst [vmem:[#allocation2 + $0x58] sm:$0xff] %v10360_v32  ;;  %v1827_v56 = vadd.f32 %v9235_v45, %v10300_v43  ;;  %v10369_v37 = vld [vmem:[#allocation2 + $0x29] sm:$0xff]  ;;  %v10371_v44 = vld [vmem:[#allocation2 + $0x31] sm:$0xff]  ;;  %v8627_v20 = vpack.c.bf16 %v2241_v31, %v2240_v29  ;;  %v10443_v29 = vld [vmem:[#allocation2 + $0x1a] sm:$0xff] }
 0x1fb   :  { %1856 = vst [vmem:[#allocation2 + $0x50] sm:$0xff] %v10364_v51  ;;  %v1826_v47 = vadd.f32 %v9236_v24, %v10300_v43  ;;  %v7227_v54 = vpop.f32.mrb[14].mxu0  ;;  %7267 = vmatmul.mubr.f32.gmra.mrb[20].mxu1 %v10369_v37  ;;  %v2243_v45 = vld [vmem:[#allocation8 + $0x128] sm:$0xff]  ;;  %v2244_v24 = vld [vmem:[#allocation8 + $0x130] sm:$0xff] }
 0x1fc   :  { %v10376_v33 = vmax.f32 %v1827_v56, 0.0  ;;  %v9237_v3 = vadd.f32 %v7227_v54, %v10293_v42  ;;  %v1782_v7 = vpop.f32.mrb[15].mxu0  ;;  %7269 = vmatprep.mubr.f32.mxu1 %v10371_v44  ;;  %8602 = vmatpush3.bf16.msra.mxu1 %v8599_v30  ;;  %v1893_v42 = vld [vmem:[#allocation8 + $0x58] sm:$0xff]  ;;  %v8623_v30 = vpack.c.bf16 %v2239_v19, %v2238_v21  ;;  %v8631_v14 = vpack.c.bf16 %v2243_v45, %v2242_v61  ;;  %v2248_v39 = vld [vmem:[#allocation8 + $0x150] sm:$0xff]  ;;  %v10437_v13 = vld [vmem:[#allocation2 + $0xa] sm:$0xff] }
 0x1fd   :  { %v10380_v16 = vmax.f32 %v1826_v47, 0.0  ;;  %v9238_v6 = vadd.f32 %v1782_v7, %v10295_v49  ;;  %8604 = vmatprep.subr.bf16.mxu1 %v8603_v53  ;;  %v8611_v15 = vpack.c.bf16 %v1893_v42, %v1892_v41  ;;  %v2249_v47 = vld [vmem:[#allocation8 + $0x158] sm:$0xff]  ;;  %v2251_v7 = vld [vmem:[#allocation8 + $0x168] sm:$0xff]  ;;  %v2432_v42 = vld [vmem:[#allocation8 + $0x180] sm:$0xff] }
 0x1fe   :  { %1859 = vst [vmem:[#allocation2 + $0x68] sm:$0xff] %v10376_v33  ;;  %v1829_v9 = vadd.f32 %v9237_v3, %v10300_v43  ;;  %v10385_v57 = vld [vmem:[#allocation2 + $0x39] sm:$0xff]  ;;  %v10387_v60 = vld [vmem:[#allocation2 + $0x41] sm:$0xff]  ;;  %v8643_v54 = vpack.c.bf16 %v2249_v47, %v2248_v39  ;;  %v2437_v21 = vld [vmem:[#allocation8 + $0x1a8] sm:$0xff] }
 0x1ff   :  { %1858 = vst [vmem:[#allocation2 + $0x60] sm:$0xff] %v10380_v16  ;;  %v1828_v4 = vadd.f32 %v9238_v6, %v10300_v43  ;;  %7270 = vmatmul.mubr.f32.gmra.mrb[22].mxu1 %v10385_v57  ;;  %v8615_v43 = vpack.c.bf16 %v1895_v46, %v1894_v18  ;;  %v2250_v3 = vld [vmem:[#allocation8 + $0x160] sm:$0xff]  ;;  %v2253_v41 = vld [vmem:[#allocation8 + $0x178] sm:$0xff]  ;;  %v2434_v18 = vld [vmem:[#allocation8 + $0x190] sm:$0xff] }
 0x200   :  { %v10392_v5 = vmax.f32 %v1829_v9, 0.0  ;;  %7272 = vmatprep.mubr.f32.mxu1 %v10387_v60  ;;  %8606 = vmatpush3.bf16.msra.mxu1 %v8603_v53  ;;  %v2245_v53 = vld [vmem:[#allocation8 + $0x138] sm:$0xff]  ;;  %v8647_v6 = vpack.c.bf16 %v2251_v7, %v2250_v3  ;;  %v10440_v19 = vld [vmem:[#allocation2 + $0x12] sm:$0xff]  ;;  %v2444_v7 = vld [vmem:[#allocation8 + $0x1e0] sm:$0xff] }
 0x201   :  { %v10395_v49 = vmax.f32 %v1828_v4, 0.0  ;;  %8608 = vmatprep.subr.bf16.mxu1 %v8607_v40  ;;  %v8635_v48 = vpack.c.bf16 %v2245_v53, %v2244_v24  ;;  %v2433_v4 = vld [vmem:[#allocation8 + $0x188] sm:$0xff]  ;;  %v2435_v46 = vld [vmem:[#allocation8 + $0x198] sm:$0xff]  ;;  %v2438_v31 = vld [vmem:[#allocation8 + $0x1b0] sm:$0xff] }
 0x202   :  { %1861 = vst [vmem:[#allocation2 + $0x78] sm:$0xff] %v10392_v5  ;;  %v10398_v28 = vld [vmem:[#allocation2 + $0x49] sm:$0xff]  ;;  %v10400_v35 = vld [vmem:[#allocation2 + $0x51] sm:$0xff]  ;;  %v8659_v0 = vpack.c.bf16 %v2435_v46, %v2434_v18  ;;  %v2443_v39 = vld [vmem:[#allocation8 + $0x1d8] sm:$0xff] }
 0x203   :  { %1860 = vst [vmem:[#allocation2 + $0x70] sm:$0xff] %v10395_v49  ;;  %7273 = vmatmul.mubr.f32.gmra.mrb[24].mxu1 %v10398_v28  ;;  %v10446_v61 = vld [vmem:[#allocation2 + $0x22] sm:$0xff]  ;;  %v2441_v53 = vld [vmem:[#allocation8 + $0x1c8] sm:$0xff] }
 0x204   :  { %7275 = vmatprep.mubr.f32.mxu1 %v10400_v35  ;;  %8610 = vmatpush3.bf16.msra.mxu1 %v8607_v40  ;;  %v2252_v40 = vld [vmem:[#allocation8 + $0x170] sm:$0xff]  ;;  %v2440_v24 = vld [vmem:[#allocation8 + $0x1c0] sm:$0xff] }
 0x205   :  { %8612 = vmatprep.subr.bf16.mxu1 %v8611_v15  ;;  %v8651_v9 = vpack.c.bf16 %v2253_v41, %v2252_v40  ;;  %v10458_v47 = vld [vmem:[#allocation2 + $0x42] sm:$0xff]  ;;  %v10461_v3 = vld [vmem:[#allocation2 + $0x4a] sm:$0xff]  ;;  %v10464_v40 = vld [vmem:[#allocation2 + $0x52] sm:$0xff] }
 0x206   :  { %v10405_v1 = vld [vmem:[#allocation2 + $0x59] sm:$0xff]  ;;  %v10407_v10 = vld [vmem:[#allocation2 + $0x61] sm:$0xff] }
 0x207   :  { %7276 = vmatmul.mubr.f32.gmra.mrb[26].mxu1 %v10405_v1 }
 0x208   :  { %7278 = vmatprep.mubr.f32.mxu1 %v10407_v10  ;;  %8614 = vmatpush3.bf16.msra.mxu1 %v8611_v15  ;;  %v8655_v15 = vpack.c.bf16 %v2433_v4, %v2432_v42  ;;  %v2446_v42 = vld [vmem:[#allocation8 + $0x1f0] sm:$0xff]  ;;  %v2447_v4 = vld [vmem:[#allocation8 + $0x1f8] sm:$0xff] }
 0x209   :  { %8616 = vmatprep.subr.bf16.mxu1 %v8615_v43  ;;  %v10417_v22 = vld [vmem:[#allocation2 + $0x79] sm:$0xff]  ;;  %v8683_v18 = vpack.c.bf16 %v2447_v4, %v2446_v42  ;;  %v2639_v42 = vld [vmem:[#allocation8 + $0x268] sm:$0xff] }
 0x20a   :  { %v10411_v8 = vld [vmem:[#allocation2 + $0x69] sm:$0xff]  ;;  %v10413_v23 = vld [vmem:[#allocation2 + $0x71] sm:$0xff] }
 0x20b   :  { %7279 = vmatmul.mubr.f32.gmra.mrb[28].mxu1 %v10411_v8  ;;  %v10473_v46 = vld [vmem:[#allocation2 + $0x6a] sm:$0xff]  ;;  %v2640_v4 = vld [vmem:[#allocation8 + $0x270] sm:$0xff] }
 0x20c   :  { %7281 = vmatprep.mubr.f32.mxu1 %v10413_v23  ;;  %8618 = vmatpush3.bf16.msra.mxu1 %v8615_v43  ;;  %v2221_v43 = vld [vmem:[#allocation2 + $0x2] sm:$0xff] }
 0x20d   :  { %8620 = vmatprep.subr.bf16.mxu1 %v8619_v63 }
 0x20f   :  { %7282 = vmatmul.mubr.f32.gmra.mrb[30].mxu1 %v10417_v22 }
 0x210   :  { %8622 = vmatpush3.bf16.msra.mxu1 %v8619_v63  ;;  %7316 = vmatprep.mubr.f32.mxu1 %v1830_v27  ;;  %v2246_v27 = vld [vmem:[#allocation8 + $0x140] sm:$0xff] }
 0x211   :  { %8624 = vmatprep.subr.bf16.mxu1 %v8623_v30  ;;  %v8639_v56 = vpack.c.bf16 %v2247_v34, %v2246_v27  ;;  %v2436_v63 = vld [vmem:[#allocation8 + $0x1a0] sm:$0xff]  ;;  %v8671_v27 = vpack.c.bf16 %v2441_v53, %v2440_v24  ;;  %v10455_v34 = vld [vmem:[#allocation2 + $0x3a] sm:$0xff]  ;;  %v2631_v53 = vld [vmem:[#allocation8 + $0x228] sm:$0xff] }
 0x212   :  { %v2630_v24 = vld [vmem:[#allocation8 + $0x220] sm:$0xff] }
 0x213   :  { %7317 = vmatmul.mubr.f32.vlgmr.msra.gmra.mrb[16].mxu1 %v10306_v17 }
 0x214   :  { %7319 = vmatprep.mubr.f32.mxu1 %v10316_v59  ;;  %8626 = vmatpush3.bf16.msra.mxu1 %v8623_v30  ;;  %v8663_v30 = vpack.c.bf16 %v2437_v21, %v2436_v63  ;;  %v10476_v63 = vld [vmem:[#allocation2 + $0x72] sm:$0xff] }
 0x215   :  { %8628 = vmatprep.subr.bf16.mxu1 %v8627_v20 }
 0x217   :  { %7320 = vmatmul.mubr.f32.gmra.mrb[18].mxu1 %v10314_v62 }
 0x218   :  { %7322 = vmatprep.mubr.f32.mxu1 %v10324_v50  ;;  %8630 = vmatpush3.bf16.msra.mxu1 %v8627_v20  ;;  %v2439_v20 = vld [vmem:[#allocation8 + $0x1b8] sm:$0xff] }
 0x219   :  { %8632 = vmatprep.subr.bf16.mxu1 %v8631_v14  ;;  %v8667_v45 = vpack.c.bf16 %v2439_v20, %v2438_v31  ;;  %v2628_v31 = vld [vmem:[#allocation8 + $0x210] sm:$0xff]  ;;  %v2629_v20 = vld [vmem:[#allocation8 + $0x218] sm:$0xff] }
 0x21b   :  { %7323 = vmatmul.mubr.f32.gmra.mrb[20].mxu1 %v10322_v26 }
 0x21c   :  { %7325 = vmatprep.mubr.f32.mxu1 %v10332_v36  ;;  %8634 = vmatpush3.bf16.msra.mxu1 %v8631_v14  ;;  %v10449_v14 = vld [vmem:[#allocation2 + $0x2a] sm:$0xff] }
 0x21d   :  { %8636 = vmatprep.subr.bf16.mxu1 %v8635_v48 }
 0x21f   :  { %7326 = vmatmul.mubr.f32.gmra.mrb[22].mxu1 %v10330_v25 }
 0x220   :  { %7328 = vmatprep.mubr.f32.mxu1 %v10348_v12  ;;  %8638 = vmatpush3.bf16.msra.mxu1 %v8635_v48  ;;  %v10452_v48 = vld [vmem:[#allocation2 + $0x32] sm:$0xff] }
 0x221   :  { %8640 = vmatprep.subr.bf16.mxu1 %v8639_v56 }
 0x223   :  { %7329 = vmatmul.mubr.f32.gmra.mrb[24].mxu1 %v10343_v2 }
 0x224   :  { %7331 = vmatprep.mubr.f32.mxu1 %v10364_v51  ;;  %8642 = vmatpush3.bf16.msra.mxu1 %v8639_v56  ;;  %v2442_v56 = vld [vmem:[#allocation8 + $0x1d0] sm:$0xff] }
 0x225   :  { %8644 = vmatprep.subr.bf16.mxu1 %v8643_v54 }
 0x227   :  { %7332 = vmatmul.mubr.f32.gmra.mrb[26].mxu1 %v10360_v32 }
 0x228   :  { %7334 = vmatprep.mubr.f32.mxu1 %v10380_v16  ;;  %8646 = vmatpush3.bf16.msra.mxu1 %v8643_v54  ;;  %v8675_v54 = vpack.c.bf16 %v2443_v39, %v2442_v56  ;;  %v2632_v56 = vld [vmem:[#allocation8 + $0x230] sm:$0xff]  ;;  %v2633_v39 = vld [vmem:[#allocation8 + $0x238] sm:$0xff] }
 0x229   :  { %8648 = vmatprep.subr.bf16.mxu1 %v8647_v6 }
 0x22b   :  { %7335 = vmatmul.mubr.f32.gmra.mrb[28].mxu1 %v10376_v33 }
 0x22c   :  { %7337 = vmatprep.mubr.f32.mxu1 %v10395_v49  ;;  %8650 = vmatpush3.bf16.msra.mxu1 %v8647_v6  ;;  %v2445_v6 = vld [vmem:[#allocation8 + $0x1e8] sm:$0xff] }
 0x22d   :  { %8652 = vmatprep.subr.bf16.mxu1 %v8651_v9  ;;  %v8679_v41 = vpack.c.bf16 %v2445_v6, %v2444_v7  ;;  %v2635_v7 = vld [vmem:[#allocation8 + $0x248] sm:$0xff]  ;;  %v2637_v6 = vld [vmem:[#allocation8 + $0x258] sm:$0xff] }
 0x22f   :  { %7338 = vmatmul.mubr.f32.gmra.mrb[30].mxu1 %v10392_v5 }
 0x230   :  { %8654 = vmatpush3.bf16.msra.mxu1 %v8651_v9  ;;  %7372 = vmatprep.mubr.f32.mxu1 %v2221_v43  ;;  %v10467_v9 = vld [vmem:[#allocation2 + $0x5a] sm:$0xff]  ;;  %v2626_v43 = vld [vmem:[#allocation8 + $0x200] sm:$0xff] }
 0x231   :  { %8656 = vmatprep.subr.bf16.mxu1 %v8655_v15 }
 0x233   :  { %7373 = vmatmul.mubr.f32.vlgmr.msra.gmra.mrb[16].mxu1 %v10437_v13 }
 0x234   :  { %7375 = vmatprep.mubr.f32.mxu1 %v10440_v19  ;;  %8658 = vmatpush3.bf16.msra.mxu1 %v8655_v15  ;;  %v10470_v15 = vld [vmem:[#allocation2 + $0x62] sm:$0xff] }
 0x235   :  { %8660 = vmatprep.subr.bf16.mxu1 %v8659_v0 }
 0x237   :  { %7376 = vmatmul.mubr.f32.gmra.mrb[18].mxu1 %v10443_v29 }
 0x238   :  { %7378 = vmatprep.mubr.f32.mxu1 %v10446_v61  ;;  %8662 = vmatpush3.bf16.msra.mxu1 %v8659_v0  ;;  %v2627_v0 = vld [vmem:[#allocation8 + $0x208] sm:$0xff] }
 0x239   :  { %8664 = vmatprep.subr.bf16.mxu1 %v8663_v30  ;;  %v8687_v21 = vpack.c.bf16 %v2627_v0, %v2626_v43  ;;  %v2820_v0 = vld [vmem:[#allocation8 + $0x280] sm:$0xff] }
 0x23b   :  { %7379 = vmatmul.mubr.f32.gmra.mrb[20].mxu1 %v10449_v14 }
 0x23c   :  { %7381 = vmatprep.mubr.f32.mxu1 %v10452_v48  ;;  %8666 = vmatpush3.bf16.msra.mxu1 %v8663_v30  ;;  %v10479_v30 = vld [vmem:[#allocation2 + $0x7a] sm:$0xff] }
 0x23d   :  { %8668 = vmatprep.subr.bf16.mxu1 %v8667_v45 }
 0x23f   :  { %7382 = vmatmul.mubr.f32.gmra.mrb[22].mxu1 %v10455_v34 }
 0x240   :  { %7384 = vmatprep.mubr.f32.mxu1 %v10458_v47  ;;  %8670 = vmatpush3.bf16.msra.mxu1 %v8667_v45  ;;  %v8691_v45 = vpack.c.bf16 %v2629_v20, %v2628_v31  ;;  %v2822_v20 = vld [vmem:[#allocation8 + $0x290] sm:$0xff] }
 0x241   :  { %8672 = vmatprep.subr.bf16.mxu1 %v8671_v27 }
 0x243   :  { %7385 = vmatmul.mubr.f32.gmra.mrb[24].mxu1 %v10461_v3 }
 0x244   :  { %7387 = vmatprep.mubr.f32.mxu1 %v10464_v40  ;;  %8674 = vmatpush3.bf16.msra.mxu1 %v8671_v27  ;;  %v8695_v27 = vpack.c.bf16 %v2631_v53, %v2630_v24  ;;  %v2824_v53 = vld [vmem:[#allocation8 + $0x2a0] sm:$0xff] }
 0x245   :  { %8676 = vmatprep.subr.bf16.mxu1 %v8675_v54 }
 0x247   :  { %7388 = vmatmul.mubr.f32.gmra.mrb[26].mxu1 %v10467_v9 }
 0x248   :  { %7390 = vmatprep.mubr.f32.mxu1 %v10470_v15  ;;  %8678 = vmatpush3.bf16.msra.mxu1 %v8675_v54  ;;  %v2634_v54 = vld [vmem:[#allocation8 + $0x240] sm:$0xff] }
 0x249   :  { %8680 = vmatprep.subr.bf16.mxu1 %v8679_v41 }
 0x24b   :  { %7391 = vmatmul.mubr.f32.gmra.mrb[28].mxu1 %v10473_v46 }
 0x24c   :  { %7393 = vmatprep.mubr.f32.mxu1 %v10476_v63  ;;  %8682 = vmatpush3.bf16.msra.mxu1 %v8679_v41  ;;  %v2638_v41 = vld [vmem:[#allocation8 + $0x260] sm:$0xff] }
 0x24d   :  { %8684 = vmatprep.subr.bf16.mxu1 %v8683_v18 }
 0x24f   :  { %7394 = vmatmul.mubr.f32.gmra.mrb[30].mxu1 %v10479_v30 }
 0x250   :  { %8686 = vmatpush3.bf16.msra.mxu1 %v8683_v18  ;;  %7428 = vmatprep.mubr.f32.mxu1 %v10306_v17  ;;  %v8699_v17 = vpack.c.bf16 %v2633_v39, %v2632_v56  ;;  %v2641_v18 = vld [vmem:[#allocation8 + $0x278] sm:$0xff]  ;;  %v2826_v39 = vld [vmem:[#allocation8 + $0x2b0] sm:$0xff] }
 0x251   :  { %8688 = vmatprep.subr.bf16.mxu1 %v8687_v21  ;;  %v8715_v43 = vpack.c.bf16 %v2641_v18, %v2640_v4  ;;  %v3015_v4 = vld [vmem:[#allocation8 + $0x308] sm:$0xff]  ;;  %v10513_v18 = vld [vmem:[#allocation2 + $0x81] sm:$0xff] }
 0x253   :  { %7429 = vmatmul.mubr.f32.vlgmr.msra.gmra.mrb[16].mxu1 %v10316_v59  ;;  %v2636_v59 = vld [vmem:[#allocation8 + $0x250] sm:$0xff] }
 0x254   :  { %7431 = vmatprep.mubr.f32.mxu1 %v10314_v62  ;;  %8690 = vmatpush3.bf16.msra.mxu1 %v8687_v21  ;;  %v8703_v62 = vpack.c.bf16 %v2635_v7, %v2634_v54  ;;  %v2821_v21 = vld [vmem:[#allocation8 + $0x288] sm:$0xff]  ;;  %v2831_v7 = vld [vmem:[#allocation8 + $0x2d8] sm:$0xff] }
 0x255   :  { %8692 = vmatprep.subr.bf16.mxu1 %v8691_v45  ;;  %v8719_v31 = vpack.c.bf16 %v2821_v21, %v2820_v0  ;;  %v2829_v54 = vld [vmem:[#allocation8 + $0x2c8] sm:$0xff]  ;;  %v3016_v0 = vld [vmem:[#allocation8 + $0x310] sm:$0xff]  ;;  %v3017_v21 = vld [vmem:[#allocation8 + $0x318] sm:$0xff] }
 0x257   :  { %7432 = vmatmul.mubr.f32.gmra.mrb[18].mxu1 %v10324_v50 }
 0x258   :  { %7434 = vmatprep.mubr.f32.mxu1 %v10322_v26  ;;  %8694 = vmatpush3.bf16.msra.mxu1 %v8691_v45  ;;  %v8707_v26 = vpack.c.bf16 %v2637_v6, %v2636_v59  ;;  %v2823_v45 = vld [vmem:[#allocation8 + $0x298] sm:$0xff]  ;;  %v2833_v59 = vld [vmem:[#allocation8 + $0x2e8] sm:$0xff] }
 0x259   :  { %8696 = vmatprep.subr.bf16.mxu1 %v8695_v27  ;;  %v8723_v24 = vpack.c.bf16 %v2823_v45, %v2822_v20  ;;  %v3688_v20 = vld [vmem:[#allocation10 + $0x88] sm:$0xff]  ;;  %v3689_v45 = vld [vmem:[#allocation10 + $0x90] sm:$0xff] }
 0x25b   :  { %7435 = vmatmul.mubr.f32.gmra.mrb[20].mxu1 %v10332_v36 }
 0x25c   :  { %7437 = vmatprep.mubr.f32.mxu1 %v10330_v25  ;;  %8698 = vmatpush3.bf16.msra.mxu1 %v8695_v27  ;;  %v8711_v25 = vpack.c.bf16 %v2639_v42, %v2638_v41  ;;  %v2825_v27 = vld [vmem:[#allocation8 + $0x2a8] sm:$0xff]  ;;  %v2835_v41 = vld [vmem:[#allocation8 + $0x2f8] sm:$0xff] }
 0x25d   :  { %8700 = vmatprep.subr.bf16.mxu1 %v8699_v17  ;;  %v8727_v56 = vpack.c.bf16 %v2825_v27, %v2824_v53  ;;  %v3690_v53 = vld [vmem:[#allocation10 + $0x98] sm:$0xff]  ;;  %v8755_v27 = vpack.c.bf16 %v3017_v21, %v3016_v0  ;;  %v3027_v0 = vld [vmem:[#allocation8 + $0x368] sm:$0xff] }
 0x25f   :  { %7438 = vmatmul.mubr.f32.gmra.mrb[22].mxu1 %v10348_v12 }
 0x260   :  { %7440 = vmatprep.mubr.f32.mxu1 %v10343_v2  ;;  %8702 = vmatpush3.bf16.msra.mxu1 %v8699_v17  ;;  %v2827_v17 = vld [vmem:[#allocation8 + $0x2b8] sm:$0xff] }
 0x261   :  { %8704 = vmatprep.subr.bf16.mxu1 %v8703_v62 }
 0x263   :  { %7441 = vmatmul.mubr.f32.gmra.mrb[24].mxu1 %v10364_v51 }
 0x264   :  { %7443 = vmatprep.mubr.f32.mxu1 %v10360_v32  ;;  %8706 = vmatpush3.bf16.msra.mxu1 %v8703_v62  ;;  %v2832_v62 = vld [vmem:[#allocation8 + $0x2e0] sm:$0xff] }
 0x265   :  { %8708 = vmatprep.subr.bf16.mxu1 %v8707_v26  ;;  %v8743_v6 = vpack.c.bf16 %v2833_v59, %v2832_v62 }
 0x267   :  { %7444 = vmatmul.mubr.f32.gmra.mrb[26].mxu1 %v10380_v16 }
 0x268   :  { %7446 = vmatprep.mubr.f32.mxu1 %v10376_v33  ;;  %8710 = vmatpush3.bf16.msra.mxu1 %v8707_v26  ;;  %v2834_v26 = vld [vmem:[#allocation8 + $0x2f0] sm:$0xff] }
 0x269   :  { %8712 = vmatprep.subr.bf16.mxu1 %v8711_v25  ;;  %v8747_v42 = vpack.c.bf16 %v2835_v41, %v2834_v26  ;;  %v3023_v26 = vld [vmem:[#allocation8 + $0x348] sm:$0xff] }
 0x26b   :  { %7447 = vmatmul.mubr.f32.gmra.mrb[28].mxu1 %v10395_v49 }
 0x26c   :  { %7449 = vmatprep.mubr.f32.mxu1 %v10392_v5  ;;  %8714 = vmatpush3.bf16.msra.mxu1 %v8711_v25  ;;  %v3014_v25 = vld [vmem:[#allocation8 + $0x300] sm:$0xff] }
 0x26d   :  { %8716 = vmatprep.subr.bf16.mxu1 %v8715_v43 }
 0x26f   :  { %7450 = vmatmul.mubr.f32.gmra.mrb[30].mxu1 %v9745_v58  ;;  %v8731_v58 = vpack.c.bf16 %v2827_v17, %v2826_v39  ;;  %v8851_v39 = vpack.c.bf16 %v3690_v53, %v3689_v45  ;;  %v3019_v17 = vld [vmem:[#allocation8 + $0x328] sm:$0xff] }
 0x270   :  { %8718 = vmatpush3.bf16.msra.mxu1 %v8715_v43  ;;  %7484 = vmatprep.mubr.f32.mxu1 %v10336_v11  ;;  %v2828_v11 = vld [vmem:[#allocation8 + $0x2c0] sm:$0xff]  ;;  %v8751_v43 = vpack.c.bf16 %v3015_v4, %v3014_v25  ;;  %v3025_v25 = vld [vmem:[#allocation8 + $0x358] sm:$0xff]  ;;  %v3209_v53 = vld [vmem:[#allocation8 + $0x388] sm:$0xff] }
 0x271   :  { %8720 = vmatprep.subr.bf16.mxu1 %v8719_v31 }
 0x273   :  { %7485 = vmatmul.mubr.f32.vlgmr.msra.gmra.mrb[16].mxu1 %v10338_v55  ;;  %v8735_v55 = vpack.c.bf16 %v2829_v54, %v2828_v11  ;;  %v3692_v11 = vld [vmem:[#allocation10 + $0xa8] sm:$0xff] }
 0x274   :  { %7487 = vmatprep.mubr.f32.mxu1 %v10353_v38  ;;  %8722 = vmatpush3.bf16.msra.mxu1 %v8719_v31  ;;  %v2830_v38 = vld [vmem:[#allocation8 + $0x2d0] sm:$0xff]  ;;  %v3687_v31 = vld [vmem:[#allocation10 + $0x80] sm:$0xff] }
 0x275   :  { %8724 = vmatprep.subr.bf16.mxu1 %v8723_v24 }
 0x277   :  { %7488 = vmatmul.mubr.f32.gmra.mrb[18].mxu1 %v10355_v52  ;;  %v8739_v52 = vpack.c.bf16 %v2831_v7, %v2830_v38  ;;  %v3021_v38 = vld [vmem:[#allocation8 + $0x338] sm:$0xff]  ;;  %v3693_v7 = vld [vmem:[#allocation10 + $0xb0] sm:$0xff] }
 0x278   :  { %7490 = vmatprep.mubr.f32.mxu1 %v10369_v37  ;;  %8726 = vmatpush3.bf16.msra.mxu1 %v8723_v24  ;;  %v8847_v24 = vpack.c.bf16 %v3688_v20, %v3687_v31  ;;  %v3028_v31 = vld [vmem:[#allocation8 + $0x370] sm:$0xff]  ;;  %v3029_v20 = vld [vmem:[#allocation8 + $0x378] sm:$0xff] }
 0x279   :  { %8728 = vmatprep.subr.bf16.mxu1 %v8727_v56  ;;  %v8779_v45 = vpack.c.bf16 %v3029_v20, %v3028_v31  ;;  %v3403_v31 = vld [vmem:[#allocation8 + $0x408] sm:$0xff]  ;;  %v3404_v20 = vld [vmem:[#allocation8 + $0x410] sm:$0xff] }
 0x27a   :  { %8848 = vmatprep.subr.bf16.mxu0 %v8847_v24 }
 0x27b   :  { %7491 = vmatmul.mubr.f32.gmra.mrb[20].mxu1 %v10371_v44  ;;  %8850 = vmatpush3.bf16.msra.mxu0 %v8847_v24  ;;  %v3208_v24 = vld [vmem:[#allocation8 + $0x380] sm:$0xff] }
 0x27c   :  { %7493 = vmatprep.mubr.f32.mxu1 %v10385_v57  ;;  %8730 = vmatpush3.bf16.msra.mxu1 %v8727_v56  ;;  %v3018_v56 = vld [vmem:[#allocation8 + $0x320] sm:$0xff] }
 0x27d   :  { %8732 = vmatprep.subr.bf16.mxu1 %v8731_v58  ;;  %v8759_v54 = vpack.c.bf16 %v3019_v17, %v3018_v56  ;;  %8852 = vmatprep.subr.bf16.mxu0 %v8851_v39  ;;  %v8783_v56 = vpack.c.bf16 %v3209_v53, %v3208_v24  ;;  %v3211_v17 = vld [vmem:[#allocation8 + $0x398] sm:$0xff]  ;;  %v3406_v53 = vld [vmem:[#allocation8 + $0x420] sm:$0xff] }
 0x27e   :  { %v3192_v24 = vld [vmem:[#allocation2 + $0x19] sm:$0xff] }
 0x27f   :  { %7494 = vmatmul.mubr.f32.gmra.mrb[22].mxu1 %v10387_v60  ;;  %8854 = vmatpush3.bf16.msra.mxu0 %v8851_v39  ;;  %v3210_v39 = vld [vmem:[#allocation8 + $0x390] sm:$0xff] }
 0x280   :  { %7496 = vmatprep.mubr.f32.mxu1 %v10398_v28  ;;  %8734 = vmatpush3.bf16.msra.mxu1 %v8731_v58  ;;  %v3691_v58 = vld [vmem:[#allocation10 + $0xa0] sm:$0xff] }
 0x281   :  { %8736 = vmatprep.subr.bf16.mxu1 %v8735_v55 }
 0x283   :  { %7497 = vmatmul.mubr.f32.gmra.mrb[24].mxu1 %v10400_v35 }
 0x284   :  { %7499 = vmatprep.mubr.f32.mxu1 %v10405_v1  ;;  %8738 = vmatpush3.bf16.msra.mxu1 %v8735_v55  ;;  %v3020_v55 = vld [vmem:[#allocation8 + $0x330] sm:$0xff] }
 0x285   :  { %8740 = vmatprep.subr.bf16.mxu1 %v8739_v52  ;;  %v8763_v62 = vpack.c.bf16 %v3021_v38, %v3020_v55  ;;  %v3212_v55 = vld [vmem:[#allocation8 + $0x3a0] sm:$0xff] }
 0x287   :  { %7500 = vmatmul.mubr.f32.gmra.mrb[26].mxu1 %v10407_v10 }
 0x288   :  { %7502 = vmatprep.mubr.f32.mxu1 %v10411_v8  ;;  %8742 = vmatpush3.bf16.msra.mxu1 %v8739_v52  ;;  %v3694_v52 = vld [vmem:[#allocation10 + $0xb8] sm:$0xff] }
 0x289   :  { %8744 = vmatprep.subr.bf16.mxu1 %v8743_v6  ;;  %v8859_v59 = vpack.c.bf16 %v3694_v52, %v3693_v7  ;;  %v3000_v7 = vld [vmem:[#allocation2 + $0x28] sm:$0xff]  ;;  %v3214_v52 = vld [vmem:[#allocation8 + $0x3b0] sm:$0xff] }
 0x28b   :  { %7503 = vmatmul.mubr.f32.gmra.mrb[28].mxu1 %v10413_v23 }
 0x28c   :  { %7505 = vmatprep.mubr.f32.mxu1 %v10417_v22  ;;  %8746 = vmatpush3.bf16.msra.mxu1 %v8743_v6  ;;  %v3022_v6 = vld [vmem:[#allocation8 + $0x340] sm:$0xff] }
 0x28d   :  { %8748 = vmatprep.subr.bf16.mxu1 %v8747_v42  ;;  %v8767_v41 = vpack.c.bf16 %v3023_v26, %v3022_v6  ;;  %v3002_v6 = vld [vmem:[#allocation2 + $0x38] sm:$0xff]  ;;  %v3216_v26 = vld [vmem:[#allocation8 + $0x3c0] sm:$0xff] }
 0x28f   :  { %7506 = vmatmul.mubr.f32.gmra.mrb[30].mxu1 %v10513_v18 }
 0x290   :  { %8750 = vmatpush3.bf16.msra.mxu1 %v8747_v42  ;;  %7540 = vmatprep.mubr.f32.mxu1 %v10437_v13  ;;  %v8855_v13 = vpack.c.bf16 %v3692_v11, %v3691_v58  ;;  %v3024_v42 = vld [vmem:[#allocation8 + $0x350] sm:$0xff]  ;;  %v2997_v58 = vld [vmem:[#allocation2 + $0x10] sm:$0xff]  ;;  %v8787_v11 = vpack.c.bf16 %v3211_v17, %v3210_v39 }
 0x291   :  { %8752 = vmatprep.subr.bf16.mxu1 %v8751_v43  ;;  %v8771_v4 = vpack.c.bf16 %v3025_v25, %v3024_v42  ;;  %v3218_v42 = vld [vmem:[#allocation8 + $0x3d0] sm:$0xff]  ;;  %v3219_v25 = vld [vmem:[#allocation8 + $0x3d8] sm:$0xff] }
 0x292   :  { %8856 = vmatprep.subr.bf16.mxu0 %v8855_v13  ;;  %v3408_v17 = vld [vmem:[#allocation8 + $0x430] sm:$0xff] }
 0x293   :  { %7541 = vmatmul.mubr.f32.vlgmr.msra.gmra.mrb[16].mxu1 %v10440_v19  ;;  %8858 = vmatpush3.bf16.msra.mxu0 %v8855_v13  ;;  %v3213_v13 = vld [vmem:[#allocation8 + $0x3a8] sm:$0xff] }
 0x294   :  { %7543 = vmatprep.mubr.f32.mxu1 %v10443_v29  ;;  %8754 = vmatpush3.bf16.msra.mxu1 %v8751_v43  ;;  %v3026_v43 = vld [vmem:[#allocation8 + $0x360] sm:$0xff]  ;;  %v8791_v38 = vpack.c.bf16 %v3213_v13, %v3212_v55  ;;  %v3411_v55 = vld [vmem:[#allocation8 + $0x448] sm:$0xff] }
 0x295   :  { %8756 = vmatprep.subr.bf16.mxu1 %v8755_v27  ;;  %8860 = vmatprep.subr.bf16.mxu0 %v8859_v59  ;;  %v8775_v21 = vpack.c.bf16 %v3027_v0, %v3026_v43  ;;  %v3221_v43 = vld [vmem:[#allocation8 + $0x3e8] sm:$0xff]  ;;  %v3222_v0 = vld [vmem:[#allocation8 + $0x3f0] sm:$0xff] }
 0x297   :  { %7544 = vmatmul.mubr.f32.gmra.mrb[18].mxu1 %v10446_v61  ;;  %8862 = vmatpush3.bf16.msra.mxu0 %v8859_v59 }
 0x298   :  { %7546 = vmatprep.mubr.f32.mxu1 %v10449_v14  ;;  %8758 = vmatpush3.bf16.msra.mxu1 %v8755_v27  ;;  %v10531_v27 = vld [vmem:[#allocation2 + $0x82] sm:$0xff] }
 0x299   :  { %8760 = vmatprep.subr.bf16.mxu1 %v8759_v54 }
 0x29b   :  { %7547 = vmatmul.mubr.f32.gmra.mrb[20].mxu1 %v10452_v48 }
 0x29c   :  { %7549 = vmatprep.mubr.f32.mxu1 %v10455_v34  ;;  %8762 = vmatpush3.bf16.msra.mxu1 %v8759_v54  ;;  %v2998_v54 = vld [vmem:[#allocation2 + $0x18] sm:$0xff] }
 0x29d   :  { %8764 = vmatprep.subr.bf16.mxu1 %v8763_v62 }
 0x29f   :  { %7550 = vmatmul.mubr.f32.gmra.mrb[22].mxu1 %v10458_v47 }
 0x2a0   :  { %7552 = vmatprep.mubr.f32.mxu1 %v10461_v3  ;;  %8766 = vmatpush3.bf16.msra.mxu1 %v8763_v62  ;;  %v3215_v62 = vld [vmem:[#allocation8 + $0x3b8] sm:$0xff] }
 0x2a1   :  { %8768 = vmatprep.subr.bf16.mxu1 %v8767_v41  ;;  %v8795_v59 = vpack.c.bf16 %v3215_v62, %v3214_v52  ;;  %v3415_v52 = vld [vmem:[#allocation8 + $0x468] sm:$0xff]  ;;  %v3417_v62 = vld [vmem:[#allocation8 + $0x478] sm:$0xff] }
 0x2a3   :  { %7553 = vmatmul.mubr.f32.gmra.mrb[24].mxu1 %v10464_v40 }
 0x2a4   :  { %7555 = vmatprep.mubr.f32.mxu1 %v10467_v9  ;;  %8770 = vmatpush3.bf16.msra.mxu1 %v8767_v41  ;;  %v3217_v41 = vld [vmem:[#allocation8 + $0x3c8] sm:$0xff] }
 0x2a5   :  { %8772 = vmatprep.subr.bf16.mxu1 %v8771_v4 }
 0x2a7   :  { %7556 = vmatmul.mubr.f32.gmra.mrb[26].mxu1 %v10470_v15 }
 0x2a8   :  { %7558 = vmatprep.mubr.f32.mxu1 %v10473_v46  ;;  %8774 = vmatpush3.bf16.msra.mxu1 %v8771_v4  ;;  %v3220_v4 = vld [vmem:[#allocation8 + $0x3e0] sm:$0xff] }
 0x2a9   :  { %8776 = vmatprep.subr.bf16.mxu1 %v8775_v21 }
 0x2ab   :  { %7559 = vmatmul.mubr.f32.gmra.mrb[28].mxu1 %v10476_v63 }
 0x2ac   :  { %7561 = vmatprep.mubr.f32.mxu1 %v10479_v30  ;;  %8778 = vmatpush3.bf16.msra.mxu1 %v8775_v21  ;;  %v3223_v21 = vld [vmem:[#allocation8 + $0x3f8] sm:$0xff] }
 0x2ad   :  { %8780 = vmatprep.subr.bf16.mxu1 %v8779_v45 }
 0x2af   :  { %7562 = vmatmul.mubr.f32.gmra.mrb[30].mxu1 %v10531_v27 }
 0x2b0   :  { %8782 = vmatpush3.bf16.msra.mxu1 %v8779_v45  ;;  %7596 = vmatprep.mubr.f32.mxu1 %v2997_v58  ;;  %v3405_v45 = vld [vmem:[#allocation8 + $0x418] sm:$0xff] }
 0x2b1   :  { %8784 = vmatprep.subr.bf16.mxu1 %v8783_v56  ;;  %v3409_v58 = vld [vmem:[#allocation8 + $0x438] sm:$0xff] }
 0x2b3   :  { %7597 = vmatmul.mubr.f32.vlgmr.msra.gmra.mrb[16].mxu1 %v2998_v54  ;;  %v3410_v54 = vld [vmem:[#allocation8 + $0x440] sm:$0xff] }
 0x2b4   :  { %7599 = vmatprep.mubr.f32.mxu1 %v10324_v50  ;;  %8786 = vmatpush3.bf16.msra.mxu1 %v8783_v56  ;;  %v8799_v50 = vpack.c.bf16 %v3217_v41, %v3216_v26  ;;  %v3407_v56 = vld [vmem:[#allocation8 + $0x428] sm:$0xff]  ;;  %v8831_v13 = vpack.c.bf16 %v3411_v55, %v3410_v54 }
 0x2b5   :  { %8788 = vmatprep.subr.bf16.mxu1 %v8787_v11  ;;  %v8823_v39 = vpack.c.bf16 %v3407_v56, %v3406_v53  ;;  %v3659_v55 = vld [vmem:[#allocation10 + $0x28] sm:$0xff] }
 0x2b7   :  { %7600 = vmatmul.mubr.f32.gmra.mrb[18].mxu1 %v3000_v7  ;;  %v3413_v7 = vld [vmem:[#allocation8 + $0x458] sm:$0xff] }
 0x2b8   :  { %7602 = vmatprep.mubr.f32.mxu1 %v10332_v36  ;;  %8790 = vmatpush3.bf16.msra.mxu1 %v8787_v11  ;;  %v8803_v36 = vpack.c.bf16 %v3219_v25, %v3218_v42  ;;  %v8827_v11 = vpack.c.bf16 %v3409_v58, %v3408_v17 }
 0x2b9   :  { %8792 = vmatprep.subr.bf16.mxu1 %v8791_v38 }
 0x2bb   :  { %7603 = vmatmul.mubr.f32.gmra.mrb[20].mxu1 %v3002_v6 }
 0x2bc   :  { %7605 = vmatprep.mubr.f32.mxu1 %v10348_v12  ;;  %8794 = vmatpush3.bf16.msra.mxu1 %v8791_v38  ;;  %v8807_v12 = vpack.c.bf16 %v3221_v43, %v3220_v4  ;;  %v3412_v38 = vld [vmem:[#allocation8 + $0x450] sm:$0xff] }
 0x2bd   :  { %8796 = vmatprep.subr.bf16.mxu1 %v8795_v59 }
 0x2bf   :  { %7606 = vmatmul.mubr.f32.gmra.mrb[22].mxu1 %v10343_v2  ;;  %v8811_v2 = vpack.c.bf16 %v3223_v21, %v3222_v0 }
 0x2c0   :  { %7608 = vmatprep.mubr.f32.mxu1 %v10364_v51  ;;  %8798 = vmatpush3.bf16.msra.mxu1 %v8795_v59  ;;  %v3402_v51 = vld [vmem:[#allocation8 + $0x400] sm:$0xff] }
 0x2c1   :  { %8800 = vmatprep.subr.bf16.mxu1 %v8799_v50 }
 0x2c3   :  { %7609 = vmatmul.mubr.f32.gmra.mrb[24].mxu1 %v10360_v32  ;;  %v10544_v32 = vld [vmem:[#allocation2 + $0x80] sm:$0xff] }
 0x2c4   :  { %7611 = vmatprep.mubr.f32.mxu1 %v10380_v16  ;;  %8802 = vmatpush3.bf16.msra.mxu1 %v8799_v50  ;;  %v8815_v16 = vpack.c.bf16 %v3403_v31, %v3402_v51 }
 0x2c5   :  { %8804 = vmatprep.subr.bf16.mxu1 %v8803_v36 }
 0x2c7   :  { %7612 = vmatmul.mubr.f32.gmra.mrb[26].mxu1 %v10376_v33  ;;  %v3191_v33 = vld [vmem:[#allocation2 + $0x11] sm:$0xff] }
 0x2c8   :  { %7614 = vmatprep.mubr.f32.mxu1 %v10395_v49  ;;  %8806 = vmatpush3.bf16.msra.mxu1 %v8803_v36  ;;  %v8819_v49 = vpack.c.bf16 %v3405_v45, %v3404_v20  ;;  %v3656_v45 = vld [vmem:[#allocation10 + $0x10] sm:$0xff] }
 0x2c9   :  { %8808 = vmatprep.subr.bf16.mxu1 %v8807_v12 }
 0x2cb   :  { %7615 = vmatmul.mubr.f32.gmra.mrb[28].mxu1 %v10392_v5  ;;  %v3193_v5 = vld [vmem:[#allocation2 + $0x21] sm:$0xff] }
 0x2cc   :  { %8810 = vmatpush3.bf16.msra.mxu1 %v8807_v12  ;;  %7617 = vmatprep.mubr.f32.mxu1 %v10544_v32 }
 0x2cd   :  { %8812 = vmatprep.subr.bf16.mxu1 %v8811_v2 }
 0x2cf   :  { %7618 = vmatmul.mubr.f32.gmra.mrb[30].mxu1 %v10544_v32 }
 0x2d0   :  { %8814 = vmatpush3.bf16.msra.mxu1 %v8811_v2  ;;  %7652 = vmatprep.mubr.f32.mxu1 %v3191_v33  ;;  %v3657_v33 = vld [vmem:[#allocation10 + $0x18] sm:$0xff] }
 0x2d1   :  { %8816 = vmatprep.subr.bf16.mxu1 %v8815_v16 }
 0x2d3   :  { %7653 = vmatmul.mubr.f32.vlgmr.msra.gmra.mrb[16].mxu1 %v3192_v24 }
 0x2d4   :  { %7655 = vmatprep.mubr.f32.mxu1 %v3193_v5  ;;  %8818 = vmatpush3.bf16.msra.mxu1 %v8815_v16  ;;  %v8883_v5 = vpack.c.bf16 %v3657_v33, %v3656_v45 }
 0x2d5   :  { %8820 = vmatprep.subr.bf16.mxu1 %v8819_v49 }
 0x2d7   :  { %7656 = vmatmul.mubr.f32.gmra.mrb[18].mxu1 %v10369_v37  ;;  %v8835_v37 = vpack.c.bf16 %v3413_v7, %v3412_v38 }
 0x2d8   :  { %7658 = vmatprep.mubr.f32.mxu1 %v10371_v44  ;;  %8822 = vmatpush3.bf16.msra.mxu1 %v8819_v49  ;;  %v3414_v44 = vld [vmem:[#allocation8 + $0x460] sm:$0xff] }
 0x2d9   :  { %8824 = vmatprep.subr.bf16.mxu1 %v8823_v39 }
 0x2db   :  { %7659 = vmatmul.mubr.f32.gmra.mrb[20].mxu1 %v10385_v57  ;;  %v8839_v57 = vpack.c.bf16 %v3415_v52, %v3414_v44  ;;  %v3660_v52 = vld [vmem:[#allocation10 + $0x30] sm:$0xff] }
 0x2dc   :  { %7661 = vmatprep.mubr.f32.mxu1 %v10387_v60  ;;  %8826 = vmatpush3.bf16.msra.mxu1 %v8823_v39  ;;  %v3416_v60 = vld [vmem:[#allocation8 + $0x470] sm:$0xff]  ;;  %v3658_v39 = vld [vmem:[#allocation10 + $0x20] sm:$0xff] }
 0x2dd   :  { %8828 = vmatprep.subr.bf16.mxu1 %v8827_v11  ;;  %v8887_v44 = vpack.c.bf16 %v3659_v55, %v3658_v39 }
 0x2df   :  { %7662 = vmatmul.mubr.f32.gmra.mrb[22].mxu1 %v10398_v28  ;;  %v8843_v28 = vpack.c.bf16 %v3417_v62, %v3416_v60 }
 0x2e0   :  { %7664 = vmatprep.mubr.f32.mxu1 %v10400_v35  ;;  %8830 = vmatpush3.bf16.msra.mxu1 %v8827_v11  ;;  %v3206_v35 = vld [vmem:[#allocation2 + $0x89] sm:$0xff] }
 0x2e1   :  { %8832 = vmatprep.subr.bf16.mxu1 %v8831_v13 }
 0x2e3   :  { %7665 = vmatmul.mubr.f32.gmra.mrb[24].mxu1 %v10405_v1  ;;  %v3400_v1 = vld [vmem:[#allocation2 + $0x8a] sm:$0xff] }
 0x2e4   :  { %7667 = vmatprep.mubr.f32.mxu1 %v10407_v10  ;;  %8834 = vmatpush3.bf16.msra.mxu1 %v8831_v13  ;;  %v3695_v10 = vld [vmem:[#allocation10 + $0xc0] sm:$0xff] }
 0x2e5   :  { %8836 = vmatprep.subr.bf16.mxu1 %v8835_v37 }
 0x2e7   :  { %7668 = vmatmul.mubr.f32.gmra.mrb[26].mxu1 %v10411_v8  ;;  %v3696_v8 = vld [vmem:[#allocation10 + $0xc8] sm:$0xff] }
 0x2e8   :  { %7670 = vmatprep.mubr.f32.mxu1 %v10413_v23  ;;  %8838 = vmatpush3.bf16.msra.mxu1 %v8835_v37  ;;  %v8863_v23 = vpack.c.bf16 %v3696_v8, %v3695_v10 }
 0x2e9   :  { %8840 = vmatprep.subr.bf16.mxu1 %v8839_v57 }
 0x2ea   :  { %8864 = vmatprep.subr.bf16.mxu0 %v8863_v23 }
 0x2eb   :  { %7671 = vmatmul.mubr.f32.gmra.mrb[28].mxu1 %v10417_v22  ;;  %8866 = vmatpush3.bf16.msra.mxu0 %v8863_v23  ;;  %v3697_v22 = vld [vmem:[#allocation10 + $0xd0] sm:$0xff] }
 0x2ec   :  { %8842 = vmatpush3.bf16.msra.mxu1 %v8839_v57  ;;  %7673 = vmatprep.mubr.f32.mxu1 %v10513_v18 }
 0x2ed   :  { %8844 = vmatprep.subr.bf16.mxu1 %v8843_v28 }
 0x2ef   :  { %7674 = vmatmul.mubr.f32.gmra.mrb[30].mxu1 %v3206_v35  ;;  %v3661_v35 = vld [vmem:[#allocation10 + $0x38] sm:$0xff] }
 0x2f0   :  { %8846 = vmatpush3.bf16.msra.mxu1 %v8843_v28  ;;  %7708 = vmatprep.mubr.f32.mxu1 %v10440_v19  ;;  %v3698_v19 = vld [vmem:[#allocation10 + $0xd8] sm:$0xff] }
 0x2f3   :  { %7709 = vmatmul.mubr.f32.vlgmr.msra.gmra.mrb[16].mxu1 %v10443_v29  ;;  %v8867_v29 = vpack.c.bf16 %v3698_v19, %v3697_v22  ;;  %v8891_v22 = vpack.c.bf16 %v3661_v35, %v3660_v52  ;;  %v3662_v19 = vld [vmem:[#allocation10 + $0x40] sm:$0xff] }
 0x2f4   :  { %7711 = vmatprep.mubr.f32.mxu1 %v10446_v61  ;;  %v3699_v61 = vld [vmem:[#allocation10 + $0xe0] sm:$0xff] }
 0x2f5   :  { %8868 = vmatprep.subr.bf16.mxu0 %v8867_v29 }
 0x2f6   :  { %8870 = vmatpush3.bf16.msra.mxu0 %v8867_v29 }
 0x2f7   :  { %7712 = vmatmul.mubr.f32.gmra.mrb[18].mxu1 %v10449_v14  ;;  %v3700_v14 = vld [vmem:[#allocation10 + $0xe8] sm:$0xff] }
 0x2f8   :  { %7714 = vmatprep.mubr.f32.mxu1 %v10452_v48  ;;  %v8871_v48 = vpack.c.bf16 %v3700_v14, %v3699_v61 }
 0x2fa   :  { %8872 = vmatprep.subr.bf16.mxu0 %v8871_v48 }
 0x2fb   :  { %7715 = vmatmul.mubr.f32.gmra.mrb[20].mxu1 %v10455_v34  ;;  %8874 = vmatpush3.bf16.msra.mxu0 %v8871_v48  ;;  %v3701_v34 = vld [vmem:[#allocation10 + $0xf0] sm:$0xff] }
 0x2fc   :  { %7717 = vmatprep.mubr.f32.mxu1 %v10458_v47  ;;  %v3702_v47 = vld [vmem:[#allocation10 + $0xf8] sm:$0xff] }
 0x2ff   :  { %7718 = vmatmul.mubr.f32.gmra.mrb[22].mxu1 %v10461_v3  ;;  %v8875_v3 = vpack.c.bf16 %v3702_v47, %v3701_v34  ;;  %v3663_v34 = vld [vmem:[#allocation10 + $0x48] sm:$0xff] }
 0x300   :  { %7720 = vmatprep.mubr.f32.mxu1 %v10464_v40  ;;  %v3654_v40 = vld [vmem:[#allocation10] sm:$0xff] }
 0x301   :  { %8876 = vmatprep.subr.bf16.mxu0 %v8875_v3 }
 0x302   :  { %8878 = vmatpush3.bf16.msra.mxu0 %v8875_v3 }
 0x303   :  { %7721 = vmatmul.mubr.f32.gmra.mrb[24].mxu1 %v10467_v9  ;;  %v3655_v9 = vld [vmem:[#allocation10 + $0x8] sm:$0xff] }
 0x304   :  { %7723 = vmatprep.mubr.f32.mxu1 %v10470_v15  ;;  %v8879_v15 = vpack.c.bf16 %v3655_v9, %v3654_v40 }
 0x306   :  { %8880 = vmatprep.subr.bf16.mxu0 %v8879_v15 }
 0x307   :  { %7724 = vmatmul.mubr.f32.gmra.mrb[26].mxu1 %v10473_v46  ;;  %v10578_v46 = vld [vmem:[%s10944_s4] ss:$0 sm:$0xff] }
 0x308   :  { %7726 = vmatprep.mubr.f32.mxu1 %v10476_v63 }
 0x30b   :  { %7727 = vmatmul.mubr.f32.gmra.mrb[28].mxu1 %v10479_v30 }
 0x30c   :  { %7729 = vmatprep.mubr.f32.mxu1 %v10531_v27 }
 0x30f   :  { %7730 = vmatmul.mubr.f32.gmra.mrb[30].mxu1 %v3400_v1 }
 0x3c6   :  { %v7710_v63 = vpop.f32.mrb[16].mxu1 }
 0x3c7   :  { %v3587_v30 = vadd.f32 %v7710_v63, %v10578_v46  ;;  %v3484_v18 = vpop.f32.mrb[17].mxu1  ;;  %v3664_v63 = vld [vmem:[#allocation10 + $0x50] sm:$0xff] }
 0x3c8   :  { %v10582_v27 = vadd.f32 %v10578_v46, %v3484_v18 }
 0x3c9   :  { %v10584_v59 = vmax.f32 %v3587_v30, 0.0 }
 0x3ca   :  { %v3602_v6 = vmax.f32 %v10582_v27, 0.0  ;;  %v7713_v26 = vpop.f32.mrb[18].mxu1 }
 0x3cb   :  { %3619 = vst [vmem:[#allocation3 + $0x8] sm:$0xff] %v10584_v59  ;;  %v3589_v41 = vadd.f32 %v7713_v26, %v10578_v46  ;;  %v3494_v50 = vpop.f32.mrb[19].mxu1 }
 0x3cc   :  { %3618 = vst [vmem:[#allocation3] sm:$0xff] %v3602_v6  ;;  %v3588_v42 = vadd.f32 %v10578_v46, %v3494_v50  ;;  %v3665_v50 = vld [vmem:[#allocation10 + $0x58] sm:$0xff] }
 0x3cd   :  { %v10592_v25 = vmax.f32 %v3589_v41, 0.0 }
 0x3ce   :  { %v10594_v36 = vmax.f32 %v3588_v42, 0.0  ;;  %v7716_v4 = vpop.f32.mrb[20].mxu1 }
 0x3cf   :  { %3621 = vst [vmem:[#allocation3 + $0x18] sm:$0xff] %v10592_v25  ;;  %v3591_v43 = vadd.f32 %v7716_v4, %v10578_v46  ;;  %v3504_v12 = vpop.f32.mrb[21].mxu1 }
 0x3d0   :  { %3620 = vst [vmem:[#allocation3 + $0x10] sm:$0xff] %v10594_v36  ;;  %v3590_v0 = vadd.f32 %v10578_v46, %v3504_v12  ;;  %v8899_v12 = vpack.c.bf16 %v3665_v50, %v3664_v63  ;;  %v4024_v63 = vld [vmem:[#allocation10 + $0x170] sm:$0xff]  ;;  %v4204_v50 = vld [vmem:[#allocation10 + $0x180] sm:$0xff] }
 0x3d1   :  { %v10600_v21 = vmax.f32 %v3591_v43, 0.0 }
 0x3d2   :  { %v10602_v2 = vmax.f32 %v3590_v0, 0.0  ;;  %v7719_v51 = vpop.f32.mrb[22].mxu1  ;;  %v3666_v0 = vld [vmem:[#allocation10 + $0x60] sm:$0xff] }
 0x3d3   :  { %3623 = vst [vmem:[#allocation3 + $0x28] sm:$0xff] %v10600_v21  ;;  %v3593_v31 = vadd.f32 %v7719_v51, %v10578_v46  ;;  %v3514_v16 = vpop.f32.mrb[23].mxu1  ;;  %v3670_v20 = vld [vmem:[#allocation3 + $0x1] sm:$0xff] }
 0x3d4   :  { %3622 = vst [vmem:[#allocation3 + $0x20] sm:$0xff] %v10602_v2  ;;  %v3592_v49 = vadd.f32 %v10578_v46, %v3514_v16  ;;  %7764 = vmatprep.mubr.f32.mxu0 %v3670_v20  ;;  %v3667_v16 = vld [vmem:[#allocation10 + $0x68] sm:$0xff]  ;;  %v3668_v20 = vld [vmem:[#allocation10 + $0x70] sm:$0xff] }
 0x3d5   :  { %v10608_v24 = vmax.f32 %v3593_v31, 0.0 }
 0x3d6   :  { %v10610_v53 = vmax.f32 %v3592_v49, 0.0  ;;  %v7722_v56 = vpop.f32.mrb[24].mxu1  ;;  %v3669_v49 = vld [vmem:[#allocation10 + $0x78] sm:$0xff] }
 0x3d7   :  { %3625 = vst [vmem:[#allocation3 + $0x38] sm:$0xff] %v10608_v24  ;;  %v3595_v17 = vadd.f32 %v7722_v56, %v10578_v46  ;;  %v3524_v58 = vpop.f32.mrb[25].mxu1  ;;  %v10614_v11 = vld [vmem:[#allocation3 + $0x9] sm:$0xff]  ;;  %v10616_v54 = vld [vmem:[#allocation3 + $0x11] sm:$0xff]  ;;  %v8907_v56 = vpack.c.bf16 %v3669_v49, %v3668_v20 }
 0x3d8   :  { %3624 = vst [vmem:[#allocation3 + $0x30] sm:$0xff] %v10610_v53  ;;  %v3594_v13 = vadd.f32 %v10578_v46, %v3524_v58  ;;  %7765 = vmatmul.mubr.f32.vlgmr.msra.gmra.mrb[16].mxu0 %v10614_v11  ;;  %v4011_v58 = vld [vmem:[#allocation10 + $0x108] sm:$0xff] }
 0x3d9   :  { %v10621_v38 = vmax.f32 %v3595_v17, 0.0  ;;  %7767 = vmatprep.mubr.f32.mxu0 %v10616_v54  ;;  %8882 = vmatpush3.bf16.msra.mxu0 %v8879_v15  ;;  %v8895_v15 = vpack.c.bf16 %v3663_v34, %v3662_v19  ;;  %v10708_v49 = vld [vmem:[#allocation3 + $0xa] sm:$0xff] }
 0x3da   :  { %v10624_v7 = vmax.f32 %v3594_v13, 0.0  ;;  %v7725_v37 = vpop.f32.mrb[26].mxu1  ;;  %8884 = vmatprep.subr.bf16.mxu0 %v8883_v5 }
 0x3db   :  { %3627 = vst [vmem:[#allocation3 + $0x48] sm:$0xff] %v10621_v38  ;;  %v3597_v57 = vadd.f32 %v7725_v37, %v10578_v46  ;;  %v3534_v60 = vpop.f32.mrb[27].mxu1  ;;  %v10628_v62 = vld [vmem:[#allocation3 + $0x19] sm:$0xff]  ;;  %v10630_v28 = vld [vmem:[#allocation3 + $0x21] sm:$0xff] }
 0x3dc   :  { %3626 = vst [vmem:[#allocation3 + $0x40] sm:$0xff] %v10624_v7  ;;  %v3596_v1 = vadd.f32 %v10578_v46, %v3534_v60  ;;  %7768 = vmatmul.mubr.f32.gmra.mrb[18].mxu0 %v10628_v62  ;;  %v4012_v37 = vld [vmem:[#allocation10 + $0x110] sm:$0xff]  ;;  %v4015_v60 = vld [vmem:[#allocation10 + $0x128] sm:$0xff] }
 0x3dd   :  { %v10635_v10 = vmax.f32 %v3597_v57, 0.0  ;;  %7770 = vmatprep.mubr.f32.mxu0 %v10630_v28  ;;  %8886 = vmatpush3.bf16.msra.mxu0 %v8883_v5  ;;  %v4010_v5 = vld [vmem:[#allocation10 + $0x100] sm:$0xff] }
 0x3de   :  { %v10638_v8 = vmax.f32 %v3596_v1, 0.0  ;;  %v7728_v23 = vpop.f32.mrb[28].mxu1  ;;  %8888 = vmatprep.subr.bf16.mxu0 %v8887_v44  ;;  %v8911_v55 = vpack.c.bf16 %v4011_v58, %v4010_v5  ;;  %v4014_v57 = vld [vmem:[#allocation10 + $0x120] sm:$0xff]  ;;  %v4016_v1 = vld [vmem:[#allocation10 + $0x130] sm:$0xff]  ;;  %v4209_v5 = vld [vmem:[#allocation10 + $0x1a8] sm:$0xff] }
 0x3df   :  { %3629 = vst [vmem:[#allocation3 + $0x58] sm:$0xff] %v10635_v10  ;;  %v3599_v29 = vadd.f32 %v7728_v23, %v10578_v46  ;;  %v3544_v61 = vpop.f32.mrb[29].mxu1  ;;  %v10642_v14 = vld [vmem:[#allocation3 + $0x29] sm:$0xff]  ;;  %v10644_v48 = vld [vmem:[#allocation3 + $0x31] sm:$0xff]  ;;  %v8919_v35 = vpack.c.bf16 %v4015_v60, %v4014_v57  ;;  %v4017_v23 = vld [vmem:[#allocation10 + $0x138] sm:$0xff] }
 0x3e0   :  { %3628 = vst [vmem:[#allocation3 + $0x50] sm:$0xff] %v10638_v8  ;;  %v3598_v47 = vadd.f32 %v10578_v46, %v3544_v61  ;;  %7771 = vmatmul.mubr.f32.gmra.mrb[20].mxu0 %v10642_v14  ;;  %v8923_v27 = vpack.c.bf16 %v4017_v23, %v4016_v1  ;;  %v4021_v61 = vld [vmem:[#allocation10 + $0x158] sm:$0xff]  ;;  %v10711_v58 = vld [vmem:[#allocation3 + $0x12] sm:$0xff]  ;;  %v4212_v1 = vld [vmem:[#allocation10 + $0x1c0] sm:$0xff] }
 0x3e1   :  { %v10649_v3 = vmax.f32 %v3599_v29, 0.0  ;;  %7773 = vmatprep.mubr.f32.mxu0 %v10644_v48  ;;  %8890 = vmatpush3.bf16.msra.mxu0 %v8887_v44  ;;  %v4013_v44 = vld [vmem:[#allocation10 + $0x118] sm:$0xff]  ;;  %v4020_v29 = vld [vmem:[#allocation10 + $0x150] sm:$0xff]  ;;  %v4213_v23 = vld [vmem:[#allocation10 + $0x1c8] sm:$0xff] }
 0x3e2   :  { %v10652_v40 = vmax.f32 %v3598_v47, 0.0  ;;  %v7731_v9 = vpop.f32.mrb[30].mxu1  ;;  %8892 = vmatprep.subr.bf16.mxu0 %v8891_v22  ;;  %v8915_v52 = vpack.c.bf16 %v4013_v44, %v4012_v37  ;;  %v8931_v34 = vpack.c.bf16 %v4021_v61, %v4020_v29  ;;  %v4022_v47 = vld [vmem:[#allocation10 + $0x160] sm:$0xff]  ;;  %v10714_v37 = vld [vmem:[#allocation3 + $0x1a] sm:$0xff] }
 0x3e3   :  { %3631 = vst [vmem:[#allocation3 + $0x68] sm:$0xff] %v10649_v3  ;;  %v3601_v30 = vadd.f32 %v7731_v9, %v10578_v46  ;;  %v3554_v18 = vpop.f32.mrb[31].mxu1  ;;  %v10656_v26 = vld [vmem:[#allocation3 + $0x39] sm:$0xff]  ;;  %v10658_v41 = vld [vmem:[#allocation3 + $0x41] sm:$0xff]  ;;  %v4023_v9 = vld [vmem:[#allocation10 + $0x168] sm:$0xff] }
 0x3e4   :  { %3630 = vst [vmem:[#allocation3 + $0x60] sm:$0xff] %v10652_v40  ;;  %v3600_v42 = vadd.f32 %v10578_v46, %v3554_v18  ;;  %7774 = vmatmul.mubr.f32.gmra.mrb[22].mxu0 %v10656_v26  ;;  %v8903_v46 = vpack.c.bf16 %v3667_v16, %v3666_v0  ;;  %v4206_v0 = vld [vmem:[#allocation10 + $0x190] sm:$0xff]  ;;  %v4207_v16 = vld [vmem:[#allocation10 + $0x198] sm:$0xff] }
 0x3e5   :  { %v10663_v4 = vmax.f32 %v3601_v30, 0.0  ;;  %7776 = vmatprep.mubr.f32.mxu0 %v10658_v41  ;;  %8894 = vmatpush3.bf16.msra.mxu0 %v8891_v22  ;;  %v4019_v22 = vld [vmem:[#allocation10 + $0x148] sm:$0xff]  ;;  %v4025_v30 = vld [vmem:[#allocation10 + $0x178] sm:$0xff]  ;;  %v8947_v20 = vpack.c.bf16 %v4207_v16, %v4206_v0  ;;  %v4210_v44 = vld [vmem:[#allocation10 + $0x1b0] sm:$0xff] }
 0x3e6   :  { %v10666_v43 = vmax.f32 %v3600_v42, 0.0  ;;  %8896 = vmatprep.subr.bf16.mxu0 %v8895_v15  ;;  %v8939_v18 = vpack.c.bf16 %v4025_v30, %v4024_v63  ;;  %v4205_v42 = vld [vmem:[#allocation10 + $0x188] sm:$0xff]  ;;  %v10717_v57 = vld [vmem:[#allocation3 + $0x22] sm:$0xff] }
 0x3e7   :  { %3633 = vst [vmem:[#allocation3 + $0x78] sm:$0xff] %v10663_v4  ;;  %v10669_v51 = vld [vmem:[#allocation3 + $0x49] sm:$0xff]  ;;  %v10671_v31 = vld [vmem:[#allocation3 + $0x51] sm:$0xff]  ;;  %v4215_v29 = vld [vmem:[#allocation10 + $0x1d8] sm:$0xff] }
 0x3e8   :  { %3632 = vst [vmem:[#allocation3 + $0x70] sm:$0xff] %v10666_v43  ;;  %7777 = vmatmul.mubr.f32.gmra.mrb[24].mxu0 %v10669_v51  ;;  %v10729_v61 = vld [vmem:[#allocation3 + $0x42] sm:$0xff]  ;;  %v10735_v63 = vld [vmem:[#allocation3 + $0x52] sm:$0xff] }
 0x3e9   :  { %7779 = vmatprep.mubr.f32.mxu0 %v10671_v31  ;;  %8898 = vmatpush3.bf16.msra.mxu0 %v8895_v15  ;;  %v8935_v15 = vpack.c.bf16 %v4023_v9, %v4022_v47  ;;  %v10732_v47 = vld [vmem:[#allocation3 + $0x4a] sm:$0xff] }
 0x3ea   :  { %8900 = vmatprep.subr.bf16.mxu0 %v8899_v12  ;;  %v4216_v9 = vld [vmem:[#allocation10 + $0x1e0] sm:$0xff] }
 0x3eb   :  { %v10676_v45 = vld [vmem:[#allocation3 + $0x59] sm:$0xff]  ;;  %v10678_v33 = vld [vmem:[#allocation3 + $0x61] sm:$0xff] }
 0x3ec   :  { %7780 = vmatmul.mubr.f32.gmra.mrb[26].mxu0 %v10676_v45 }
 0x3ed   :  { %7782 = vmatprep.mubr.f32.mxu0 %v10678_v33  ;;  %8902 = vmatpush3.bf16.msra.mxu0 %v8899_v12  ;;  %v8943_v12 = vpack.c.bf16 %v4205_v42, %v4204_v50  ;;  %v4218_v50 = vld [vmem:[#allocation10 + $0x1f0] sm:$0xff]  ;;  %v4219_v42 = vld [vmem:[#allocation10 + $0x1f8] sm:$0xff] }
 0x3ee   :  { %8904 = vmatprep.subr.bf16.mxu0 %v8903_v46  ;;  %v10688_v13 = vld [vmem:[#allocation3 + $0x79] sm:$0xff]  ;;  %v8971_v0 = vpack.c.bf16 %v4219_v42, %v4218_v50 }
 0x3ef   :  { %v10682_v39 = vld [vmem:[#allocation3 + $0x69] sm:$0xff]  ;;  %v10684_v17 = vld [vmem:[#allocation3 + $0x71] sm:$0xff]  ;;  %v4409_v50 = vld [vmem:[#allocation10 + $0x258] sm:$0xff] }
 0x3f0   :  { %7783 = vmatmul.mubr.f32.gmra.mrb[28].mxu0 %v10682_v39  ;;  %v10744_v16 = vld [vmem:[#allocation3 + $0x6a] sm:$0xff] }
 0x3f1   :  { %7785 = vmatprep.mubr.f32.mxu0 %v10684_v17  ;;  %8906 = vmatpush3.bf16.msra.mxu0 %v8903_v46  ;;  %v3993_v46 = vld [vmem:[#allocation3 + $0x2] sm:$0xff] }
 0x3f2   :  { %8908 = vmatprep.subr.bf16.mxu0 %v8907_v56 }
 0x3f4   :  { %7786 = vmatmul.mubr.f32.gmra.mrb[30].mxu0 %v10688_v13 }
 0x3f5   :  { %8910 = vmatpush3.bf16.msra.mxu0 %v8907_v56  ;;  %7820 = vmatprep.mubr.f32.mxu0 %v3602_v6  ;;  %v4018_v6 = vld [vmem:[#allocation10 + $0x140] sm:$0xff] }
 0x3f6   :  { %8912 = vmatprep.subr.bf16.mxu0 %v8911_v55  ;;  %v8927_v19 = vpack.c.bf16 %v4019_v22, %v4018_v6  ;;  %v4208_v56 = vld [vmem:[#allocation10 + $0x1a0] sm:$0xff]  ;;  %v8959_v6 = vpack.c.bf16 %v4213_v23, %v4212_v1  ;;  %v10726_v22 = vld [vmem:[#allocation3 + $0x3a] sm:$0xff]  ;;  %v4403_v23 = vld [vmem:[#allocation10 + $0x228] sm:$0xff] }
 0x3f7   :  { %v4402_v1 = vld [vmem:[#allocation10 + $0x220] sm:$0xff] }
 0x3f8   :  { %7821 = vmatmul.mubr.f32.vlgmr.msra.gmra.mrb[16].mxu0 %v10584_v59 }
 0x3f9   :  { %7823 = vmatprep.mubr.f32.mxu0 %v10594_v36  ;;  %8914 = vmatpush3.bf16.msra.mxu0 %v8911_v55  ;;  %v8951_v55 = vpack.c.bf16 %v4209_v5, %v4208_v56  ;;  %v10747_v56 = vld [vmem:[#allocation3 + $0x72] sm:$0xff] }
 0x3fa   :  { %8916 = vmatprep.subr.bf16.mxu0 %v8915_v52 }
 0x3fc   :  { %7824 = vmatmul.mubr.f32.gmra.mrb[18].mxu0 %v10592_v25 }
 0x3fd   :  { %7826 = vmatprep.mubr.f32.mxu0 %v10602_v2  ;;  %8918 = vmatpush3.bf16.msra.mxu0 %v8915_v52  ;;  %v4211_v52 = vld [vmem:[#allocation10 + $0x1b8] sm:$0xff] }
 0x3fe   :  { %8920 = vmatprep.subr.bf16.mxu0 %v8919_v35  ;;  %v8955_v60 = vpack.c.bf16 %v4211_v52, %v4210_v44  ;;  %v4400_v44 = vld [vmem:[#allocation10 + $0x210] sm:$0xff]  ;;  %v4401_v52 = vld [vmem:[#allocation10 + $0x218] sm:$0xff] }
 0x400   :  { %7827 = vmatmul.mubr.f32.gmra.mrb[20].mxu0 %v10600_v21 }
 0x401   :  { %7829 = vmatprep.mubr.f32.mxu0 %v10610_v53  ;;  %8922 = vmatpush3.bf16.msra.mxu0 %v8919_v35  ;;  %v10720_v35 = vld [vmem:[#allocation3 + $0x2a] sm:$0xff] }
 0x402   :  { %8924 = vmatprep.subr.bf16.mxu0 %v8923_v27 }
 0x404   :  { %7830 = vmatmul.mubr.f32.gmra.mrb[22].mxu0 %v10608_v24 }
 0x405   :  { %7832 = vmatprep.mubr.f32.mxu0 %v10624_v7  ;;  %8926 = vmatpush3.bf16.msra.mxu0 %v8923_v27  ;;  %v10723_v27 = vld [vmem:[#allocation3 + $0x32] sm:$0xff] }
 0x406   :  { %8928 = vmatprep.subr.bf16.mxu0 %v8927_v19 }
 0x408   :  { %7833 = vmatmul.mubr.f32.gmra.mrb[24].mxu0 %v10621_v38 }
 0x409   :  { %7835 = vmatprep.mubr.f32.mxu0 %v10638_v8  ;;  %8930 = vmatpush3.bf16.msra.mxu0 %v8927_v19  ;;  %v4214_v19 = vld [vmem:[#allocation10 + $0x1d0] sm:$0xff] }
 0x40a   :  { %8932 = vmatprep.subr.bf16.mxu0 %v8931_v34 }
 0x40c   :  { %7836 = vmatmul.mubr.f32.gmra.mrb[26].mxu0 %v10635_v10 }
 0x40d   :  { %7838 = vmatprep.mubr.f32.mxu0 %v10652_v40  ;;  %8934 = vmatpush3.bf16.msra.mxu0 %v8931_v34  ;;  %v8963_v34 = vpack.c.bf16 %v4215_v29, %v4214_v19  ;;  %v4404_v19 = vld [vmem:[#allocation10 + $0x230] sm:$0xff]  ;;  %v4405_v29 = vld [vmem:[#allocation10 + $0x238] sm:$0xff] }
 0x40e   :  { %8936 = vmatprep.subr.bf16.mxu0 %v8935_v15 }
 0x410   :  { %7839 = vmatmul.mubr.f32.gmra.mrb[28].mxu0 %v10649_v3 }
 0x411   :  { %7841 = vmatprep.mubr.f32.mxu0 %v10666_v43  ;;  %8938 = vmatpush3.bf16.msra.mxu0 %v8935_v15  ;;  %v4217_v15 = vld [vmem:[#allocation10 + $0x1e8] sm:$0xff] }
 0x412   :  { %8940 = vmatprep.subr.bf16.mxu0 %v8939_v18  ;;  %v8967_v30 = vpack.c.bf16 %v4217_v15, %v4216_v9  ;;  %v4407_v9 = vld [vmem:[#allocation10 + $0x248] sm:$0xff] }
 0x414   :  { %7842 = vmatmul.mubr.f32.gmra.mrb[30].mxu0 %v10663_v4 }
 0x415   :  { %8942 = vmatpush3.bf16.msra.mxu0 %v8939_v18  ;;  %7876 = vmatprep.mubr.f32.mxu0 %v3993_v46  ;;  %v10738_v18 = vld [vmem:[#allocation3 + $0x5a] sm:$0xff]  ;;  %v4398_v46 = vld [vmem:[#allocation10 + $0x200] sm:$0xff] }
 0x416   :  { %8944 = vmatprep.subr.bf16.mxu0 %v8943_v12 }
 0x418   :  { %7877 = vmatmul.mubr.f32.vlgmr.msra.gmra.mrb[16].mxu0 %v10708_v49 }
 0x419   :  { %7879 = vmatprep.mubr.f32.mxu0 %v10711_v58  ;;  %8946 = vmatpush3.bf16.msra.mxu0 %v8943_v12  ;;  %v10741_v12 = vld [vmem:[#allocation3 + $0x62] sm:$0xff] }
 0x41a   :  { %8948 = vmatprep.subr.bf16.mxu0 %v8947_v20 }
 0x41c   :  { %7880 = vmatmul.mubr.f32.gmra.mrb[18].mxu0 %v10714_v37 }
 0x41d   :  { %7882 = vmatprep.mubr.f32.mxu0 %v10717_v57  ;;  %8950 = vmatpush3.bf16.msra.mxu0 %v8947_v20  ;;  %v4399_v20 = vld [vmem:[#allocation10 + $0x208] sm:$0xff] }
 0x41e   :  { %8952 = vmatprep.subr.bf16.mxu0 %v8951_v55  ;;  %v8975_v5 = vpack.c.bf16 %v4399_v20, %v4398_v46  ;;  %v4411_v46 = vld [vmem:[#allocation10 + $0x268] sm:$0xff] }
 0x420   :  { %7883 = vmatmul.mubr.f32.gmra.mrb[20].mxu0 %v10720_v35 }
 0x421   :  { %7885 = vmatprep.mubr.f32.mxu0 %v10723_v27  ;;  %8954 = vmatpush3.bf16.msra.mxu0 %v8951_v55  ;;  %v10750_v55 = vld [vmem:[#allocation3 + $0x7a] sm:$0xff] }
 0x422   :  { %8956 = vmatprep.subr.bf16.mxu0 %v8955_v60 }
 0x424   :  { %7886 = vmatmul.mubr.f32.gmra.mrb[22].mxu0 %v10726_v22 }
 0x425   :  { %7888 = vmatprep.mubr.f32.mxu0 %v10729_v61  ;;  %8958 = vmatpush3.bf16.msra.mxu0 %v8955_v60  ;;  %v8979_v60 = vpack.c.bf16 %v4401_v52, %v4400_v44  ;;  %v4413_v44 = vld [vmem:[#allocation10 + $0x278] sm:$0xff] }
 0x426   :  { %8960 = vmatprep.subr.bf16.mxu0 %v8959_v6 }
 0x428   :  { %7889 = vmatmul.mubr.f32.gmra.mrb[24].mxu0 %v10732_v47 }
 0x429   :  { %7891 = vmatprep.mubr.f32.mxu0 %v10735_v63  ;;  %8962 = vmatpush3.bf16.msra.mxu0 %v8959_v6  ;;  %v8983_v6 = vpack.c.bf16 %v4403_v23, %v4402_v1  ;;  %v4593_v1 = vld [vmem:[#allocation10 + $0x288] sm:$0xff] }
 0x42a   :  { %8964 = vmatprep.subr.bf16.mxu0 %v8963_v34 }
 0x42c   :  { %7892 = vmatmul.mubr.f32.gmra.mrb[26].mxu0 %v10738_v18 }
 0x42d   :  { %7894 = vmatprep.mubr.f32.mxu0 %v10741_v12  ;;  %8966 = vmatpush3.bf16.msra.mxu0 %v8963_v34  ;;  %v4406_v34 = vld [vmem:[#allocation10 + $0x240] sm:$0xff] }
 0x42e   :  { %8968 = vmatprep.subr.bf16.mxu0 %v8967_v30  ;;  %v8991_v15 = vpack.c.bf16 %v4407_v9, %v4406_v34  ;;  %v4597_v34 = vld [vmem:[#allocation10 + $0x2a8] sm:$0xff] }
 0x430   :  { %7895 = vmatmul.mubr.f32.gmra.mrb[28].mxu0 %v10744_v16 }
 0x431   :  { %7897 = vmatprep.mubr.f32.mxu0 %v10747_v56  ;;  %8970 = vmatpush3.bf16.msra.mxu0 %v8967_v30  ;;  %v4408_v30 = vld [vmem:[#allocation10 + $0x250] sm:$0xff] }
 0x432   :  { %8972 = vmatprep.subr.bf16.mxu0 %v8971_v0  ;;  %v8995_v42 = vpack.c.bf16 %v4409_v50, %v4408_v30  ;;  %v4599_v30 = vld [vmem:[#allocation10 + $0x2b8] sm:$0xff]  ;;  %v4601_v50 = vld [vmem:[#allocation10 + $0x2c8] sm:$0xff] }
 0x434   :  { %7898 = vmatmul.mubr.f32.gmra.mrb[30].mxu0 %v10750_v55 }
 0x435   :  { %8974 = vmatpush3.bf16.msra.mxu0 %v8971_v0  ;;  %7932 = vmatprep.mubr.f32.mxu0 %v10584_v59  ;;  %v8987_v59 = vpack.c.bf16 %v4405_v29, %v4404_v19  ;;  %v4410_v0 = vld [vmem:[#allocation10 + $0x260] sm:$0xff]  ;;  %v4595_v19 = vld [vmem:[#allocation10 + $0x298] sm:$0xff] }
 0x436   :  { %8976 = vmatprep.subr.bf16.mxu0 %v8975_v5  ;;  %v8999_v20 = vpack.c.bf16 %v4411_v46, %v4410_v0  ;;  %v4603_v0 = vld [vmem:[#allocation10 + $0x2d8] sm:$0xff] }
 0x438   :  { %7933 = vmatmul.mubr.f32.vlgmr.msra.gmra.mrb[16].mxu0 %v10594_v36 }
 0x439   :  { %7935 = vmatprep.mubr.f32.mxu0 %v10592_v25  ;;  %8978 = vmatpush3.bf16.msra.mxu0 %v8975_v5  ;;  %v4412_v5 = vld [vmem:[#allocation10 + $0x270] sm:$0xff] }
 0x43a   :  { %8980 = vmatprep.subr.bf16.mxu0 %v8979_v60  ;;  %v9003_v52 = vpack.c.bf16 %v4413_v44, %v4412_v5  ;;  %v4605_v5 = vld [vmem:[#allocation10 + $0x2e8] sm:$0xff] }
 0x43c   :  { %7936 = vmatmul.mubr.f32.gmra.mrb[18].mxu0 %v10602_v2 }
 0x43d   :  { %7938 = vmatprep.mubr.f32.mxu0 %v10600_v21  ;;  %8982 = vmatpush3.bf16.msra.mxu0 %v8979_v60  ;;  %v4592_v60 = vld [vmem:[#allocation10 + $0x280] sm:$0xff] }
 0x43e   :  { %8984 = vmatprep.subr.bf16.mxu0 %v8983_v6  ;;  %v9007_v23 = vpack.c.bf16 %v4593_v1, %v4592_v60  ;;  %v4607_v60 = vld [vmem:[#allocation10 + $0x2f8] sm:$0xff] }
 0x440   :  { %7939 = vmatmul.mubr.f32.gmra.mrb[20].mxu0 %v10610_v53 }
 0x441   :  { %7941 = vmatprep.mubr.f32.mxu0 %v10608_v24  ;;  %8986 = vmatpush3.bf16.msra.mxu0 %v8983_v6  ;;  %v4594_v6 = vld [vmem:[#allocation10 + $0x290] sm:$0xff] }
 0x442   :  { %8988 = vmatprep.subr.bf16.mxu0 %v8987_v59  ;;  %v9011_v29 = vpack.c.bf16 %v4595_v19, %v4594_v6  ;;  %v4787_v6 = vld [vmem:[#allocation10 + $0x308] sm:$0xff]  ;;  %v10784_v19 = vld [vmem:[#allocation3 + $0x81] sm:$0xff] }
 0x444   :  { %7942 = vmatmul.mubr.f32.gmra.mrb[22].mxu0 %v10624_v7 }
 0x445   :  { %7944 = vmatprep.mubr.f32.mxu0 %v10621_v38  ;;  %8990 = vmatpush3.bf16.msra.mxu0 %v8987_v59  ;;  %v4596_v59 = vld [vmem:[#allocation10 + $0x2a0] sm:$0xff] }
 0x446   :  { %8992 = vmatprep.subr.bf16.mxu0 %v8991_v15  ;;  %v9015_v9 = vpack.c.bf16 %v4597_v34, %v4596_v59  ;;  %v4788_v59 = vld [vmem:[#allocation10 + $0x310] sm:$0xff]  ;;  %v4789_v34 = vld [vmem:[#allocation10 + $0x318] sm:$0xff] }
 0x448   :  { %7945 = vmatmul.mubr.f32.gmra.mrb[24].mxu0 %v10638_v8 }
 0x449   :  { %7947 = vmatprep.mubr.f32.mxu0 %v10635_v10  ;;  %8994 = vmatpush3.bf16.msra.mxu0 %v8991_v15  ;;  %v4598_v15 = vld [vmem:[#allocation10 + $0x2b0] sm:$0xff] }
 0x44a   :  { %8996 = vmatprep.subr.bf16.mxu0 %v8995_v42 }
 0x44c   :  { %7948 = vmatmul.mubr.f32.gmra.mrb[26].mxu0 %v10652_v40 }
 0x44d   :  { %7950 = vmatprep.mubr.f32.mxu0 %v10649_v3  ;;  %8998 = vmatpush3.bf16.msra.mxu0 %v8995_v42  ;;  %v4602_v42 = vld [vmem:[#allocation10 + $0x2d0] sm:$0xff] }
 0x44e   :  { %9000 = vmatprep.subr.bf16.mxu0 %v8999_v20  ;;  %v9027_v46 = vpack.c.bf16 %v4603_v0, %v4602_v42  ;;  %v4795_v42 = vld [vmem:[#allocation10 + $0x348] sm:$0xff] }
 0x450   :  { %7951 = vmatmul.mubr.f32.gmra.mrb[28].mxu0 %v10666_v43 }
 0x451   :  { %7953 = vmatprep.mubr.f32.mxu0 %v10663_v4  ;;  %9002 = vmatpush3.bf16.msra.mxu0 %v8999_v20  ;;  %v4604_v20 = vld [vmem:[#allocation10 + $0x2e0] sm:$0xff] }
 0x452   :  { %9004 = vmatprep.subr.bf16.mxu0 %v9003_v52  ;;  %v9031_v44 = vpack.c.bf16 %v4605_v5, %v4604_v20  ;;  %v4797_v20 = vld [vmem:[#allocation10 + $0x358] sm:$0xff] }
 0x454   :  { %7954 = vmatmul.mubr.f32.gmra.mrb[30].mxu0 %v10544_v32  ;;  %v9019_v32 = vpack.c.bf16 %v4599_v30, %v4598_v15  ;;  %v4790_v15 = vld [vmem:[#allocation10 + $0x320] sm:$0xff]  ;;  %v4791_v30 = vld [vmem:[#allocation10 + $0x328] sm:$0xff] }
 0x455   :  { %9006 = vmatpush3.bf16.msra.mxu0 %v9003_v52  ;;  %7988 = vmatprep.mubr.f32.mxu0 %v10614_v11  ;;  %v4600_v11 = vld [vmem:[#allocation10 + $0x2c0] sm:$0xff]  ;;  %v4606_v52 = vld [vmem:[#allocation10 + $0x2f0] sm:$0xff] }
 0x456   :  { %9008 = vmatprep.subr.bf16.mxu0 %v9007_v23  ;;  %v9035_v1 = vpack.c.bf16 %v4607_v60, %v4606_v52  ;;  %v4799_v52 = vld [vmem:[#allocation10 + $0x368] sm:$0xff] }
 0x458   :  { %7989 = vmatmul.mubr.f32.vlgmr.msra.gmra.mrb[16].mxu0 %v10616_v54  ;;  %v9023_v54 = vpack.c.bf16 %v4601_v50, %v4600_v11  ;;  %v4792_v11 = vld [vmem:[#allocation10 + $0x330] sm:$0xff]  ;;  %v4793_v50 = vld [vmem:[#allocation10 + $0x338] sm:$0xff] }
 0x459   :  { %7991 = vmatprep.mubr.f32.mxu0 %v10628_v62  ;;  %9010 = vmatpush3.bf16.msra.mxu0 %v9007_v23  ;;  %v4786_v23 = vld [vmem:[#allocation10 + $0x300] sm:$0xff] }
 0x45a   :  { %9012 = vmatprep.subr.bf16.mxu0 %v9011_v29 }
 0x45c   :  { %7992 = vmatmul.mubr.f32.gmra.mrb[18].mxu0 %v10630_v28 }
 0x45d   :  { %7994 = vmatprep.mubr.f32.mxu0 %v10642_v14  ;;  %9014 = vmatpush3.bf16.msra.mxu0 %v9011_v29  ;;  %v9039_v29 = vpack.c.bf16 %v4787_v6, %v4786_v23  ;;  %v4801_v23 = vld [vmem:[#allocation10 + $0x378] sm:$0xff] }
 0x45e   :  { %9016 = vmatprep.subr.bf16.mxu0 %v9015_v9 }
 0x460   :  { %7995 = vmatmul.mubr.f32.gmra.mrb[20].mxu0 %v10644_v48 }
 0x461   :  { %7997 = vmatprep.mubr.f32.mxu0 %v10656_v26  ;;  %9018 = vmatpush3.bf16.msra.mxu0 %v9015_v9  ;;  %v9043_v9 = vpack.c.bf16 %v4789_v34, %v4788_v59  ;;  %v4981_v59 = vld [vmem:[#allocation10 + $0x388] sm:$0xff]  ;;  %v10802_v34 = vld [vmem:[#allocation3 + $0x82] sm:$0xff] }
 0x462   :  { %9020 = vmatprep.subr.bf16.mxu0 %v9019_v32 }
 0x464   :  { %7998 = vmatmul.mubr.f32.gmra.mrb[22].mxu0 %v10658_v41 }
 0x465   :  { %8000 = vmatprep.mubr.f32.mxu0 %v10669_v51  ;;  %9022 = vmatpush3.bf16.msra.mxu0 %v9019_v32  ;;  %v9047_v32 = vpack.c.bf16 %v4791_v30, %v4790_v15  ;;  %v4982_v15 = vld [vmem:[#allocation10 + $0x390] sm:$0xff]  ;;  %v4983_v30 = vld [vmem:[#allocation10 + $0x398] sm:$0xff] }
 0x466   :  { %9024 = vmatprep.subr.bf16.mxu0 %v9023_v54 }
 0x468   :  { %8001 = vmatmul.mubr.f32.gmra.mrb[24].mxu0 %v10671_v31 }
 0x469   :  { %8003 = vmatprep.mubr.f32.mxu0 %v10676_v45  ;;  %9026 = vmatpush3.bf16.msra.mxu0 %v9023_v54  ;;  %v4794_v54 = vld [vmem:[#allocation10 + $0x340] sm:$0xff] }
 0x46a   :  { %9028 = vmatprep.subr.bf16.mxu0 %v9027_v46  ;;  %v9055_v0 = vpack.c.bf16 %v4795_v42, %v4794_v54  ;;  %v4986_v54 = vld [vmem:[#allocation10 + $0x3b0] sm:$0xff]  ;;  %v4987_v42 = vld [vmem:[#allocation10 + $0x3b8] sm:$0xff] }
 0x46c   :  { %8004 = vmatmul.mubr.f32.gmra.mrb[26].mxu0 %v10678_v33 }
 0x46d   :  { %8006 = vmatprep.mubr.f32.mxu0 %v10682_v39  ;;  %9030 = vmatpush3.bf16.msra.mxu0 %v9027_v46  ;;  %v4796_v46 = vld [vmem:[#allocation10 + $0x350] sm:$0xff] }
 0x46e   :  { %9032 = vmatprep.subr.bf16.mxu0 %v9031_v44  ;;  %v9059_v5 = vpack.c.bf16 %v4797_v20, %v4796_v46  ;;  %v4989_v46 = vld [vmem:[#allocation10 + $0x3c8] sm:$0xff]  ;;  %v4991_v20 = vld [vmem:[#allocation10 + $0x3d8] sm:$0xff] }
 0x470   :  { %8007 = vmatmul.mubr.f32.gmra.mrb[28].mxu0 %v10684_v17 }
 0x471   :  { %8009 = vmatprep.mubr.f32.mxu0 %v10688_v13  ;;  %9034 = vmatpush3.bf16.msra.mxu0 %v9031_v44  ;;  %v4798_v44 = vld [vmem:[#allocation10 + $0x360] sm:$0xff] }
 0x472   :  { %9036 = vmatprep.subr.bf16.mxu0 %v9035_v1  ;;  %v9063_v60 = vpack.c.bf16 %v4799_v52, %v4798_v44  ;;  %v4995_v44 = vld [vmem:[#allocation10 + $0x3f8] sm:$0xff]  ;;  %v5175_v52 = vld [vmem:[#allocation10 + $0x408] sm:$0xff] }
 0x474   :  { %8010 = vmatmul.mubr.f32.gmra.mrb[30].mxu0 %v10784_v19 }
 0x475   :  { %9038 = vmatpush3.bf16.msra.mxu0 %v9035_v1  ;;  %8044 = vmatprep.mubr.f32.mxu0 %v10708_v49  ;;  %v9051_v49 = vpack.c.bf16 %v4793_v50, %v4792_v11  ;;  %v4800_v1 = vld [vmem:[#allocation10 + $0x370] sm:$0xff]  ;;  %v4984_v11 = vld [vmem:[#allocation10 + $0x3a0] sm:$0xff]  ;;  %v4985_v50 = vld [vmem:[#allocation10 + $0x3a8] sm:$0xff] }
 0x476   :  { %9040 = vmatprep.subr.bf16.mxu0 %v9039_v29  ;;  %v9067_v6 = vpack.c.bf16 %v4801_v23, %v4800_v1  ;;  %v5177_v1 = vld [vmem:[#allocation10 + $0x418] sm:$0xff]  ;;  %v5178_v23 = vld [vmem:[#allocation10 + $0x420] sm:$0xff] }
 0x478   :  { %8045 = vmatmul.mubr.f32.vlgmr.msra.gmra.mrb[16].mxu0 %v10711_v58 }
 0x479   :  { %8047 = vmatprep.mubr.f32.mxu0 %v10714_v37  ;;  %9042 = vmatpush3.bf16.msra.mxu0 %v9039_v29  ;;  %v4980_v29 = vld [vmem:[#allocation10 + $0x380] sm:$0xff] }
 0x47a   :  { %9044 = vmatprep.subr.bf16.mxu0 %v9043_v9 }
 0x47c   :  { %8048 = vmatmul.mubr.f32.gmra.mrb[18].mxu0 %v10717_v57 }
 0x47d   :  { %8050 = vmatprep.mubr.f32.mxu0 %v10720_v35  ;;  %9046 = vmatpush3.bf16.msra.mxu0 %v9043_v9  ;;  %v9071_v9 = vpack.c.bf16 %v4981_v59, %v4980_v29  ;;  %v5180_v29 = vld [vmem:[#allocation10 + $0x430] sm:$0xff]  ;;  %v5181_v59 = vld [vmem:[#allocation10 + $0x438] sm:$0xff] }
 0x47e   :  { %9048 = vmatprep.subr.bf16.mxu0 %v9047_v32 }
 0x480   :  { %8051 = vmatmul.mubr.f32.gmra.mrb[20].mxu0 %v10723_v27 }
 0x481   :  { %8053 = vmatprep.mubr.f32.mxu0 %v10726_v22  ;;  %9050 = vmatpush3.bf16.msra.mxu0 %v9047_v32  ;;  %v9075_v32 = vpack.c.bf16 %v4983_v30, %v4982_v15  ;;  %v5182_v15 = vld [vmem:[#allocation10 + $0x440] sm:$0xff]  ;;  %v5183_v30 = vld [vmem:[#allocation10 + $0x448] sm:$0xff] }
 0x482   :  { %9052 = vmatprep.subr.bf16.mxu0 %v9051_v49 }
 0x484   :  { %8054 = vmatmul.mubr.f32.gmra.mrb[22].mxu0 %v10729_v61 }
 0x485   :  { %8056 = vmatprep.mubr.f32.mxu0 %v10732_v47  ;;  %9054 = vmatpush3.bf16.msra.mxu0 %v9051_v49  ;;  %v9079_v49 = vpack.c.bf16 %v4985_v50, %v4984_v11  ;;  %v5187_v11 = vld [vmem:[#allocation10 + $0x468] sm:$0xff]  ;;  %v5189_v50 = vld [vmem:[#allocation10 + $0x478] sm:$0xff] }
 0x486   :  { %9056 = vmatprep.subr.bf16.mxu0 %v9055_v0 }
 0x488   :  { %8057 = vmatmul.mubr.f32.gmra.mrb[24].mxu0 %v10735_v63 }
 0x489   :  { %8059 = vmatprep.mubr.f32.mxu0 %v10738_v18  ;;  %9058 = vmatpush3.bf16.msra.mxu0 %v9055_v0  ;;  %v4988_v0 = vld [vmem:[#allocation10 + $0x3c0] sm:$0xff] }
 0x48a   :  { %9060 = vmatprep.subr.bf16.mxu0 %v9059_v5 }
 0x48c   :  { %8060 = vmatmul.mubr.f32.gmra.mrb[26].mxu0 %v10741_v12 }
 0x48d   :  { %8062 = vmatprep.mubr.f32.mxu0 %v10744_v16  ;;  %9062 = vmatpush3.bf16.msra.mxu0 %v9059_v5  ;;  %v4993_v5 = vld [vmem:[#allocation10 + $0x3e8] sm:$0xff] }
 0x48e   :  { %9064 = vmatprep.subr.bf16.mxu0 %v9063_v60 }
 0x490   :  { %8063 = vmatmul.mubr.f32.gmra.mrb[28].mxu0 %v10747_v56 }
 0x491   :  { %8065 = vmatprep.mubr.f32.mxu0 %v10750_v55  ;;  %9066 = vmatpush3.bf16.msra.mxu0 %v9063_v60  ;;  %v5176_v60 = vld [vmem:[#allocation10 + $0x410] sm:$0xff] }
 0x492   :  { %9068 = vmatprep.subr.bf16.mxu0 %v9067_v6 }
 0x494   :  { %8066 = vmatmul.mubr.f32.gmra.mrb[30].mxu0 %v10802_v34 }
 0x495   :  { %9070 = vmatpush3.bf16.msra.mxu0 %v9067_v6  ;;  %8100 = vmatprep.mubr.f32.mxu0 %v10594_v36  ;;  %v9083_v36 = vpack.c.bf16 %v4987_v42, %v4986_v54  ;;  %v5179_v6 = vld [vmem:[#allocation10 + $0x428] sm:$0xff]  ;;  %v5429_v54 = vld [vmem:[#allocation11 + $0x30] sm:$0xff]  ;;  %v5430_v42 = vld [vmem:[#allocation11 + $0x38] sm:$0xff] }
 0x496   :  { %9072 = vmatprep.subr.bf16.mxu0 %v9071_v9 }
 0x498   :  { %8101 = vmatmul.mubr.f32.vlgmr.msra.gmra.mrb[16].mxu0 %v10592_v25  ;;  %v9087_v25 = vpack.c.bf16 %v4989_v46, %v4988_v0  ;;  %v5447_v0 = vld [vmem:[#allocation11 + $0xc0] sm:$0xff]  ;;  %v5448_v46 = vld [vmem:[#allocation11 + $0xc8] sm:$0xff] }
 0x499   :  { %8103 = vmatprep.mubr.f32.mxu0 %v10602_v2  ;;  %9074 = vmatpush3.bf16.msra.mxu0 %v9071_v9  ;;  %v4990_v2 = vld [vmem:[#allocation10 + $0x3d0] sm:$0xff]  ;;  %v9115_v9 = vpack.c.bf16 %v5181_v59, %v5180_v29  ;;  %v5438_v29 = vld [vmem:[#allocation11 + $0x78] sm:$0xff] }
 0x49a   :  { %9076 = vmatprep.subr.bf16.mxu0 %v9075_v32 }
 0x49c   :  { %8104 = vmatmul.mubr.f32.gmra.mrb[18].mxu0 %v10600_v21  ;;  %v9091_v21 = vpack.c.bf16 %v4991_v20, %v4990_v2  ;;  %v5431_v2 = vld [vmem:[#allocation11 + $0x40] sm:$0xff]  ;;  %v5432_v20 = vld [vmem:[#allocation11 + $0x48] sm:$0xff] }
 0x49d   :  { %8106 = vmatprep.mubr.f32.mxu0 %v10610_v53  ;;  %9078 = vmatpush3.bf16.msra.mxu0 %v9075_v32  ;;  %v4992_v53 = vld [vmem:[#allocation10 + $0x3e0] sm:$0xff]  ;;  %v5185_v32 = vld [vmem:[#allocation10 + $0x458] sm:$0xff] }
 0x49e   :  { %9080 = vmatprep.subr.bf16.mxu0 %v9079_v49 }
 0x4a0   :  { %8107 = vmatmul.mubr.f32.gmra.mrb[20].mxu0 %v10608_v24  ;;  %v9095_v24 = vpack.c.bf16 %v4993_v5, %v4992_v53  ;;  %v5449_v53 = vld [vmem:[#allocation11 + $0xd0] sm:$0xff]  ;;  %v5450_v5 = vld [vmem:[#allocation11 + $0xd8] sm:$0xff] }
 0x4a1   :  { %8109 = vmatprep.mubr.f32.mxu0 %v10624_v7  ;;  %9082 = vmatpush3.bf16.msra.mxu0 %v9079_v49  ;;  %v4994_v7 = vld [vmem:[#allocation10 + $0x3f0] sm:$0xff] }
 0x4a2   :  { %9084 = vmatprep.subr.bf16.mxu0 %v9083_v36 }
 0x4a4   :  { %8110 = vmatmul.mubr.f32.gmra.mrb[22].mxu0 %v10621_v38  ;;  %v9099_v38 = vpack.c.bf16 %v4995_v44, %v4994_v7  ;;  %v5433_v7 = vld [vmem:[#allocation11 + $0x50] sm:$0xff]  ;;  %v5434_v44 = vld [vmem:[#allocation11 + $0x58] sm:$0xff] }
 0x4a5   :  { %8112 = vmatprep.mubr.f32.mxu0 %v10638_v8  ;;  %9086 = vmatpush3.bf16.msra.mxu0 %v9083_v36  ;;  %v5174_v8 = vld [vmem:[#allocation10 + $0x400] sm:$0xff]  ;;  %v9149_v36 = vpack.c.bf16 %v5430_v42, %v5429_v54 }
 0x4a6   :  { %9088 = vmatprep.subr.bf16.mxu0 %v9087_v25 }
 0x4a8   :  { %8113 = vmatmul.mubr.f32.gmra.mrb[24].mxu0 %v10635_v10  ;;  %v10819_v10 = vld [vmem:[#allocation2 + $0x80] sm:$0xff] }
 0x4a9   :  { %8115 = vmatprep.mubr.f32.mxu0 %v10652_v40  ;;  %9090 = vmatpush3.bf16.msra.mxu0 %v9087_v25  ;;  %v9103_v40 = vpack.c.bf16 %v5175_v52, %v5174_v8  ;;  %v9151_v25 = vpack.c.bf16 %v5448_v46, %v5447_v0  ;;  %v5451_v8 = vld [vmem:[#allocation11 + $0xe0] sm:$0xff]  ;;  %v5452_v52 = vld [vmem:[#allocation11 + $0xe8] sm:$0xff] }
 0x4aa   :  { %9092 = vmatprep.subr.bf16.mxu0 %v9091_v21 }
 0x4ac   :  { %8116 = vmatmul.mubr.f32.gmra.mrb[26].mxu0 %v10649_v3  ;;  %v4963_v3 = vld [vmem:[#allocation3 + $0x11] sm:$0xff] }
 0x4ad   :  { %8118 = vmatprep.mubr.f32.mxu0 %v10666_v43  ;;  %9094 = vmatpush3.bf16.msra.mxu0 %v9091_v21  ;;  %v9107_v43 = vpack.c.bf16 %v5177_v1, %v5176_v60  ;;  %v9153_v21 = vpack.c.bf16 %v5432_v20, %v5431_v2  ;;  %v5435_v60 = vld [vmem:[#allocation11 + $0x60] sm:$0xff]  ;;  %v5436_v1 = vld [vmem:[#allocation11 + $0x68] sm:$0xff] }
 0x4ae   :  { %9096 = vmatprep.subr.bf16.mxu0 %v9095_v24 }
 0x4b0   :  { %8119 = vmatmul.mubr.f32.gmra.mrb[28].mxu0 %v10663_v4  ;;  %v9111_v4 = vpack.c.bf16 %v5179_v6, %v5178_v23  ;;  %v5454_v23 = vld [vmem:[#allocation11 + $0xf8] sm:$0xff]  ;;  %v5437_v6 = vld [vmem:[#allocation11 + $0x70] sm:$0xff] }
 0x4b1   :  { %9098 = vmatpush3.bf16.msra.mxu0 %v9095_v24  ;;  %8121 = vmatprep.mubr.f32.mxu0 %v10819_v10  ;;  %v9155_v24 = vpack.c.bf16 %v5450_v5, %v5449_v53  ;;  %v9165_v59 = vpack.c.bf16 %v5438_v29, %v5437_v6 }
 0x4b2   :  { %9100 = vmatprep.subr.bf16.mxu0 %v9099_v38 }
 0x4b4   :  { %8122 = vmatmul.mubr.f32.gmra.mrb[30].mxu0 %v10819_v10 }
 0x4b5   :  { %9102 = vmatpush3.bf16.msra.mxu0 %v9099_v38  ;;  %8156 = vmatprep.mubr.f32.mxu0 %v4963_v3  ;;  %v9157_v38 = vpack.c.bf16 %v5434_v44, %v5433_v7  ;;  %v9161_v3 = vpack.c.bf16 %v5436_v1, %v5435_v60  ;;  %v9746_v7 = vmov 1983009808  }
 0x4b6   :  { %9104 = vmatprep.subr.bf16.mxu0 %v9103_v40  ;;  %v5497_v44 = vunpack.c.l.s4 %v9746_v7  ;;  %v5486_v7 = vld [vmem:[#allocation11 + $0x1f8] sm:$0xff] }
 0x4b8   :  { %8157 = vmatmul.mubr.f32.vlgmr.msra.gmra.mrb[16].mxu0 %v10628_v62  ;;  %v9119_v62 = vpack.c.bf16 %v5183_v30, %v5182_v15  ;;  %v5472_v15 = vld [vmem:[#allocation11 + $0x188] sm:$0xff]  ;;  %v5498_v29 = vunpack.c.0.s8 %v5497_v44 }
 0x4b9   :  { %8159 = vmatprep.mubr.f32.mxu0 %v10630_v28  ;;  %9106 = vmatpush3.bf16.msra.mxu0 %v9103_v40  ;;  %v5184_v28 = vld [vmem:[#allocation10 + $0x450] sm:$0xff]  ;;  %v9159_v40 = vpack.c.bf16 %v5452_v52, %v5451_v8 }
 0x4ba   :  { %9108 = vmatprep.subr.bf16.mxu0 %v9107_v43 }
 0x4bc   :  { %8160 = vmatmul.mubr.f32.gmra.mrb[18].mxu0 %v10642_v14  ;;  %v9123_v14 = vpack.c.bf16 %v5185_v32, %v5184_v28 }
 0x4bd   :  { %8162 = vmatprep.mubr.f32.mxu0 %v10644_v48  ;;  %9110 = vmatpush3.bf16.msra.mxu0 %v9107_v43  ;;  %v5186_v48 = vld [vmem:[#allocation10 + $0x460] sm:$0xff]  ;;  %v5453_v43 = vld [vmem:[#allocation11 + $0xf0] sm:$0xff] }
 0x4be   :  { %9112 = vmatprep.subr.bf16.mxu0 %v9111_v4 }
 0x4c0   :  { %8163 = vmatmul.mubr.f32.gmra.mrb[20].mxu0 %v10656_v26  ;;  %v9127_v26 = vpack.c.bf16 %v5187_v11, %v5186_v48 }
 0x4c1   :  { %8165 = vmatprep.mubr.f32.mxu0 %v10658_v41  ;;  %9114 = vmatpush3.bf16.msra.mxu0 %v9111_v4  ;;  %v5188_v41 = vld [vmem:[#allocation10 + $0x470] sm:$0xff]  ;;  %v9163_v4 = vpack.c.bf16 %v5454_v23, %v5453_v43 }
 0x4c2   :  { %9116 = vmatprep.subr.bf16.mxu0 %v9115_v9 }
 0x4c4   :  { %8166 = vmatmul.mubr.f32.gmra.mrb[22].mxu0 %v10669_v51  ;;  %v9131_v51 = vpack.c.bf16 %v5189_v50, %v5188_v41 }
 0x4c5   :  { %8168 = vmatprep.mubr.f32.mxu0 %v10671_v31  ;;  %9118 = vmatpush3.bf16.msra.mxu0 %v9115_v9  ;;  %v4978_v31 = vld [vmem:[#allocation3 + $0x89] sm:$0xff] }
 0x4c6   :  { %9120 = vmatprep.subr.bf16.mxu0 %v9119_v62  ;;  %v5471_v9 = vld [vmem:[#allocation11 + $0x180] sm:$0xff] }
 0x4c7   :  { %v9167_v30 = vpack.c.bf16 %v5472_v15, %v5471_v9 }
 0x4c8   :  { %8169 = vmatmul.mubr.f32.gmra.mrb[24].mxu0 %v10676_v45  ;;  %v5172_v45 = vld [vmem:[#allocation3 + $0x8a] sm:$0xff] }
 0x4c9   :  { %8171 = vmatprep.mubr.f32.mxu0 %v10678_v33  ;;  %9122 = vmatpush3.bf16.msra.mxu0 %v9119_v62  ;;  %v5439_v33 = vld [vmem:[#allocation11 + $0x80] sm:$0xff]  ;;  %v10855_v62 = vld [vmem:[%s10946_s6] ss:$0 sm:$0xff] }
 0x4ca   :  { %9124 = vmatprep.subr.bf16.mxu0 %v9123_v14 }
 0x4cc   :  { %8172 = vmatmul.mubr.f32.gmra.mrb[26].mxu0 %v10682_v39  ;;  %v5440_v39 = vld [vmem:[#allocation11 + $0x88] sm:$0xff] }
 0x4cd   :  { %8174 = vmatprep.mubr.f32.mxu0 %v10684_v17  ;;  %9126 = vmatpush3.bf16.msra.mxu0 %v9123_v14  ;;  %v9135_v17 = vpack.c.bf16 %v5440_v39, %v5439_v33 }
 0x4ce   :  { %9128 = vmatprep.subr.bf16.mxu0 %v9127_v26 }
 0x4cf   :  { %9136 = vmatprep.subr.bf16.mxu1 %v9135_v17 }
 0x4d0   :  { %8175 = vmatmul.mubr.f32.gmra.mrb[28].mxu0 %v10688_v13  ;;  %v5423_v13 = vld [vmem:[#allocation11] sm:$0xff] }
 0x4d1   :  { %9130 = vmatpush3.bf16.msra.mxu0 %v9127_v26  ;;  %8177 = vmatprep.mubr.f32.mxu0 %v10784_v19  ;;  %v5445_v19 = vld [vmem:[#allocation11 + $0xb0] sm:$0xff] }
 0x4d2   :  { %9132 = vmatprep.subr.bf16.mxu0 %v9131_v51 }
 0x4d4   :  { %8178 = vmatmul.mubr.f32.gmra.mrb[30].mxu0 %v4978_v31 }
 0x4d5   :  { %9134 = vmatpush3.bf16.msra.mxu0 %v9131_v51  ;;  %8212 = vmatprep.mubr.f32.mxu0 %v10711_v58  ;;  %v5424_v58 = vld [vmem:[#allocation11 + $0x8] sm:$0xff] }
 0x4d8   :  { %8213 = vmatmul.mubr.f32.vlgmr.msra.gmra.mrb[16].mxu0 %v10714_v37  ;;  %v9137_v37 = vpack.c.bf16 %v5424_v58, %v5423_v13 }
 0x4d9   :  { %8215 = vmatprep.mubr.f32.mxu0 %v10717_v57  ;;  %v5441_v57 = vld [vmem:[#allocation11 + $0x90] sm:$0xff] }
 0x4da   :  { %9138 = vmatpush3.bf16.msra.mxu1 %v9137_v37 }
 0x4dc   :  { %8216 = vmatmul.mubr.f32.gmra.mrb[18].mxu0 %v10720_v35  ;;  %v5442_v35 = vld [vmem:[#allocation11 + $0x98] sm:$0xff] }
 0x4dd   :  { %8218 = vmatprep.mubr.f32.mxu0 %v10723_v27  ;;  %v9139_v27 = vpack.c.bf16 %v5442_v35, %v5441_v57 }
 0x4df   :  { %9140 = vmatprep.subr.bf16.mxu1 %v9139_v27 }
 0x4e0   :  { %8219 = vmatmul.mubr.f32.gmra.mrb[20].mxu0 %v10726_v22  ;;  %v5425_v22 = vld [vmem:[#allocation11 + $0x10] sm:$0xff] }
 0x4e1   :  { %8221 = vmatprep.mubr.f32.mxu0 %v10729_v61  ;;  %v5426_v61 = vld [vmem:[#allocation11 + $0x18] sm:$0xff] }
 0x4e4   :  { %8222 = vmatmul.mubr.f32.gmra.mrb[22].mxu0 %v10732_v47  ;;  %v9141_v47 = vpack.c.bf16 %v5426_v61, %v5425_v22 }
 0x4e5   :  { %8224 = vmatprep.mubr.f32.mxu0 %v10735_v63  ;;  %v5443_v63 = vld [vmem:[#allocation11 + $0xa0] sm:$0xff] }
 0x4e6   :  { %9142 = vmatpush3.bf16.msra.mxu1 %v9141_v47 }
 0x4e8   :  { %8225 = vmatmul.mubr.f32.gmra.mrb[24].mxu0 %v10738_v18  ;;  %v5444_v18 = vld [vmem:[#allocation11 + $0xa8] sm:$0xff] }
 0x4e9   :  { %8227 = vmatprep.mubr.f32.mxu0 %v10741_v12  ;;  %v9143_v12 = vpack.c.bf16 %v5444_v18, %v5443_v63 }
 0x4eb   :  { %9144 = vmatprep.subr.bf16.mxu1 %v9143_v12 }
 0x4ec   :  { %8228 = vmatmul.mubr.f32.gmra.mrb[26].mxu0 %v10744_v16  ;;  %v5427_v16 = vld [vmem:[#allocation11 + $0x20] sm:$0xff] }
 0x4ed   :  { %8230 = vmatprep.mubr.f32.mxu0 %v10747_v56  ;;  %v5428_v56 = vld [vmem:[#allocation11 + $0x28] sm:$0xff] }
 0x4f0   :  { %8231 = vmatmul.mubr.f32.gmra.mrb[28].mxu0 %v10750_v55  ;;  %v9145_v55 = vpack.c.bf16 %v5428_v56, %v5427_v16 }
 0x4f1   :  { %8233 = vmatprep.mubr.f32.mxu0 %v10802_v34  ;;  %v5446_v34 = vld [vmem:[#allocation11 + $0xb8] sm:$0xff] }
 0x4f2   :  { %9146 = vmatpush3.bf16.msra.mxu1 %v9145_v55  ;;  %v9147_v49 = vpack.c.bf16 %v5446_v34, %v5445_v19 }
 0x4f4   :  { %8234 = vmatmul.mubr.f32.gmra.mrb[30].mxu0 %v5172_v45  ;;  %9148 = vmatprep.subr.bf16.mxu1 %v9147_v49 }
 0x4f6   :  { %9150 = vmatpush3.bf16.msra.mxu1 %v9149_v36 }
 0x4f7   :  { %9152 = vmatprep.subr.bf16.mxu1 %v9151_v25 }
 0x4fa   :  { %9154 = vmatpush3.bf16.msra.mxu1 %v9153_v21 }
 0x4fb   :  { %9156 = vmatprep.subr.bf16.mxu1 %v9155_v24 }
 0x4fe   :  { %9158 = vmatpush3.bf16.msra.mxu1 %v9157_v38  ;;  %v5499_v38 = vlaneseq }
 0x4ff   :  { %9160 = vmatprep.subr.bf16.mxu1 %v9159_v40 }
 0x502   :  { %9162 = vmatpush3.bf16.msra.mxu1 %v9161_v3 }
 0x503   :  { %9164 = vmatprep.subr.bf16.mxu1 %v9163_v4 }
 0x506   :  { %9166 = vmatpush3.bf16.msra.mxu1 %v9165_v59  ;;  %v5500_v59 = vshrl.u32 %v5499_v38, 7 }
 0x507   :  { %9168 = vmatprep.subr.bf16.mxu1 %v9167_v30 }
 0x508   :  { %v5501_v30 = vsub.s32 %v5498_v29, %v5500_v59  ;;  %v5661_v29 = vld [vmem:[%s10949_s9 + $0x20] sm:$0xff]  ;;  %v5662_v59 = vld [vmem:[%s10949_s9 + $0x28] sm:$0xff] }
 0x5ab   :  { %v8214_v28 = vpop.f32.mrb[16].mxu0 }
 0x5ac   :  { %v5359_v32 = vadd.f32 %v8214_v28, %v10855_v62  ;;  %v5256_v14 = vpop.f32.mrb[17].mxu0 }
 0x5ad   :  { %v5358_v48 = vadd.f32 %v10855_v62, %v5256_v14  ;;  %v5456_v14 = vld [vmem:[#allocation11 + $0x108] sm:$0xff] }
 0x5ae   :  { %v5375_v11 = vmax.f32 %v5359_v32, 0.0  ;;  %v5455_v32 = vld [vmem:[#allocation11 + $0x100] sm:$0xff] }
 0x5af   :  { %v5374_v26 = vmax.f32 %v5358_v48, 0.0  ;;  %v8217_v41 = vpop.f32.mrb[18].mxu0 }
 0x5b0   :  { %5391 = vst [vmem:[#allocation2 + $0x8] sm:$0xff] %v5375_v11  ;;  %v5361_v50 = vadd.f32 %v8217_v41, %v10855_v62  ;;  %v5266_v51 = vpop.f32.mrb[19].mxu0  ;;  %v5474_v41 = vld [vmem:[#allocation11 + $0x198] sm:$0xff] }
 0x5b1   :  { %5390 = vst [vmem:[#allocation2] sm:$0xff] %v5374_v26  ;;  %v5360_v31 = vadd.f32 %v10855_v62, %v5266_v51  ;;  %v5473_v26 = vld [vmem:[#allocation11 + $0x190] sm:$0xff]  ;;  %v9169_v51 = vpack.c.bf16 %v5456_v14, %v5455_v32  ;;  %v5665_v32 = vld [vmem:[%s10949_s9 + $0x40] sm:$0xff]  ;;  %v5666_v14 = vld [vmem:[%s10949_s9 + $0x48] sm:$0xff] }
 0x5b2   :  { %v5377_v45 = vmax.f32 %v5361_v50, 0.0 }
 0x5b3   :  { %v5376_v33 = vmax.f32 %v5360_v31, 0.0  ;;  %v8220_v39 = vpop.f32.mrb[20].mxu0 }
 0x5b4   :  { %5393 = vst [vmem:[#allocation2 + $0x18] sm:$0xff] %v5377_v45  ;;  %v5363_v17 = vadd.f32 %v8220_v39, %v10855_v62  ;;  %v5276_v13 = vpop.f32.mrb[21].mxu0  ;;  %v5457_v45 = vld [vmem:[#allocation11 + $0x110] sm:$0xff] }
 0x5b5   :  { %5392 = vst [vmem:[#allocation2 + $0x10] sm:$0xff] %v5376_v33  ;;  %v5362_v58 = vadd.f32 %v10855_v62, %v5276_v13  ;;  %v5458_v33 = vld [vmem:[#allocation11 + $0x118] sm:$0xff]  ;;  %v5476_v13 = vld [vmem:[#allocation11 + $0x1a8] sm:$0xff] }
 0x5b6   :  { %v5379_v37 = vmax.f32 %v5363_v17, 0.0  ;;  %v5475_v17 = vld [vmem:[#allocation11 + $0x1a0] sm:$0xff] }
 0x5b7   :  { %v5378_v57 = vmax.f32 %v5362_v58, 0.0  ;;  %v8223_v35 = vpop.f32.mrb[22].mxu0  ;;  %v5410_v27 = vld [vmem:[#allocation2 + $0x8] sm:$0x1]  ;;  %v5412_v22 = vld [vmem:[#allocation2 + $0x9] sm:$0x1]  ;;  %v9173_v58 = vpack.c.bf16 %v5458_v33, %v5457_v45 }
 0x5b8   :  { %5395 = vst [vmem:[#allocation2 + $0x28] sm:$0xff] %v5379_v37  ;;  %v5365_v61 = vadd.f32 %v8223_v35, %v10855_v62  ;;  %v5286_v47 = vpop.f32.mrb[23].mxu0  ;;  %v5406_v63 = vld [vmem:[#allocation2] sm:$0x1]  ;;  %v5408_v18 = vld [vmem:[#allocation2 + $0x1] sm:$0x1]  ;;  %v9175_v37 = vpack.c.bf16 %v5476_v13, %v5475_v17 }
 0x5b9   :  { %5411 = vst [vmem:[#allocation4 + $0x4] sm:$0x1] %v5410_v27  ;;  %5413 = vst [vmem:[#allocation4 + $0x6] sm:$0x1] %v5412_v22  ;;  %v5364_v12 = vadd.f32 %v10855_v62, %v5286_v47  ;;  %v5460_v35 = vld [vmem:[#allocation11 + $0x128] sm:$0xff]  ;;  %v5477_v27 = vld [vmem:[#allocation11 + $0x1b0] sm:$0xff] }
 0x5ba   :  { %5394 = vst [vmem:[#allocation2 + $0x20] sm:$0xff] %v5378_v57  ;;  %5407 = vst [vmem:[#allocation4] sm:$0x1] %v5406_v63  ;;  %v5381_v16 = vmax.f32 %v5365_v61, 0.0  ;;  %v5459_v57 = vld [vmem:[#allocation11 + $0x120] sm:$0xff]  ;;  %v5478_v22 = vld [vmem:[#allocation11 + $0x1b8] sm:$0xff] }
 0x5bb   :  { %5409 = vst [vmem:[#allocation4 + $0x2] sm:$0x1] %v5408_v18  ;;  %v5380_v56 = vmax.f32 %v5364_v12, 0.0  ;;  %v8226_v55 = vpop.f32.mrb[24].mxu0  ;;  %v9177_v61 = vpack.c.bf16 %v5460_v35, %v5459_v57  ;;  %v9179_v47 = vpack.c.bf16 %v5478_v22, %v5477_v27  ;;  %v5461_v63 = vld [vmem:[#allocation11 + $0x130] sm:$0xff]  ;;  %v5462_v18 = vld [vmem:[#allocation11 + $0x138] sm:$0xff] }
 0x5bc   :  { %5397 = vst [vmem:[#allocation2 + $0x38] sm:$0xff] %v5381_v16  ;;  %v5367_v19 = vadd.f32 %v8226_v55, %v10855_v62  ;;  %v5296_v34 = vpop.f32.mrb[25].mxu0  ;;  %v5479_v12 = vld [vmem:[#allocation11 + $0x1c0] sm:$0xff]  ;;  %v5480_v16 = vld [vmem:[#allocation11 + $0x1c8] sm:$0xff]  ;;  %v5672_v45 = vld [vmem:[%s10949_s9 + $0x78] sm:$0xff] }
 0x5bd   :  { %5396 = vst [vmem:[#allocation2 + $0x30] sm:$0xff] %v5380_v56  ;;  %v5366_v49 = vadd.f32 %v10855_v62, %v5296_v34  ;;  %v9181_v56 = vpack.c.bf16 %v5462_v18, %v5461_v63  ;;  %v9183_v55 = vpack.c.bf16 %v5480_v16, %v5479_v12  ;;  %v5464_v34 = vld [vmem:[#allocation11 + $0x148] sm:$0xff] }
 0x5be   :  { %v5383_v54 = vmax.f32 %v5367_v19, 0.0  ;;  %v5463_v19 = vld [vmem:[#allocation11 + $0x140] sm:$0xff] }
 0x5bf   :  { %v5382_v42 = vmax.f32 %v5366_v49, 0.0  ;;  %v8229_v36 = vpop.f32.mrb[26].mxu0  ;;  %v5481_v49 = vld [vmem:[#allocation11 + $0x1d0] sm:$0xff] }
 0x5c0   :  { %5399 = vst [vmem:[#allocation2 + $0x48] sm:$0xff] %v5383_v54  ;;  %v5369_v0 = vadd.f32 %v8229_v36, %v10855_v62  ;;  %v5306_v46 = vpop.f32.mrb[27].mxu0  ;;  %v5482_v54 = vld [vmem:[#allocation11 + $0x1d8] sm:$0xff] }
 0x5c1   :  { %5398 = vst [vmem:[#allocation2 + $0x40] sm:$0xff] %v5382_v42  ;;  %v5368_v25 = vadd.f32 %v10855_v62, %v5306_v46  ;;  %v9185_v42 = vpack.c.bf16 %v5464_v34, %v5463_v19  ;;  %v9187_v36 = vpack.c.bf16 %v5482_v54, %v5481_v49  ;;  %v5466_v46 = vld [vmem:[#allocation11 + $0x158] sm:$0xff] }
 0x5c2   :  { %v5385_v2 = vmax.f32 %v5369_v0, 0.0  ;;  %v5465_v0 = vld [vmem:[#allocation11 + $0x150] sm:$0xff] }
 0x5c3   :  { %v5384_v20 = vmax.f32 %v5368_v25, 0.0  ;;  %v8232_v21 = vpop.f32.mrb[28].mxu0  ;;  %v5483_v25 = vld [vmem:[#allocation11 + $0x1e0] sm:$0xff] }
 0x5c4   :  { %5401 = vst [vmem:[#allocation2 + $0x58] sm:$0xff] %v5385_v2  ;;  %v5371_v53 = vadd.f32 %v8232_v21, %v10855_v62  ;;  %v5316_v5 = vpop.f32.mrb[29].mxu0  ;;  %v5484_v2 = vld [vmem:[#allocation11 + $0x1e8] sm:$0xff] }
 0x5c5   :  { %5400 = vst [vmem:[#allocation2 + $0x50] sm:$0xff] %v5384_v20  ;;  %v5370_v24 = vadd.f32 %v10855_v62, %v5316_v5  ;;  %v9189_v20 = vpack.c.bf16 %v5466_v46, %v5465_v0  ;;  %v9191_v21 = vpack.c.bf16 %v5484_v2, %v5483_v25  ;;  %v5468_v5 = vld [vmem:[#allocation11 + $0x168] sm:$0xff] }
 0x5c6   :  { %v5387_v8 = vmax.f32 %v5371_v53, 0.0  ;;  %v5467_v53 = vld [vmem:[#allocation11 + $0x160] sm:$0xff] }
 0x5c7   :  { %v5386_v52 = vmax.f32 %v5370_v24, 0.0  ;;  %v8235_v40 = vpop.f32.mrb[30].mxu0  ;;  %v5418_v60 = vld [vmem:[#allocation2 + $0x48] sm:$0x1]  ;;  %v5420_v1 = vld [vmem:[#allocation2 + $0x49] sm:$0x1]  ;;  %v9193_v44 = vpack.c.bf16 %v5468_v5, %v5467_v53 }
 0x5c8   :  { %5403 = vst [vmem:[#allocation2 + $0x68] sm:$0xff] %v5387_v8  ;;  %v5373_v3 = vadd.f32 %v8235_v40, %v10855_v62  ;;  %v5326_v43 = vpop.f32.mrb[31].mxu0  ;;  %v5414_v23 = vld [vmem:[#allocation2 + $0x40] sm:$0x1]  ;;  %v5416_v6 = vld [vmem:[#allocation2 + $0x41] sm:$0x1] }
 0x5c9   :  { %5419 = vst [vmem:[#allocation4 + $0x5] sm:$0x1] %v5418_v60  ;;  %5421 = vst [vmem:[#allocation4 + $0x7] sm:$0x1] %v5420_v1  ;;  %v5372_v4 = vadd.f32 %v10855_v62, %v5326_v43  ;;  %v9171_v62 = vpack.c.bf16 %v5474_v41, %v5473_v26  ;;  %v5485_v24 = vld [vmem:[#allocation11 + $0x1f0] sm:$0xff]  ;;  %v5657_v60 = vld [vmem:[%s10949_s9] sm:$0xff] }
 0x5ca   :  { %5402 = vst [vmem:[#allocation2 + $0x60] sm:$0xff] %v5386_v52  ;;  %5415 = vst [vmem:[#allocation4 + $0x1] sm:$0x1] %v5414_v23  ;;  %v5389_v9 = vmax.f32 %v5373_v3, 0.0  ;;  %v9195_v38 = vpack.c.bf16 %v5486_v7, %v5485_v24  ;;  %v5469_v8 = vld [vmem:[#allocation11 + $0x170] sm:$0xff]  ;;  %v5470_v52 = vld [vmem:[#allocation11 + $0x178] sm:$0xff] }
 0x5cb   :  { %5417 = vst [vmem:[#allocation4 + $0x3] sm:$0x1] %v5416_v6  ;;  %v5388_v15 = vmax.f32 %v5372_v4, 0.0  ;;  %v9197_v40 = vpack.c.bf16 %v5470_v52, %v5469_v8  ;;  %v5658_v1 = vld [vmem:[%s10949_s9 + $0x8] sm:$0xff]  ;;  %v5659_v3 = vld [vmem:[%s10949_s9 + $0x10] sm:$0xff]  ;;  %v9747_v43 = vmov 0.0|0.0  }
 0x5cc   :  { %5405 = vst [vmem:[#allocation2 + $0x78] sm:$0xff] %v5389_v9  ;;  %v9200_v23 = vpack.c.bf16 %v5658_v1, %v5657_v60  ;;  %v5660_v6 = vld [vmem:[%s10949_s9 + $0x18] sm:$0xff]  ;;  %v9206_v9 = vpack.c.bf16 %v5662_v59, %v5661_v29 }
 0x5cd   :  { %5404 = vst [vmem:[#allocation2 + $0x70] sm:$0xff] %v5388_v15  ;;  %v9203_v4 = vpack.c.bf16 %v5660_v6, %v5659_v3  ;;  %v5663_v15 = vld [vmem:[%s10949_s9 + $0x30] sm:$0xff]  ;;  %v5668_v26 = vld [vmem:[%s10949_s9 + $0x58] sm:$0xff] }
 0x5d2   :  { %v5422_v28 = vld [vmem:[#allocation4] sm:$0xff] }
 0x5d3   :  { %v5502_v48 = vrot.slane %v5422_v28, %v5501_v30  ;;  %v5495_v11 = vcombine.high %v5422_v28, %v5422_v28 }
 0x5d5   :  { %v5510_v50 = vcombine.high %v5502_v48, %v5502_v48  ;;  %v5509_v31 = vrot.slane %v5495_v11, %v5501_v30  ;;  %v5664_v30 = vld [vmem:[%s10949_s9 + $0x38] sm:$0xff]  ;;  %v5667_v11 = vld [vmem:[%s10949_s9 + $0x50] sm:$0xff] }
 0x5d6   :  { %v9209_v28 = vpack.c.bf16 %v5664_v30, %v5663_v15  ;;  %v9215_v41 = vpack.c.bf16 %v5668_v26, %v5667_v11 }
 0x5d7   :  { %5580 = vmatprep.mubr.f32.mxu1 %v5510_v50  ;;  %v5511_v39 = vcombine.high %v5509_v31, %v5509_v31  ;;  %v5669_v50 = vld [vmem:[%s10949_s9 + $0x60] sm:$0xff] }
 0x5d8   :  { %5581 = vmatmul.mubr.f32.vlgmr.msra.gmra.mrb[32].mxu1 %v5502_v48  ;;  %v9212_v48 = vpack.c.bf16 %v5666_v14, %v5665_v32 }
 0x5d9   :  { %9170 = vmatpush3.bf16.msra.mxu1 %v9169_v51  ;;  %5650 = vmatprep.mubr.f32.mxu1 %v5511_v39  ;;  %v5670_v51 = vld [vmem:[%s10949_s9 + $0x68] sm:$0xff] }
 0x5da   :  { %9172 = vmatprep.subr.bf16.mxu1 %v9171_v62  ;;  %v5671_v62 = vld [vmem:[%s10949_s9 + $0x70] sm:$0xff] }
 0x5db   :  { %v9221_v33 = vpack.c.bf16 %v5672_v45, %v5671_v62 }
 0x5dd   :  { %9174 = vmatpush3.bf16.msra.mxu1 %v9173_v58  ;;  %v5771_v58 = vld [vmem:[%s10948_s8] ss:$0 sm:$0xff] }
 0x5de   :  { %9176 = vmatprep.subr.bf16.mxu1 %v9175_v37 }
 0x5e1   :  { %9178 = vmatpush3.bf16.msra.mxu1 %v9177_v61 }
 0x5e2   :  { %9180 = vmatprep.subr.bf16.mxu1 %v9179_v47  ;;  %v5772_v47 = vld [vmem:[%s10950_s10] ss:$0 sm:$0xff] }
 0x5e5   :  { %9182 = vmatpush3.bf16.msra.mxu1 %v9181_v56 }
 0x5e6   :  { %9184 = vmatprep.subr.bf16.mxu1 %v9183_v55 }
 0x5e9   :  { %9186 = vmatpush3.bf16.msra.mxu1 %v9185_v42 }
 0x5ea   :  { %9188 = vmatprep.subr.bf16.mxu1 %v9187_v36 }
 0x5ed   :  { %9190 = vmatpush3.bf16.msra.mxu1 %v9189_v20 }
 0x5ee   :  { %9192 = vmatprep.subr.bf16.mxu1 %v9191_v21 }
 0x5f1   :  { %9194 = vmatpush3.bf16.msra.mxu1 %v9193_v44 }
 0x5f2   :  { %9196 = vmatprep.subr.bf16.mxu1 %v9195_v38 }
 0x5f5   :  { %9198 = vmatpush3.bf16.msra.mxu1 %v9197_v40 }
 0x5f6   :  { %9199 = vmatprep.subr.bf16.mxu1 %v9747_v43 }
 0x5f8   :  { %5651 = vmatmul.mubr.f32.vlgmr.msra.gmra.mrb[34].mxu1 %v5509_v31  ;;  %v9218_v31 = vpack.c.bf16 %v5670_v51, %v5669_v50 }
 0x5f9   :  { %9201 = vmatpush3.bf16.msra.mxu1 %v9200_v23  ;;  %8268 = vmatprep.mubr.msk.f32.mxu1 %vm9748_vm0, %v10819_v10 }
 0x5fa   :  { %9202 = vmatprep.subr.bf16.mxu1 %v9747_v43 }
 0x5fd   :  { %9204 = vmatpush3.bf16.msra.mxu1 %v9203_v4 }
 0x5fe   :  { %9205 = vmatprep.subr.bf16.mxu1 %v9747_v43 }
 0x601   :  { %9207 = vmatpush3.bf16.msra.mxu1 %v9206_v9 }
 0x602   :  { %9208 = vmatprep.subr.bf16.mxu1 %v9747_v43 }
 0x605   :  { %9210 = vmatpush3.bf16.msra.mxu1 %v9209_v28 }
 0x606   :  { %9211 = vmatprep.subr.bf16.mxu1 %v9747_v43 }
 0x609   :  { %9213 = vmatpush3.bf16.msra.mxu1 %v9212_v48 }
 0x60a   :  { %9214 = vmatprep.subr.bf16.mxu1 %v9747_v43 }
 0x60d   :  { %9216 = vmatpush3.bf16.msra.mxu1 %v9215_v41 }
 0x60e   :  { %9217 = vmatprep.subr.bf16.mxu1 %v9747_v43 }
 0x611   :  { %9219 = vmatpush3.bf16.msra.mxu1 %v9218_v31 }
 0x612   :  { %9220 = vmatprep.subr.bf16.mxu1 %v9747_v43 }
 0x615   :  { %9222 = vmatpush3.bf16.msra.mxu1 %v9221_v33 }
 0x6ab   :  { %v6669_v39 = vpop.f32.mrb[32].mxu1 }
 0x6ac   :  { %v6670_v17 = vpop.f32.mrb[33].mxu1 }
 0x6ad   :  { %v6671_v13 = vadd.f32 %v6670_v17, %v6669_v39 }
 0x6af   :  { %v5583_v35 = vadd.f32 %v6671_v13, %v5771_v58 }
 0x6cb   :  { %v6704_v37 = vpop.f32.mrb[34].mxu1 }
 0x6cc   :  { %v6705_v57 = vpop.f32.mrb[35].mxu1 }
 0x6cd   :  { %v6706_v27 = vadd.f32 %v6705_v57, %v6704_v37 }
 0x6cf   :  { %v5653_v22 = vadd.f32 %v6706_v27, %v5583_v35 }
 0x6d1   :  { %v5656_v61 = vmax.f32 %v5653_v22, 0.0 }
 0x6d3   :  { %8269 = vmatmul.mubr.f32.vlgmr.msra.gmra.mrb[36].mxu1 %v5656_v61 }
 0x7a6   :  { %v5746_v10 = vpop.f32.mrb[36].mxu1 }
 0x7a7   :  { %v5747_v63 = vadd.f32 %v5772_v47, %v5746_v10  ;;  %v8270_v18 = vpop.f32.mrb[37].mxu1 }
 0x7a9   :  { %5750 = vst [vmem:[#allocation13] sm:$0x3] %v5747_v63 }
 0x7aa   :  { %9720 = shalt.err (!%p9717_p8)
}
 0x7ab   :  { %s9721_s15 = scalar_lea.hbm %s10951_s11, 32 }
 0x7ac   :  { %p9722_p9 = scmp.ne.s32.totalorder %s10951_s11, %s9721_s15  ;;  %p9725_p10 = scmp.lt.u32.totalorder %s9721_s15, %s10951_s11 }
 0x7ae   :  { %p9727_p11 = pnand %p9725_p10, %p9722_p9 }
 0x7b0   :  { %9730 = shalt.err (!%p9727_p11)
}
 0x7b1   :  { %5760 = dma.vmem_to_hbm [thread:$0]  %s5758_s27, 32, %s10951_s11, [#allocation7]  }
 0x7b2   :  { %9737 = dma.done.wait [#allocation7], 32  }
 0x7b3   :  { %9738 = vsyncadd [#allocation7], 4294967264 }
 0x7b4   :  { %5764 = vsyncpa [#allocation6], 1 }
 0x7b5   :  { %5765 = vsyncpa [#allocation9], 1 }
 0x7b6   :  { %5766 = vsyncpa [#allocation12], 1 }
 0x7b7   :  { %5767 = vsyncpa [#allocation7], 1 }

</bundles_post_ra>
